<compile_context>
chip_gen: v7x
topology: tpu7x:2x2x1
jax: 0.10.0
libtpu: 0.0.40
codegen_flags: <defaults>
</compile_context>

<pallas_src>
import functools

import jax
import jax.numpy as jnp
import numpy as np
from jax import lax
from jax.experimental import pallas as pl
from jax.experimental.pallas import tpu as pltpu


def _round_up(x, m):
    return (x + m - 1) // m * m


# ---------------------------------------------------------------------------
# Fused path (stride == 1)
# ---------------------------------------------------------------------------
def _fused_stats_kernel(x_ref, w_ref, sum_ref, ssq_ref, acc_ref, s_acc, q_acc,
                        *, th, wo):
    """Pass A: per-channel sum / sum-of-squares of conv(x) (bias folded later).

    x_ref   : (H+2, W+2, Cin)   padded image (resident across the row-tile axis)
    w_ref   : (9, Cin, Coutp)   one (Cin, Coutp) slab per (kh, kw)
    sum_ref, ssq_ref : (1, Coutp) per-batch partial statistics outputs
    acc_ref : (th*wo, Coutp) f32 scratch (conv tile accumulator)
    s_acc, q_acc : (1, Coutp) f32 scratch running statistics
    """
    r = pl.program_id(1)
    nrt = pl.num_programs(1)

    @pl.when(r == 0)
    def _():
        s_acc[...] = jnp.zeros_like(s_acc)
        q_acc[...] = jnp.zeros_like(q_acc)

    row0 = r * th
    idx = 0
    for kh in range(3):
        for kw in range(3):
            patch = x_ref[pl.ds(row0 + kh, th), pl.ds(kw, wo), :]
            lhs = patch.reshape(th * wo, patch.shape[-1])
            p = jnp.dot(lhs, w_ref[idx], preferred_element_type=jnp.float32)
            if idx == 0:
                acc_ref[...] = p
            else:
                acc_ref[...] += p
            idx += 1

    y = acc_ref[...]
    s_acc[...] += jnp.sum(y, axis=0, keepdims=True)
    q_acc[...] += jnp.sum(y * y, axis=0, keepdims=True)

    @pl.when(r == nrt - 1)
    def _():
        sum_ref[...] = s_acc[...]
        ssq_ref[...] = q_acc[...]


def _fused_bn_relu_kernel(x_ref, w_ref, scale_ref, shift_ref, o_ref, *, th, wo):
    """Pass B: recompute conv tile, apply fused BN affine + ReLU, lane-dense store."""
    r = pl.program_id(1)
    row0 = r * th
    idx = 0
    for kh in range(3):
        for kw in range(3):
            patch = x_ref[pl.ds(row0 + kh, th), pl.ds(kw, wo), :]
            lhs = patch.reshape(th * wo, patch.shape[-1])
            p = jnp.dot(lhs, w_ref[idx], preferred_element_type=jnp.float32)
            if idx == 0:
                o_ref[...] = p
            else:
                o_ref[...] += p
            idx += 1
    o_ref[...] = jnp.maximum(o_ref[...] * scale_ref[...] + shift_ref[...], 0.0)


def _pick_row_tile(ho, wo, cin, coutp, h_pad, w_pad,
                   vmem_budget=24 * 1024 * 1024):
    """Largest row tile th (divisor of ho, (th*wo) % 8 == 0) within the VMEM budget."""
    img_bytes = h_pad * w_pad * cin * 4
    w_bytes = 9 * cin * coutp * 4
    fixed = 2 * img_bytes + 2 * w_bytes            # double-buffered inputs
    for th in range(ho, 0, -1):
        if ho % th:
            continue
        if (th * wo) % 8:
            continue
        # conv-tile scratch + double-buffered output tile
        if fixed + 3 * th * wo * coutp * 4 <= vmem_budget:
            return th
    return None


def _fused_forward(x_nchw, weight, bias, gamma, beta, eps, th):
    n, cin, h, w = x_nchw.shape
    cout = weight.shape[0]
    ho, wo = h, w                                   # stride 1, pad 1, k 3
    coutp = _round_up(cout, 128)
    nrt = ho // th

    # TODO(synk): NCHW<->NHWC transposes stay in XLA because the PyTorch
    # interface is NCHW; fold them into producer/consumer when integrating.
    x_nhwc = jnp.transpose(x_nchw, (0, 2, 3, 1)).astype(jnp.float32)
    xp = jnp.pad(x_nhwc, ((0, 0), (1, 1), (1, 1), (0, 0)))

    # [Cout, Cin, 3, 3] -> [3, 3, Cin, Cout] -> [9, Cin, Coutp] (zero-padded cols)
    w9 = jnp.transpose(weight, (2, 3, 1, 0)).reshape(9, cin, cout)
    w9 = jnp.pad(w9.astype(jnp.float32), ((0, 0), (0, 0), (0, coutp - cout)))

    stats_kernel = functools.partial(_fused_stats_kernel, th=th, wo=wo)
    csum, cssq = pl.pallas_call(
        stats_kernel,
        out_shape=(
            jax.ShapeDtypeStruct((n, 1, coutp), jnp.float32),
            jax.ShapeDtypeStruct((n, 1, coutp), jnp.float32),
        ),
        grid_spec=pltpu.PrefetchScalarGridSpec(
            num_scalar_prefetch=0,
            grid=(n, nrt),
            in_specs=[
                pl.BlockSpec((None, h + 2, w + 2, cin),
                             lambda b, r: (b, 0, 0, 0)),
                pl.BlockSpec((9, cin, coutp), lambda b, r: (0, 0, 0)),
            ],
            out_specs=(
                pl.BlockSpec((None, 1, coutp), lambda b, r: (b, 0, 0)),
                pl.BlockSpec((None, 1, coutp), lambda b, r: (b, 0, 0)),
            ),
            scratch_shapes=[
                pltpu.VMEM((th * wo, coutp), jnp.float32),
                pltpu.VMEM((1, coutp), jnp.float32),
                pltpu.VMEM((1, coutp), jnp.float32),
            ],
        ),
        compiler_params=pltpu.CompilerParams(
            dimension_semantics=("parallel", "arbitrary")),
    )(xp, w9)

    # ---- tiny per-channel BN math (Coutp scalars) in plain JAX --------------
    m_total = n * ho * wo
    b_p = jnp.pad(bias.astype(jnp.float32), (0, coutp - cout))
    g_p = jnp.pad(gamma.astype(jnp.float32), (0, coutp - cout))
    be_p = jnp.pad(beta.astype(jnp.float32), (0, coutp - cout))

    sum_c = jnp.sum(csum[:, 0, :], axis=0)          # conv-without-bias stats
    ssq_c = jnp.sum(cssq[:, 0, :], axis=0)
    sum_y = sum_c + m_total * b_p                   # fold conv bias analytically
    ssq_y = ssq_c + 2.0 * b_p * sum_c + m_total * b_p * b_p
    mean = sum_y / m_total
    var = jnp.maximum(ssq_y / m_total - mean * mean, 0.0)
    inv_std = lax.rsqrt(var + eps)
    scale = g_p * inv_std
    shift = be_p - mean * scale + b_p * scale       # maps conv (no bias) -> BN out
    scale2d = scale.reshape(1, coutp)
    shift2d = shift.reshape(1, coutp)

    bn_kernel = functools.partial(_fused_bn_relu_kernel, th=th, wo=wo)
    out = pl.pallas_call(
        bn_kernel,
        out_shape=jax.ShapeDtypeStruct((n, ho * wo, coutp), jnp.float32),
        grid_spec=pltpu.PrefetchScalarGridSpec(
            num_scalar_prefetch=0,
            grid=(n, nrt),
            in_specs=[
                pl.BlockSpec((None, h + 2, w + 2, cin),
                             lambda b, r: (b, 0, 0, 0)),
                pl.BlockSpec((9, cin, coutp), lambda b, r: (0, 0, 0)),
                pl.BlockSpec((1, coutp), lambda b, r: (0, 0)),
                pl.BlockSpec((1, coutp), lambda b, r: (0, 0)),
            ],
            out_specs=pl.BlockSpec((None, th * wo, coutp),
                                   lambda b, r: (b, r, 0)),
        ),
        compiler_params=pltpu.CompilerParams(
            dimension_semantics=("parallel", "parallel")),
    )(xp, w9, scale2d, shift2d)

    out = out[:, :, :cout].reshape(n, ho, wo, cout)
    return jnp.transpose(out, (0, 3, 1, 2))


# ---------------------------------------------------------------------------
# Fallback path (stride != 1): JAX im2col + Pallas matmul/stats + BN/ReLU.
# ---------------------------------------------------------------------------
def _im2col_matmul_stats_kernel(p_ref, w_ref, b_ref, y_ref, sum_ref, ssq_ref):
    i = pl.program_id(0)
    y = jnp.dot(p_ref[...], w_ref[...], preferred_element_type=jnp.float32)
    y = y + b_ref[...]
    y_ref[...] = y

    @pl.when(i == 0)
    def _():
        sum_ref[...] = jnp.zeros_like(sum_ref)
        ssq_ref[...] = jnp.zeros_like(ssq_ref)

    sum_ref[...] += jnp.sum(y, axis=0, keepdims=True)
    ssq_ref[...] += jnp.sum(y * y, axis=0, keepdims=True)


def _bn_relu_kernel(y_ref, scale_ref, shift_ref, o_ref):
    o_ref[...] = jnp.maximum(y_ref[...] * scale_ref[...] + shift_ref[...], 0.0)


def _im2col(x_nhwc, stride):
    n, h, w, c = x_nhwc.shape
    ho = (h + 2 - 3) // stride + 1
    wo = (w + 2 - 3) // stride + 1
    xp = jnp.pad(x_nhwc, ((0, 0), (1, 1), (1, 1), (0, 0)))
    pieces = []
    for kh in range(3):
        for kw in range(3):
            pieces.append(
                xp[:, kh:kh + (ho - 1) * stride + 1:stride,
                      kw:kw + (wo - 1) * stride + 1:stride, :])
    return jnp.concatenate(pieces, axis=-1), ho, wo


def _im2col_forward(x_nchw, weight, bias, gamma, beta, stride, eps):
    # TODO(synk): stride != 1 still materializes im2col patches in HBM and
    # round-trips y; only the stride-1 path has the fully fused structure.
    n, cin, h, w = x_nchw.shape
    cout = weight.shape[0]
    coutp = _round_up(cout, 128)

    x_nhwc = jnp.transpose(x_nchw, (0, 2, 3, 1)).astype(jnp.float32)
    patches, ho, wo = _im2col(x_nhwc, stride)
    k = 9 * cin
    m = n * ho * wo
    tm = 512 if m >= 512 else _round_up(m, 8)
    m_pad = _round_up(m, tm)

    patches = patches.reshape(m, k)
    patches = jnp.pad(patches, ((0, m_pad - m), (0, 0)))
    w2d = jnp.transpose(weight, (2, 3, 1, 0)).reshape(k, cout).astype(jnp.float32)
    w2d = jnp.pad(w2d, ((0, 0), (0, coutp - cout)))
    b2d = jnp.pad(bias.astype(jnp.float32), (0, coutp - cout)).reshape(1, coutp)

    y, csum, cssq = pl.pallas_call(
        _im2col_matmul_stats_kernel,
        out_shape=(
            jax.ShapeDtypeStruct((m_pad, coutp), jnp.float32),
            jax.ShapeDtypeStruct((1, coutp), jnp.float32),
            jax.ShapeDtypeStruct((1, coutp), jnp.float32),
        ),
        grid_spec=pltpu.PrefetchScalarGridSpec(
            num_scalar_prefetch=0,
            grid=(m_pad // tm,),
            in_specs=[
                pl.BlockSpec((tm, k), lambda i: (i, 0)),
                pl.BlockSpec((k, coutp), lambda i: (0, 0)),
                pl.BlockSpec((1, coutp), lambda i: (0, 0)),
            ],
            out_specs=(
                pl.BlockSpec((tm, coutp), lambda i: (i, 0)),
                pl.BlockSpec((1, coutp), lambda i: (0, 0)),
                pl.BlockSpec((1, coutp), lambda i: (0, 0)),
            ),
        ),
        compiler_params=pltpu.CompilerParams(
            dimension_semantics=("arbitrary",)),
    )(patches, w2d, b2d)

    # Padded (all-zero) patch rows contribute exactly `bias` each — remove them.
    n_pad = m_pad - m
    b1 = b2d[0]
    sum_y = csum[0] - n_pad * b1
    ssq_y = cssq[0] - n_pad * b1 * b1
    mean = sum_y / m
    var = jnp.maximum(ssq_y / m - mean * mean, 0.0)
    inv_std = lax.rsqrt(var + eps)
    g_p = jnp.pad(gamma.astype(jnp.float32), (0, coutp - cout))
    be_p = jnp.pad(beta.astype(jnp.float32), (0, coutp - cout))
    scale = (g_p * inv_std).reshape(1, coutp)
    shift = (be_p - mean * g_p * inv_std).reshape(1, coutp)

    out = pl.pallas_call(
        _bn_relu_kernel,
        out_shape=jax.ShapeDtypeStruct((m_pad, coutp), jnp.float32),
        grid_spec=pltpu.PrefetchScalarGridSpec(
            num_scalar_prefetch=0,
            grid=(m_pad // tm,),
            in_specs=[
                pl.BlockSpec((tm, coutp), lambda i: (i, 0)),
                pl.BlockSpec((1, coutp), lambda i: (0, 0)),
                pl.BlockSpec((1, coutp), lambda i: (0, 0)),
            ],
            out_specs=pl.BlockSpec((tm, coutp), lambda i: (i, 0)),
        ),
        compiler_params=pltpu.CompilerParams(
            dimension_semantics=("parallel",)),
    )(y, scale, shift)

    out = out[:m, :cout].reshape(n, ho, wo, cout)
    return jnp.transpose(out, (0, 3, 1, 2))


# ---------------------------------------------------------------------------
# Public entry point
# ---------------------------------------------------------------------------
@functools.partial(jax.jit, static_argnames=("stride",))
def conv_block_forward(x_nchw, weight, bias, gamma, beta, *, stride=1,
                       eps=1e-5):
    """ConvBlock forward.  x_nchw: [N, Cin, H, W] float32, PyTorch layout."""
    n, cin, h, w = x_nchw.shape
    cout = weight.shape[0]
    coutp = _round_up(cout, 128)
    ho = (h + 2 - 3) // stride + 1
    wo = (w + 2 - 3) // stride + 1

    th = None
    if stride == 1 and wo % 8 == 0:
        th = _pick_row_tile(ho, wo, cin, coutp, h + 2, w + 2)
    if th is not None:
        return _fused_forward(x_nchw, weight, bias, gamma, beta, eps, th)
    return _im2col_forward(x_nchw, weight, bias, gamma, beta, stride, eps)


# ---------------------------------------------------------------------------
# Pure-JAX reference (correctness sanity check).
# ---------------------------------------------------------------------------
def reference_forward(x, weight, bias, gamma, beta, stride=1, eps=1e-5):
    y = lax.conv_general_dilated(
        x, weight, window_strides=(stride, stride), padding=((1, 1), (1, 1)),
        dimension_numbers=("NCHW", "OIHW", "NCHW"))
    y = y + bias.reshape(1, -1, 1, 1)
    mean = jnp.mean(y, axis=(0, 2, 3), keepdims=True)
    var = jnp.mean((y - mean) ** 2, axis=(0, 2, 3), keepdims=True)
    y = (y - mean) / jnp.sqrt(var + eps)
    y = y * gamma.reshape(1, -1, 1, 1) + beta.reshape(1, -1, 1, 1)
    return jnp.maximum(y, 0.0)


if __name__ == "__main__":
    key = jax.random.PRNGKey(0)
    k_x, k_w, k_b = jax.random.split(key, 3)

    N, C_IN, H, W = 2, 4, 16, 16
    C_OUT = 8

    x = jax.random.normal(k_x, (N, C_IN, H, W), dtype=jnp.float32)
    fan_in = C_IN * 3 * 3
    weight = jax.random.normal(k_w, (C_OUT, C_IN, 3, 3),
                               dtype=jnp.float32) / np.sqrt(fan_in)
    bias = 0.01 * jax.random.normal(k_b, (C_OUT,), dtype=jnp.float32)
    gamma = jnp.ones((C_OUT,), dtype=jnp.float32)
    beta = jnp.zeros((C_OUT,), dtype=jnp.float32)

    # stride=1: fused in-kernel patch-extraction path.
    out = jax.block_until_ready(
        conv_block_forward(x, weight, bias, gamma, beta, stride=1))
    ref = reference_forward(x, weight, bias, gamma, beta, stride=1)
    np.testing.assert_allclose(np.asarray(out), np.asarray(ref),
                               rtol=1e-4, atol=1e-4)

    # stride=2 (downsampling ConvBlock): exercises the im2col fallback path.
    out2 = jax.block_until_ready(
        conv_block_forward(x, weight, bias, gamma, beta, stride=2))
    ref2 = reference_forward(x, weight, bias, gamma, beta, stride=2)
    np.testing.assert_allclose(np.asarray(out2), np.asarray(ref2),
                               rtol=1e-4, atol=1e-4)

    print("KERNEL_OK")
</pallas_src>

<mosaic_0001>
module attributes {stable_mosaic.version = 11 : i64} {
  func.func @_fused_stats_kernel(%arg0: i32, %arg1: i32, %arg2: memref<1x18x18x4xf32, #tpu.memory_space<vmem>>, %arg3: memref<9x4x128xf32, #tpu.memory_space<vmem>>, %arg4: memref<1x1x128xf32, #tpu.memory_space<vmem>>, %arg5: memref<1x1x128xf32, #tpu.memory_space<vmem>>, %arg6: memref<256x128xf32, #tpu.memory_space<vmem>>, %arg7: memref<1x128xf32, #tpu.memory_space<vmem>>, %arg8: memref<1x128xf32, #tpu.memory_space<vmem>>) attributes {dimension_semantics = [#tpu.dimension_semantics<parallel>, #tpu.dimension_semantics<arbitrary>], iteration_bounds = array<i64: 2, 1>, scalar_prefetch = 0 : i64, scratch_operands = 3 : i64, tpu.core_type = #tpu.core_type<tc>, window_params = [{transform_indices = @transform_0, window_bounds = array<i64: 1, 18, 18, 4>}, {pipeline_mode = #tpu.pipeline_mode<synchronous>, transform_indices = @transform_1, window_bounds = array<i64: 9, 4, 128>}, {transform_indices = @transform_2, window_bounds = array<i64: 1, 1, 128>}, {transform_indices = @transform_3, window_bounds = array<i64: 1, 1, 128>}]} {
    %c0_i32 = arith.constant 0 : i32
    %0 = arith.cmpi eq, %arg1, %c0_i32 : i32
    %1 = arith.extui %0 : i1 to i32
    %c0_i32_0 = arith.constant 0 : i32
    %2 = arith.cmpi ne, %1, %c0_i32_0 : i32
    scf.if %2 {
      %cst_109 = arith.constant 0.000000e+00 : f32
      %116 = vector.broadcast %cst_109 : f32 to vector<1x128xf32>
      %c0_110 = arith.constant 0 : index
      %c0_111 = arith.constant 0 : index
      %117 = vector.load %arg7[%c0_110, %c0_111] : memref<1x128xf32, #tpu.memory_space<vmem>>, vector<1x128xf32>
      tpu.vector_store %arg7[%c0_110, %c0_111], %116 {strides = array<i32>} : memref<1x128xf32, #tpu.memory_space<vmem>>, vector<1x128xf32>,
      %cst_112 = arith.constant 0.000000e+00 : f32
      %118 = vector.broadcast %cst_112 : f32 to vector<1x128xf32>
      %c0_113 = arith.constant 0 : index
      %c0_114 = arith.constant 0 : index
      %119 = vector.load %arg8[%c0_113, %c0_114] : memref<1x128xf32, #tpu.memory_space<vmem>>, vector<1x128xf32>
      tpu.vector_store %arg8[%c0_113, %c0_114], %118 {strides = array<i32>} : memref<1x128xf32, #tpu.memory_space<vmem>>, vector<1x128xf32>,
    } else {
    }
    %c16_i32 = arith.constant 16 : i32
    %3 = arith.muli %arg1, %c16_i32 : i32
    %c0_i32_1 = arith.constant 0 : i32
    %4 = arith.addi %3, %c0_i32_1 : i32
    %c0 = arith.constant 0 : index
    %5 = arith.index_cast %4 : i32 to index
    %c0_2 = arith.constant 0 : index
    %c0_3 = arith.constant 0 : index
    %6 = vector.load %arg2[%c0, %5, %c0_2, %c0_3] : memref<1x18x18x4xf32, #tpu.memory_space<vmem>>, vector<1x16x16x4xf32>
    %7 = vector.shape_cast %6 : vector<1x16x16x4xf32> to vector<16x16x4xf32>
    %8 = vector.shape_cast %7 : vector<16x16x4xf32> to vector<256x4xf32>
    %c0_4 = arith.constant 0 : index
    %c0_5 = arith.constant 0 : index
    %c0_6 = arith.constant 0 : index
    %9 = vector.load %arg3[%c0_4, %c0_5, %c0_6] : memref<9x4x128xf32, #tpu.memory_space<vmem>>, vector<1x4x128xf32>
    %10 = vector.shape_cast %9 : vector<1x4x128xf32> to vector<4x128xf32>
    %cst = arith.constant dense<0.000000e+00> : vector<256x128xf32>
    %11 = tpu.matmul %8, %10, %cst {dimension_numbers = #tpu.dot_dimension_numbers<[1], [0], [0], [1], [0, 0, 1, 1], [], []>} : vector<256x4xf32>, vector<4x128xf32>, vector<256x128xf32> -> vector<256x128xf32>
    %c0_7 = arith.constant 0 : index
    %c0_8 = arith.constant 0 : index
    %12 = vector.load %arg6[%c0_7, %c0_8] : memref<256x128xf32, #tpu.memory_space<vmem>>, vector<256x128xf32>
    tpu.vector_store %arg6[%c0_7, %c0_8], %11 {strides = array<i32>} : memref<256x128xf32, #tpu.memory_space<vmem>>, vector<256x128xf32>,
    %c0_i32_9 = arith.constant 0 : i32
    %13 = arith.addi %3, %c0_i32_9 : i32
    %c0_10 = arith.constant 0 : index
    %14 = arith.index_cast %13 : i32 to index
    %c1 = arith.constant 1 : index
    %c0_11 = arith.constant 0 : index
    %15 = vector.load %arg2[%c0_10, %14, %c1, %c0_11] : memref<1x18x18x4xf32, #tpu.memory_space<vmem>>, vector<1x16x16x4xf32>
    %16 = vector.shape_cast %15 : vector<1x16x16x4xf32> to vector<16x16x4xf32>
    %17 = vector.shape_cast %16 : vector<16x16x4xf32> to vector<256x4xf32>
    %c1_12 = arith.constant 1 : index
    %c0_13 = arith.constant 0 : index
    %c0_14 = arith.constant 0 : index
    %18 = vector.load %arg3[%c1_12, %c0_13, %c0_14] : memref<9x4x128xf32, #tpu.memory_space<vmem>>, vector<1x4x128xf32>
    %19 = vector.shape_cast %18 : vector<1x4x128xf32> to vector<4x128xf32>
    %cst_15 = arith.constant dense<0.000000e+00> : vector<256x128xf32>
    %20 = tpu.matmul %17, %19, %cst_15 {dimension_numbers = #tpu.dot_dimension_numbers<[1], [0], [0], [1], [0, 0, 1, 1], [], []>} : vector<256x4xf32>, vector<4x128xf32>, vector<256x128xf32> -> vector<256x128xf32>
    %c0_16 = arith.constant 0 : index
    %c0_17 = arith.constant 0 : index
    %21 = vector.load %arg6[%c0_16, %c0_17] : memref<256x128xf32, #tpu.memory_space<vmem>>, vector<256x128xf32>
    %22 = arith.addf %21, %20 : vector<256x128xf32>
    %c0_18 = arith.constant 0 : index
    %c0_19 = arith.constant 0 : index
    %23 = vector.load %arg6[%c0_18, %c0_19] : memref<256x128xf32, #tpu.memory_space<vmem>>, vector<256x128xf32>
    tpu.vector_store %arg6[%c0_18, %c0_19], %22 {strides = array<i32>} : memref<256x128xf32, #tpu.memory_space<vmem>>, vector<256x128xf32>,
    %c0_i32_20 = arith.constant 0 : i32
    %24 = arith.addi %3, %c0_i32_20 : i32
    %c0_21 = arith.constant 0 : index
    %25 = arith.index_cast %24 : i32 to index
    %c2 = arith.constant 2 : index
    %c0_22 = arith.constant 0 : index
    %26 = vector.load %arg2[%c0_21, %25, %c2, %c0_22] : memref<1x18x18x4xf32, #tpu.memory_space<vmem>>, vector<1x16x16x4xf32>
    %27 = vector.shape_cast %26 : vector<1x16x16x4xf32> to vector<16x16x4xf32>
    %28 = vector.shape_cast %27 : vector<16x16x4xf32> to vector<256x4xf32>
    %c2_23 = arith.constant 2 : index
    %c0_24 = arith.constant 0 : index
    %c0_25 = arith.constant 0 : index
    %29 = vector.load %arg3[%c2_23, %c0_24, %c0_25] : memref<9x4x128xf32, #tpu.memory_space<vmem>>, vector<1x4x128xf32>
    %30 = vector.shape_cast %29 : vector<1x4x128xf32> to vector<4x128xf32>
    %cst_26 = arith.constant dense<0.000000e+00> : vector<256x128xf32>
    %31 = tpu.matmul %28, %30, %cst_26 {dimension_numbers = #tpu.dot_dimension_numbers<[1], [0], [0], [1], [0, 0, 1, 1], [], []>} : vector<256x4xf32>, vector<4x128xf32>, vector<256x128xf32> -> vector<256x128xf32>
    %c0_27 = arith.constant 0 : index
    %c0_28 = arith.constant 0 : index
    %32 = vector.load %arg6[%c0_27, %c0_28] : memref<256x128xf32, #tpu.memory_space<vmem>>, vector<256x128xf32>
    %33 = arith.addf %32, %31 : vector<256x128xf32>
    %c0_29 = arith.constant 0 : index
    %c0_30 = arith.constant 0 : index
    %34 = vector.load %arg6[%c0_29, %c0_30] : memref<256x128xf32, #tpu.memory_space<vmem>>, vector<256x128xf32>
    tpu.vector_store %arg6[%c0_29, %c0_30], %33 {strides = array<i32>} : memref<256x128xf32, #tpu.memory_space<vmem>>, vector<256x128xf32>,
    %c1_i32 = arith.constant 1 : i32
    %35 = arith.addi %3, %c1_i32 : i32
    %c0_31 = arith.constant 0 : index
    %36 = arith.index_cast %35 : i32 to index
    %c0_32 = arith.constant 0 : index
    %c0_33 = arith.constant 0 : index
    %37 = vector.load %arg2[%c0_31, %36, %c0_32, %c0_33] : memref<1x18x18x4xf32, #tpu.memory_space<vmem>>, vector<1x16x16x4xf32>
    %38 = vector.shape_cast %37 : vector<1x16x16x4xf32> to vector<16x16x4xf32>
    %39 = vector.shape_cast %38 : vector<16x16x4xf32> to vector<256x4xf32>
    %c3 = arith.constant 3 : index
    %c0_34 = arith.constant 0 : index
    %c0_35 = arith.constant 0 : index
    %40 = vector.load %arg3[%c3, %c0_34, %c0_35] : memref<9x4x128xf32, #tpu.memory_space<vmem>>, vector<1x4x128xf32>
    %41 = vector.shape_cast %40 : vector<1x4x128xf32> to vector<4x128xf32>
    %cst_36 = arith.constant dense<0.000000e+00> : vector<256x128xf32>
    %42 = tpu.matmul %39, %41, %cst_36 {dimension_numbers = #tpu.dot_dimension_numbers<[1], [0], [0], [1], [0, 0, 1, 1], [], []>} : vector<256x4xf32>, vector<4x128xf32>, vector<256x128xf32> -> vector<256x128xf32>
    %c0_37 = arith.constant 0 : index
    %c0_38 = arith.constant 0 : index
    %43 = vector.load %arg6[%c0_37, %c0_38] : memref<256x128xf32, #tpu.memory_space<vmem>>, vector<256x128xf32>
    %44 = arith.addf %43, %42 : vector<256x128xf32>
    %c0_39 = arith.constant 0 : index
    %c0_40 = arith.constant 0 : index
    %45 = vector.load %arg6[%c0_39, %c0_40] : memref<256x128xf32, #tpu.memory_space<vmem>>, vector<256x128xf32>
    tpu.vector_store %arg6[%c0_39, %c0_40], %44 {strides = array<i32>} : memref<256x128xf32, #tpu.memory_space<vmem>>, vector<256x128xf32>,
    %c1_i32_41 = arith.constant 1 : i32
    %46 = arith.addi %3, %c1_i32_41 : i32
    %c0_42 = arith.constant 0 : index
    %47 = arith.index_cast %46 : i32 to index
    %c1_43 = arith.constant 1 : index
    %c0_44 = arith.constant 0 : index
    %48 = vector.load %arg2[%c0_42, %47, %c1_43, %c0_44] : memref<1x18x18x4xf32, #tpu.memory_space<vmem>>, vector<1x16x16x4xf32>
    %49 = vector.shape_cast %48 : vector<1x16x16x4xf32> to vector<16x16x4xf32>
    %50 = vector.shape_cast %49 : vector<16x16x4xf32> to vector<256x4xf32>
    %c4 = arith.constant 4 : index
    %c0_45 = arith.constant 0 : index
    %c0_46 = arith.constant 0 : index
    %51 = vector.load %arg3[%c4, %c0_45, %c0_46] : memref<9x4x128xf32, #tpu.memory_space<vmem>>, vector<1x4x128xf32>
    %52 = vector.shape_cast %51 : vector<1x4x128xf32> to vector<4x128xf32>
    %cst_47 = arith.constant dense<0.000000e+00> : vector<256x128xf32>
    %53 = tpu.matmul %50, %52, %cst_47 {dimension_numbers = #tpu.dot_dimension_numbers<[1], [0], [0], [1], [0, 0, 1, 1], [], []>} : vector<256x4xf32>, vector<4x128xf32>, vector<256x128xf32> -> vector<256x128xf32>
    %c0_48 = arith.constant 0 : index
    %c0_49 = arith.constant 0 : index
    %54 = vector.load %arg6[%c0_48, %c0_49] : memref<256x128xf32, #tpu.memory_space<vmem>>, vector<256x128xf32>
    %55 = arith.addf %54, %53 : vector<256x128xf32>
    %c0_50 = arith.constant 0 : index
    %c0_51 = arith.constant 0 : index
    %56 = vector.load %arg6[%c0_50, %c0_51] : memref<256x128xf32, #tpu.memory_space<vmem>>, vector<256x128xf32>
    tpu.vector_store %arg6[%c0_50, %c0_51], %55 {strides = array<i32>} : memref<256x128xf32, #tpu.memory_space<vmem>>, vector<256x128xf32>,
    %c1_i32_52 = arith.constant 1 : i32
    %57 = arith.addi %3, %c1_i32_52 : i32
    %c0_53 = arith.constant 0 : index
    %58 = arith.index_cast %57 : i32 to index
    %c2_54 = arith.constant 2 : index
    %c0_55 = arith.constant 0 : index
    %59 = vector.load %arg2[%c0_53, %58, %c2_54, %c0_55] : memref<1x18x18x4xf32, #tpu.memory_space<vmem>>, vector<1x16x16x4xf32>
    %60 = vector.shape_cast %59 : vector<1x16x16x4xf32> to vector<16x16x4xf32>
    %61 = vector.shape_cast %60 : vector<16x16x4xf32> to vector<256x4xf32>
    %c5 = arith.constant 5 : index
    %c0_56 = arith.constant 0 : index
    %c0_57 = arith.constant 0 : index
    %62 = vector.load %arg3[%c5, %c0_56, %c0_57] : memref<9x4x128xf32, #tpu.memory_space<vmem>>, vector<1x4x128xf32>
    %63 = vector.shape_cast %62 : vector<1x4x128xf32> to vector<4x128xf32>
    %cst_58 = arith.constant dense<0.000000e+00> : vector<256x128xf32>
    %64 = tpu.matmul %61, %63, %cst_58 {dimension_numbers = #tpu.dot_dimension_numbers<[1], [0], [0], [1], [0, 0, 1, 1], [], []>} : vector<256x4xf32>, vector<4x128xf32>, vector<256x128xf32> -> vector<256x128xf32>
    %c0_59 = arith.constant 0 : index
    %c0_60 = arith.constant 0 : index
    %65 = vector.load %arg6[%c0_59, %c0_60] : memref<256x128xf32, #tpu.memory_space<vmem>>, vector<256x128xf32>
    %66 = arith.addf %65, %64 : vector<256x128xf32>
    %c0_61 = arith.constant 0 : index
    %c0_62 = arith.constant 0 : index
    %67 = vector.load %arg6[%c0_61, %c0_62] : memref<256x128xf32, #tpu.memory_space<vmem>>, vector<256x128xf32>
    tpu.vector_store %arg6[%c0_61, %c0_62], %66 {strides = array<i32>} : memref<256x128xf32, #tpu.memory_space<vmem>>, vector<256x128xf32>,
    %c2_i32 = arith.constant 2 : i32
    %68 = arith.addi %3, %c2_i32 : i32
    %c0_63 = arith.constant 0 : index
    %69 = arith.index_cast %68 : i32 to index
    %c0_64 = arith.constant 0 : index
    %c0_65 = arith.constant 0 : index
    %70 = vector.load %arg2[%c0_63, %69, %c0_64, %c0_65] : memref<1x18x18x4xf32, #tpu.memory_space<vmem>>, vector<1x16x16x4xf32>
    %71 = vector.shape_cast %70 : vector<1x16x16x4xf32> to vector<16x16x4xf32>
    %72 = vector.shape_cast %71 : vector<16x16x4xf32> to vector<256x4xf32>
    %c6 = arith.constant 6 : index
    %c0_66 = arith.constant 0 : index
    %c0_67 = arith.constant 0 : index
    %73 = vector.load %arg3[%c6, %c0_66, %c0_67] : memref<9x4x128xf32, #tpu.memory_space<vmem>>, vector<1x4x128xf32>
    %74 = vector.shape_cast %73 : vector<1x4x128xf32> to vector<4x128xf32>
    %cst_68 = arith.constant dense<0.000000e+00> : vector<256x128xf32>
    %75 = tpu.matmul %72, %74, %cst_68 {dimension_numbers = #tpu.dot_dimension_numbers<[1], [0], [0], [1], [0, 0, 1, 1], [], []>} : vector<256x4xf32>, vector<4x128xf32>, vector<256x128xf32> -> vector<256x128xf32>
    %c0_69 = arith.constant 0 : index
    %c0_70 = arith.constant 0 : index
    %76 = vector.load %arg6[%c0_69, %c0_70] : memref<256x128xf32, #tpu.memory_space<vmem>>, vector<256x128xf32>
    %77 = arith.addf %76, %75 : vector<256x128xf32>
    %c0_71 = arith.constant 0 : index
    %c0_72 = arith.constant 0 : index
    %78 = vector.load %arg6[%c0_71, %c0_72] : memref<256x128xf32, #tpu.memory_space<vmem>>, vector<256x128xf32>
    tpu.vector_store %arg6[%c0_71, %c0_72], %77 {strides = array<i32>} : memref<256x128xf32, #tpu.memory_space<vmem>>, vector<256x128xf32>,
    %c2_i32_73 = arith.constant 2 : i32
    %79 = arith.addi %3, %c2_i32_73 : i32
    %c0_74 = arith.constant 0 : index
    %80 = arith.index_cast %79 : i32 to index
    %c1_75 = arith.constant 1 : index
    %c0_76 = arith.constant 0 : index
    %81 = vector.load %arg2[%c0_74, %80, %c1_75, %c0_76] : memref<1x18x18x4xf32, #tpu.memory_space<vmem>>, vector<1x16x16x4xf32>
    %82 = vector.shape_cast %81 : vector<1x16x16x4xf32> to vector<16x16x4xf32>
    %83 = vector.shape_cast %82 : vector<16x16x4xf32> to vector<256x4xf32>
    %c7 = arith.constant 7 : index
    %c0_77 = arith.constant 0 : index
    %c0_78 = arith.constant 0 : index
    %84 = vector.load %arg3[%c7, %c0_77, %c0_78] : memref<9x4x128xf32, #tpu.memory_space<vmem>>, vector<1x4x128xf32>
    %85 = vector.shape_cast %84 : vector<1x4x128xf32> to vector<4x128xf32>
    %cst_79 = arith.constant dense<0.000000e+00> : vector<256x128xf32>
    %86 = tpu.matmul %83, %85, %cst_79 {dimension_numbers = #tpu.dot_dimension_numbers<[1], [0], [0], [1], [0, 0, 1, 1], [], []>} : vector<256x4xf32>, vector<4x128xf32>, vector<256x128xf32> -> vector<256x128xf32>
    %c0_80 = arith.constant 0 : index
    %c0_81 = arith.constant 0 : index
    %87 = vector.load %arg6[%c0_80, %c0_81] : memref<256x128xf32, #tpu.memory_space<vmem>>, vector<256x128xf32>
    %88 = arith.addf %87, %86 : vector<256x128xf32>
    %c0_82 = arith.constant 0 : index
    %c0_83 = arith.constant 0 : index
    %89 = vector.load %arg6[%c0_82, %c0_83] : memref<256x128xf32, #tpu.memory_space<vmem>>, vector<256x128xf32>
    tpu.vector_store %arg6[%c0_82, %c0_83], %88 {strides = array<i32>} : memref<256x128xf32, #tpu.memory_space<vmem>>, vector<256x128xf32>,
    %c2_i32_84 = arith.constant 2 : i32
    %90 = arith.addi %3, %c2_i32_84 : i32
    %c0_85 = arith.constant 0 : index
    %91 = arith.index_cast %90 : i32 to index
    %c2_86 = arith.constant 2 : index
    %c0_87 = arith.constant 0 : index
    %92 = vector.load %arg2[%c0_85, %91, %c2_86, %c0_87] : memref<1x18x18x4xf32, #tpu.memory_space<vmem>>, vector<1x16x16x4xf32>
    %93 = vector.shape_cast %92 : vector<1x16x16x4xf32> to vector<16x16x4xf32>
    %94 = vector.shape_cast %93 : vector<16x16x4xf32> to vector<256x4xf32>
    %c8 = arith.constant 8 : index
    %c0_88 = arith.constant 0 : index
    %c0_89 = arith.constant 0 : index
    %95 = vector.load %arg3[%c8, %c0_88, %c0_89] : memref<9x4x128xf32, #tpu.memory_space<vmem>>, vector<1x4x128xf32>
    %96 = vector.shape_cast %95 : vector<1x4x128xf32> to vector<4x128xf32>
    %cst_90 = arith.constant dense<0.000000e+00> : vector<256x128xf32>
    %97 = tpu.matmul %94, %96, %cst_90 {dimension_numbers = #tpu.dot_dimension_numbers<[1], [0], [0], [1], [0, 0, 1, 1], [], []>} : vector<256x4xf32>, vector<4x128xf32>, vector<256x128xf32> -> vector<256x128xf32>
    %c0_91 = arith.constant 0 : index
    %c0_92 = arith.constant 0 : index
    %98 = vector.load %arg6[%c0_91, %c0_92] : memref<256x128xf32, #tpu.memory_space<vmem>>, vector<256x128xf32>
    %99 = arith.addf %98, %97 : vector<256x128xf32>
    %c0_93 = arith.constant 0 : index
    %c0_94 = arith.constant 0 : index
    %100 = vector.load %arg6[%c0_93, %c0_94] : memref<256x128xf32, #tpu.memory_space<vmem>>, vector<256x128xf32>
    tpu.vector_store %arg6[%c0_93, %c0_94], %99 {strides = array<i32>} : memref<256x128xf32, #tpu.memory_space<vmem>>, vector<256x128xf32>,
    %c0_95 = arith.constant 0 : index
    %c0_96 = arith.constant 0 : index
    %101 = vector.load %arg6[%c0_95, %c0_96] : memref<256x128xf32, #tpu.memory_space<vmem>>, vector<256x128xf32>
    %c0_97 = arith.constant 0 : index
    %c0_98 = arith.constant 0 : index
    %102 = vector.load %arg7[%c0_97, %c0_98] : memref<1x128xf32, #tpu.memory_space<vmem>>, vector<1x128xf32>
    %cst_99 = arith.constant dense<0.000000e+00> : vector<128xf32>
    %103 = vector.multi_reduction <add>, %101, %cst_99 [0] : vector<256x128xf32> to vector<128xf32>
    %104 = vector.shape_cast %103 : vector<128xf32> to vector<1x128xf32>
    %105 = arith.addf %102, %104 : vector<1x128xf32>
    %c0_100 = arith.constant 0 : index
    %c0_101 = arith.constant 0 : index
    %106 = vector.load %arg7[%c0_100, %c0_101] : memref<1x128xf32, #tpu.memory_space<vmem>>, vector<1x128xf32>
    tpu.vector_store %arg7[%c0_100, %c0_101], %105 {strides = array<i32>} : memref<1x128xf32, #tpu.memory_space<vmem>>, vector<1x128xf32>,
    %c0_102 = arith.constant 0 : index
    %c0_103 = arith.constant 0 : index
    %107 = vector.load %arg8[%c0_102, %c0_103] : memref<1x128xf32, #tpu.memory_space<vmem>>, vector<1x128xf32>
    %108 = arith.mulf %101, %101 : vector<256x128xf32>
    %cst_104 = arith.constant dense<0.000000e+00> : vector<128xf32>
    %109 = vector.multi_reduction <add>, %108, %cst_104 [0] : vector<256x128xf32> to vector<128xf32>
    %110 = vector.shape_cast %109 : vector<128xf32> to vector<1x128xf32>
    %111 = arith.addf %107, %110 : vector<1x128xf32>
    %c0_105 = arith.constant 0 : index
    %c0_106 = arith.constant 0 : index
    %112 = vector.load %arg8[%c0_105, %c0_106] : memref<1x128xf32, #tpu.memory_space<vmem>>, vector<1x128xf32>
    tpu.vector_store %arg8[%c0_105, %c0_106], %111 {strides = array<i32>} : memref<1x128xf32, #tpu.memory_space<vmem>>, vector<1x128xf32>,
    %c0_i32_107 = arith.constant 0 : i32
    %113 = arith.cmpi eq, %arg1, %c0_i32_107 : i32
    %114 = arith.extui %113 : i1 to i32
    %c0_i32_108 = arith.constant 0 : i32
    %115 = arith.cmpi ne, %114, %c0_i32_108 : i32
    scf.if %115 {
      %c0_109 = arith.constant 0 : index
      %c0_110 = arith.constant 0 : index
      %116 = vector.load %arg7[%c0_109, %c0_110] : memref<1x128xf32, #tpu.memory_space<vmem>>, vector<1x128xf32>
      %c0_111 = arith.constant 0 : index
      %c0_112 = arith.constant 0 : index
      %c0_113 = arith.constant 0 : index
      %117 = vector.load %arg4[%c0_111, %c0_112, %c0_113] : memref<1x1x128xf32, #tpu.memory_space<vmem>>, vector<1x1x128xf32>
      %118 = vector.shape_cast %117 : vector<1x1x128xf32> to vector<1x128xf32>
      %119 = vector.shape_cast %116 : vector<1x128xf32> to vector<1x1x128xf32>
      tpu.vector_store %arg4[%c0_111, %c0_112, %c0_113], %119 {strides = array<i32>} : memref<1x1x128xf32, #tpu.memory_space<vmem>>, vector<1x1x128xf32>,
      %c0_114 = arith.constant 0 : index
      %c0_115 = arith.constant 0 : index
      %120 = vector.load %arg8[%c0_114, %c0_115] : memref<1x128xf32, #tpu.memory_space<vmem>>, vector<1x128xf32>
      %c0_116 = arith.constant 0 : index
      %c0_117 = arith.constant 0 : index
      %c0_118 = arith.constant 0 : index
      %121 = vector.load %arg5[%c0_116, %c0_117, %c0_118] : memref<1x1x128xf32, #tpu.memory_space<vmem>>, vector<1x1x128xf32>
      %122 = vector.shape_cast %121 : vector<1x1x128xf32> to vector<1x128xf32>
      %123 = vector.shape_cast %120 : vector<1x128xf32> to vector<1x1x128xf32>
      tpu.vector_store %arg5[%c0_116, %c0_117, %c0_118], %123 {strides = array<i32>} : memref<1x1x128xf32, #tpu.memory_space<vmem>>, vector<1x1x128xf32>,
    } else {
    }
    return
  }
  func.func @transform_0(%arg0: i32, %arg1: i32) -> (i32, i32, i32, i32) {
    %c0_i32 = arith.constant 0 : i32
    %c0_i32_0 = arith.constant 0 : i32
    %c0_i32_1 = arith.constant 0 : i32
    %c0_i32_2 = arith.constant 0 : i32
    return %arg0, %c0_i32, %c0_i32_0, %c0_i32_1 : i32, i32, i32, i32
  }
  func.func @transform_1(%arg0: i32, %arg1: i32) -> (i32, i32, i32) {
    %c0_i32 = arith.constant 0 : i32
    %c0_i32_0 = arith.constant 0 : i32
    %c0_i32_1 = arith.constant 0 : i32
    %c0_i32_2 = arith.constant 0 : i32
    return %c0_i32, %c0_i32_0, %c0_i32_1 : i32, i32, i32
  }
  func.func @transform_2(%arg0: i32, %arg1: i32) -> (i32, i32, i32) {
    %c0_i32 = arith.constant 0 : i32
    %c0_i32_0 = arith.constant 0 : i32
    %c0_i32_1 = arith.constant 0 : i32
    return %arg0, %c0_i32, %c0_i32_0 : i32, i32, i32
  }
  func.func @transform_3(%arg0: i32, %arg1: i32) -> (i32, i32, i32) {
    %c0_i32 = arith.constant 0 : i32
    %c0_i32_0 = arith.constant 0 : i32
    %c0_i32_1 = arith.constant 0 : i32
    return %arg0, %c0_i32, %c0_i32_0 : i32, i32, i32
  }
}

module attributes {stable_mosaic.version = 11 : i64} {
  func.func @_fused_bn_relu_kernel(%arg0: i32, %arg1: i32, %arg2: memref<1x18x18x4xf32, #tpu.memory_space<vmem>>, %arg3: memref<9x4x128xf32, #tpu.memory_space<vmem>>, %arg4: memref<1x128xf32, #tpu.memory_space<vmem>>, %arg5: memref<1x128xf32, #tpu.memory_space<vmem>>, %arg6: memref<1x256x128xf32, #tpu.memory_space<vmem>>) attributes {dimension_semantics = [#tpu.dimension_semantics<parallel>, #tpu.dimension_semantics<parallel>], iteration_bounds = array<i64: 2, 1>, scalar_prefetch = 0 : i64, scratch_operands = 0 : i64, tpu.core_type = #tpu.core_type<tc>, window_params = [{transform_indices = @transform_0, window_bounds = array<i64: 1, 18, 18, 4>}, {pipeline_mode = #tpu.pipeline_mode<synchronous>, transform_indices = @transform_1, window_bounds = array<i64: 9, 4, 128>}, {pipeline_mode = #tpu.pipeline_mode<synchronous>, transform_indices = @transform_2, window_bounds = array<i64: 1, 128>}, {pipeline_mode = #tpu.pipeline_mode<synchronous>, transform_indices = @transform_3, window_bounds = array<i64: 1, 128>}, {transform_indices = @transform_4, window_bounds = array<i64: 1, 256, 128>}]} {
    %c16_i32 = arith.constant 16 : i32
    %0 = arith.muli %arg1, %c16_i32 : i32
    %c0_i32 = arith.constant 0 : i32
    %1 = arith.addi %0, %c0_i32 : i32
    %c0 = arith.constant 0 : index
    %2 = arith.index_cast %1 : i32 to index
    %c0_0 = arith.constant 0 : index
    %c0_1 = arith.constant 0 : index
    %3 = vector.load %arg2[%c0, %2, %c0_0, %c0_1] : memref<1x18x18x4xf32, #tpu.memory_space<vmem>>, vector<1x16x16x4xf32>
    %4 = vector.shape_cast %3 : vector<1x16x16x4xf32> to vector<16x16x4xf32>
    %5 = vector.shape_cast %4 : vector<16x16x4xf32> to vector<256x4xf32>
    %c0_2 = arith.constant 0 : index
    %c0_3 = arith.constant 0 : index
    %c0_4 = arith.constant 0 : index
    %6 = vector.load %arg3[%c0_2, %c0_3, %c0_4] : memref<9x4x128xf32, #tpu.memory_space<vmem>>, vector<1x4x128xf32>
    %7 = vector.shape_cast %6 : vector<1x4x128xf32> to vector<4x128xf32>
    %cst = arith.constant dense<0.000000e+00> : vector<256x128xf32>
    %8 = tpu.matmul %5, %7, %cst {dimension_numbers = #tpu.dot_dimension_numbers<[1], [0], [0], [1], [0, 0, 1, 1], [], []>} : vector<256x4xf32>, vector<4x128xf32>, vector<256x128xf32> -> vector<256x128xf32>
    %c0_5 = arith.constant 0 : index
    %c0_6 = arith.constant 0 : index
    %c0_7 = arith.constant 0 : index
    %9 = vector.load %arg6[%c0_5, %c0_6, %c0_7] : memref<1x256x128xf32, #tpu.memory_space<vmem>>, vector<1x256x128xf32>
    %10 = vector.shape_cast %9 : vector<1x256x128xf32> to vector<256x128xf32>
    %11 = vector.shape_cast %8 : vector<256x128xf32> to vector<1x256x128xf32>
    tpu.vector_store %arg6[%c0_5, %c0_6, %c0_7], %11 {strides = array<i32>} : memref<1x256x128xf32, #tpu.memory_space<vmem>>, vector<1x256x128xf32>,
    %c0_i32_8 = arith.constant 0 : i32
    %12 = arith.addi %0, %c0_i32_8 : i32
    %c0_9 = arith.constant 0 : index
    %13 = arith.index_cast %12 : i32 to index
    %c1 = arith.constant 1 : index
    %c0_10 = arith.constant 0 : index
    %14 = vector.load %arg2[%c0_9, %13, %c1, %c0_10] : memref<1x18x18x4xf32, #tpu.memory_space<vmem>>, vector<1x16x16x4xf32>
    %15 = vector.shape_cast %14 : vector<1x16x16x4xf32> to vector<16x16x4xf32>
    %16 = vector.shape_cast %15 : vector<16x16x4xf32> to vector<256x4xf32>
    %c1_11 = arith.constant 1 : index
    %c0_12 = arith.constant 0 : index
    %c0_13 = arith.constant 0 : index
    %17 = vector.load %arg3[%c1_11, %c0_12, %c0_13] : memref<9x4x128xf32, #tpu.memory_space<vmem>>, vector<1x4x128xf32>
    %18 = vector.shape_cast %17 : vector<1x4x128xf32> to vector<4x128xf32>
    %cst_14 = arith.constant dense<0.000000e+00> : vector<256x128xf32>
    %19 = tpu.matmul %16, %18, %cst_14 {dimension_numbers = #tpu.dot_dimension_numbers<[1], [0], [0], [1], [0, 0, 1, 1], [], []>} : vector<256x4xf32>, vector<4x128xf32>, vector<256x128xf32> -> vector<256x128xf32>
    %c0_15 = arith.constant 0 : index
    %c0_16 = arith.constant 0 : index
    %c0_17 = arith.constant 0 : index
    %20 = vector.load %arg6[%c0_15, %c0_16, %c0_17] : memref<1x256x128xf32, #tpu.memory_space<vmem>>, vector<1x256x128xf32>
    %21 = vector.shape_cast %20 : vector<1x256x128xf32> to vector<256x128xf32>
    %22 = arith.addf %21, %19 : vector<256x128xf32>
    %c0_18 = arith.constant 0 : index
    %c0_19 = arith.constant 0 : index
    %c0_20 = arith.constant 0 : index
    %23 = vector.load %arg6[%c0_18, %c0_19, %c0_20] : memref<1x256x128xf32, #tpu.memory_space<vmem>>, vector<1x256x128xf32>
    %24 = vector.shape_cast %23 : vector<1x256x128xf32> to vector<256x128xf32>
    %25 = vector.shape_cast %22 : vector<256x128xf32> to vector<1x256x128xf32>
    tpu.vector_store %arg6[%c0_18, %c0_19, %c0_20], %25 {strides = array<i32>} : memref<1x256x128xf32, #tpu.memory_space<vmem>>, vector<1x256x128xf32>,
    %c0_i32_21 = arith.constant 0 : i32
    %26 = arith.addi %0, %c0_i32_21 : i32
    %c0_22 = arith.constant 0 : index
    %27 = arith.index_cast %26 : i32 to index
    %c2 = arith.constant 2 : index
    %c0_23 = arith.constant 0 : index
    %28 = vector.load %arg2[%c0_22, %27, %c2, %c0_23] : memref<1x18x18x4xf32, #tpu.memory_space<vmem>>, vector<1x16x16x4xf32>
    %29 = vector.shape_cast %28 : vector<1x16x16x4xf32> to vector<16x16x4xf32>
    %30 = vector.shape_cast %29 : vector<16x16x4xf32> to vector<256x4xf32>
    %c2_24 = arith.constant 2 : index
    %c0_25 = arith.constant 0 : index
    %c0_26 = arith.constant 0 : index
    %31 = vector.load %arg3[%c2_24, %c0_25, %c0_26] : memref<9x4x128xf32, #tpu.memory_space<vmem>>, vector<1x4x128xf32>
    %32 = vector.shape_cast %31 : vector<1x4x128xf32> to vector<4x128xf32>
    %cst_27 = arith.constant dense<0.000000e+00> : vector<256x128xf32>
    %33 = tpu.matmul %30, %32, %cst_27 {dimension_numbers = #tpu.dot_dimension_numbers<[1], [0], [0], [1], [0, 0, 1, 1], [], []>} : vector<256x4xf32>, vector<4x128xf32>, vector<256x128xf32> -> vector<256x128xf32>
    %c0_28 = arith.constant 0 : index
    %c0_29 = arith.constant 0 : index
    %c0_30 = arith.constant 0 : index
    %34 = vector.load %arg6[%c0_28, %c0_29, %c0_30] : memref<1x256x128xf32, #tpu.memory_space<vmem>>, vector<1x256x128xf32>
    %35 = vector.shape_cast %34 : vector<1x256x128xf32> to vector<256x128xf32>
    %36 = arith.addf %35, %33 : vector<256x128xf32>
    %c0_31 = arith.constant 0 : index
    %c0_32 = arith.constant 0 : index
    %c0_33 = arith.constant 0 : index
    %37 = vector.load %arg6[%c0_31, %c0_32, %c0_33] : memref<1x256x128xf32, #tpu.memory_space<vmem>>, vector<1x256x128xf32>
    %38 = vector.shape_cast %37 : vector<1x256x128xf32> to vector<256x128xf32>
    %39 = vector.shape_cast %36 : vector<256x128xf32> to vector<1x256x128xf32>
    tpu.vector_store %arg6[%c0_31, %c0_32, %c0_33], %39 {strides = array<i32>} : memref<1x256x128xf32, #tpu.memory_space<vmem>>, vector<1x256x128xf32>,
    %c1_i32 = arith.constant 1 : i32
    %40 = arith.addi %0, %c1_i32 : i32
    %c0_34 = arith.constant 0 : index
    %41 = arith.index_cast %40 : i32 to index
    %c0_35 = arith.constant 0 : index
    %c0_36 = arith.constant 0 : index
    %42 = vector.load %arg2[%c0_34, %41, %c0_35, %c0_36] : memref<1x18x18x4xf32, #tpu.memory_space<vmem>>, vector<1x16x16x4xf32>
    %43 = vector.shape_cast %42 : vector<1x16x16x4xf32> to vector<16x16x4xf32>
    %44 = vector.shape_cast %43 : vector<16x16x4xf32> to vector<256x4xf32>
    %c3 = arith.constant 3 : index
    %c0_37 = arith.constant 0 : index
    %c0_38 = arith.constant 0 : index
    %45 = vector.load %arg3[%c3, %c0_37, %c0_38] : memref<9x4x128xf32, #tpu.memory_space<vmem>>, vector<1x4x128xf32>
    %46 = vector.shape_cast %45 : vector<1x4x128xf32> to vector<4x128xf32>
    %cst_39 = arith.constant dense<0.000000e+00> : vector<256x128xf32>
    %47 = tpu.matmul %44, %46, %cst_39 {dimension_numbers = #tpu.dot_dimension_numbers<[1], [0], [0], [1], [0, 0, 1, 1], [], []>} : vector<256x4xf32>, vector<4x128xf32>, vector<256x128xf32> -> vector<256x128xf32>
    %c0_40 = arith.constant 0 : index
    %c0_41 = arith.constant 0 : index
    %c0_42 = arith.constant 0 : index
    %48 = vector.load %arg6[%c0_40, %c0_41, %c0_42] : memref<1x256x128xf32, #tpu.memory_space<vmem>>, vector<1x256x128xf32>
    %49 = vector.shape_cast %48 : vector<1x256x128xf32> to vector<256x128xf32>
    %50 = arith.addf %49, %47 : vector<256x128xf32>
    %c0_43 = arith.constant 0 : index
    %c0_44 = arith.constant 0 : index
    %c0_45 = arith.constant 0 : index
    %51 = vector.load %arg6[%c0_43, %c0_44, %c0_45] : memref<1x256x128xf32, #tpu.memory_space<vmem>>, vector<1x256x128xf32>
    %52 = vector.shape_cast %51 : vector<1x256x128xf32> to vector<256x128xf32>
    %53 = vector.shape_cast %50 : vector<256x128xf32> to vector<1x256x128xf32>
    tpu.vector_store %arg6[%c0_43, %c0_44, %c0_45], %53 {strides = array<i32>} : memref<1x256x128xf32, #tpu.memory_space<vmem>>, vector<1x256x128xf32>,
    %c1_i32_46 = arith.constant 1 : i32
    %54 = arith.addi %0, %c1_i32_46 : i32
    %c0_47 = arith.constant 0 : index
    %55 = arith.index_cast %54 : i32 to index
    %c1_48 = arith.constant 1 : index
    %c0_49 = arith.constant 0 : index
    %56 = vector.load %arg2[%c0_47, %55, %c1_48, %c0_49] : memref<1x18x18x4xf32, #tpu.memory_space<vmem>>, vector<1x16x16x4xf32>
    %57 = vector.shape_cast %56 : vector<1x16x16x4xf32> to vector<16x16x4xf32>
    %58 = vector.shape_cast %57 : vector<16x16x4xf32> to vector<256x4xf32>
    %c4 = arith.constant 4 : index
    %c0_50 = arith.constant 0 : index
    %c0_51 = arith.constant 0 : index
    %59 = vector.load %arg3[%c4, %c0_50, %c0_51] : memref<9x4x128xf32, #tpu.memory_space<vmem>>, vector<1x4x128xf32>
    %60 = vector.shape_cast %59 : vector<1x4x128xf32> to vector<4x128xf32>
    %cst_52 = arith.constant dense<0.000000e+00> : vector<256x128xf32>
    %61 = tpu.matmul %58, %60, %cst_52 {dimension_numbers = #tpu.dot_dimension_numbers<[1], [0], [0], [1], [0, 0, 1, 1], [], []>} : vector<256x4xf32>, vector<4x128xf32>, vector<256x128xf32> -> vector<256x128xf32>
    %c0_53 = arith.constant 0 : index
    %c0_54 = arith.constant 0 : index
    %c0_55 = arith.constant 0 : index
    %62 = vector.load %arg6[%c0_53, %c0_54, %c0_55] : memref<1x256x128xf32, #tpu.memory_space<vmem>>, vector<1x256x128xf32>
    %63 = vector.shape_cast %62 : vector<1x256x128xf32> to vector<256x128xf32>
    %64 = arith.addf %63, %61 : vector<256x128xf32>
    %c0_56 = arith.constant 0 : index
    %c0_57 = arith.constant 0 : index
    %c0_58 = arith.constant 0 : index
    %65 = vector.load %arg6[%c0_56, %c0_57, %c0_58] : memref<1x256x128xf32, #tpu.memory_space<vmem>>, vector<1x256x128xf32>
    %66 = vector.shape_cast %65 : vector<1x256x128xf32> to vector<256x128xf32>
    %67 = vector.shape_cast %64 : vector<256x128xf32> to vector<1x256x128xf32>
    tpu.vector_store %arg6[%c0_56, %c0_57, %c0_58], %67 {strides = array<i32>} : memref<1x256x128xf32, #tpu.memory_space<vmem>>, vector<1x256x128xf32>,
    %c1_i32_59 = arith.constant 1 : i32
    %68 = arith.addi %0, %c1_i32_59 : i32
    %c0_60 = arith.constant 0 : index
    %69 = arith.index_cast %68 : i32 to index
    %c2_61 = arith.constant 2 : index
    %c0_62 = arith.constant 0 : index
    %70 = vector.load %arg2[%c0_60, %69, %c2_61, %c0_62] : memref<1x18x18x4xf32, #tpu.memory_space<vmem>>, vector<1x16x16x4xf32>
    %71 = vector.shape_cast %70 : vector<1x16x16x4xf32> to vector<16x16x4xf32>
    %72 = vector.shape_cast %71 : vector<16x16x4xf32> to vector<256x4xf32>
    %c5 = arith.constant 5 : index
    %c0_63 = arith.constant 0 : index
    %c0_64 = arith.constant 0 : index
    %73 = vector.load %arg3[%c5, %c0_63, %c0_64] : memref<9x4x128xf32, #tpu.memory_space<vmem>>, vector<1x4x128xf32>
    %74 = vector.shape_cast %73 : vector<1x4x128xf32> to vector<4x128xf32>
    %cst_65 = arith.constant dense<0.000000e+00> : vector<256x128xf32>
    %75 = tpu.matmul %72, %74, %cst_65 {dimension_numbers = #tpu.dot_dimension_numbers<[1], [0], [0], [1], [0, 0, 1, 1], [], []>} : vector<256x4xf32>, vector<4x128xf32>, vector<256x128xf32> -> vector<256x128xf32>
    %c0_66 = arith.constant 0 : index
    %c0_67 = arith.constant 0 : index
    %c0_68 = arith.constant 0 : index
    %76 = vector.load %arg6[%c0_66, %c0_67, %c0_68] : memref<1x256x128xf32, #tpu.memory_space<vmem>>, vector<1x256x128xf32>
    %77 = vector.shape_cast %76 : vector<1x256x128xf32> to vector<256x128xf32>
    %78 = arith.addf %77, %75 : vector<256x128xf32>
    %c0_69 = arith.constant 0 : index
    %c0_70 = arith.constant 0 : index
    %c0_71 = arith.constant 0 : index
    %79 = vector.load %arg6[%c0_69, %c0_70, %c0_71] : memref<1x256x128xf32, #tpu.memory_space<vmem>>, vector<1x256x128xf32>
    %80 = vector.shape_cast %79 : vector<1x256x128xf32> to vector<256x128xf32>
    %81 = vector.shape_cast %78 : vector<256x128xf32> to vector<1x256x128xf32>
    tpu.vector_store %arg6[%c0_69, %c0_70, %c0_71], %81 {strides = array<i32>} : memref<1x256x128xf32, #tpu.memory_space<vmem>>, vector<1x256x128xf32>,
    %c2_i32 = arith.constant 2 : i32
    %82 = arith.addi %0, %c2_i32 : i32
    %c0_72 = arith.constant 0 : index
    %83 = arith.index_cast %82 : i32 to index
    %c0_73 = arith.constant 0 : index
    %c0_74 = arith.constant 0 : index
    %84 = vector.load %arg2[%c0_72, %83, %c0_73, %c0_74] : memref<1x18x18x4xf32, #tpu.memory_space<vmem>>, vector<1x16x16x4xf32>
    %85 = vector.shape_cast %84 : vector<1x16x16x4xf32> to vector<16x16x4xf32>
    %86 = vector.shape_cast %85 : vector<16x16x4xf32> to vector<256x4xf32>
    %c6 = arith.constant 6 : index
    %c0_75 = arith.constant 0 : index
    %c0_76 = arith.constant 0 : index
    %87 = vector.load %arg3[%c6, %c0_75, %c0_76] : memref<9x4x128xf32, #tpu.memory_space<vmem>>, vector<1x4x128xf32>
    %88 = vector.shape_cast %87 : vector<1x4x128xf32> to vector<4x128xf32>
    %cst_77 = arith.constant dense<0.000000e+00> : vector<256x128xf32>
    %89 = tpu.matmul %86, %88, %cst_77 {dimension_numbers = #tpu.dot_dimension_numbers<[1], [0], [0], [1], [0, 0, 1, 1], [], []>} : vector<256x4xf32>, vector<4x128xf32>, vector<256x128xf32> -> vector<256x128xf32>
    %c0_78 = arith.constant 0 : index
    %c0_79 = arith.constant 0 : index
    %c0_80 = arith.constant 0 : index
    %90 = vector.load %arg6[%c0_78, %c0_79, %c0_80] : memref<1x256x128xf32, #tpu.memory_space<vmem>>, vector<1x256x128xf32>
    %91 = vector.shape_cast %90 : vector<1x256x128xf32> to vector<256x128xf32>
    %92 = arith.addf %91, %89 : vector<256x128xf32>
    %c0_81 = arith.constant 0 : index
    %c0_82 = arith.constant 0 : index
    %c0_83 = arith.constant 0 : index
    %93 = vector.load %arg6[%c0_81, %c0_82, %c0_83] : memref<1x256x128xf32, #tpu.memory_space<vmem>>, vector<1x256x128xf32>
    %94 = vector.shape_cast %93 : vector<1x256x128xf32> to vector<256x128xf32>
    %95 = vector.shape_cast %92 : vector<256x128xf32> to vector<1x256x128xf32>
    tpu.vector_store %arg6[%c0_81, %c0_82, %c0_83], %95 {strides = array<i32>} : memref<1x256x128xf32, #tpu.memory_space<vmem>>, vector<1x256x128xf32>,
    %c2_i32_84 = arith.constant 2 : i32
    %96 = arith.addi %0, %c2_i32_84 : i32
    %c0_85 = arith.constant 0 : index
    %97 = arith.index_cast %96 : i32 to index
    %c1_86 = arith.constant 1 : index
    %c0_87 = arith.constant 0 : index
    %98 = vector.load %arg2[%c0_85, %97, %c1_86, %c0_87] : memref<1x18x18x4xf32, #tpu.memory_space<vmem>>, vector<1x16x16x4xf32>
    %99 = vector.shape_cast %98 : vector<1x16x16x4xf32> to vector<16x16x4xf32>
    %100 = vector.shape_cast %99 : vector<16x16x4xf32> to vector<256x4xf32>
    %c7 = arith.constant 7 : index
    %c0_88 = arith.constant 0 : index
    %c0_89 = arith.constant 0 : index
    %101 = vector.load %arg3[%c7, %c0_88, %c0_89] : memref<9x4x128xf32, #tpu.memory_space<vmem>>, vector<1x4x128xf32>
    %102 = vector.shape_cast %101 : vector<1x4x128xf32> to vector<4x128xf32>
    %cst_90 = arith.constant dense<0.000000e+00> : vector<256x128xf32>
    %103 = tpu.matmul %100, %102, %cst_90 {dimension_numbers = #tpu.dot_dimension_numbers<[1], [0], [0], [1], [0, 0, 1, 1], [], []>} : vector<256x4xf32>, vector<4x128xf32>, vector<256x128xf32> -> vector<256x128xf32>
    %c0_91 = arith.constant 0 : index
    %c0_92 = arith.constant 0 : index
    %c0_93 = arith.constant 0 : index
    %104 = vector.load %arg6[%c0_91, %c0_92, %c0_93] : memref<1x256x128xf32, #tpu.memory_space<vmem>>, vector<1x256x128xf32>
    %105 = vector.shape_cast %104 : vector<1x256x128xf32> to vector<256x128xf32>
    %106 = arith.addf %105, %103 : vector<256x128xf32>
    %c0_94 = arith.constant 0 : index
    %c0_95 = arith.constant 0 : index
    %c0_96 = arith.constant 0 : index
    %107 = vector.load %arg6[%c0_94, %c0_95, %c0_96] : memref<1x256x128xf32, #tpu.memory_space<vmem>>, vector<1x256x128xf32>
    %108 = vector.shape_cast %107 : vector<1x256x128xf32> to vector<256x128xf32>
    %109 = vector.shape_cast %106 : vector<256x128xf32> to vector<1x256x128xf32>
    tpu.vector_store %arg6[%c0_94, %c0_95, %c0_96], %109 {strides = array<i32>} : memref<1x256x128xf32, #tpu.memory_space<vmem>>, vector<1x256x128xf32>,
    %c2_i32_97 = arith.constant 2 : i32
    %110 = arith.addi %0, %c2_i32_97 : i32
    %c0_98 = arith.constant 0 : index
    %111 = arith.index_cast %110 : i32 to index
    %c2_99 = arith.constant 2 : index
    %c0_100 = arith.constant 0 : index
    %112 = vector.load %arg2[%c0_98, %111, %c2_99, %c0_100] : memref<1x18x18x4xf32, #tpu.memory_space<vmem>>, vector<1x16x16x4xf32>
    %113 = vector.shape_cast %112 : vector<1x16x16x4xf32> to vector<16x16x4xf32>
    %114 = vector.shape_cast %113 : vector<16x16x4xf32> to vector<256x4xf32>
    %c8 = arith.constant 8 : index
    %c0_101 = arith.constant 0 : index
    %c0_102 = arith.constant 0 : index
    %115 = vector.load %arg3[%c8, %c0_101, %c0_102] : memref<9x4x128xf32, #tpu.memory_space<vmem>>, vector<1x4x128xf32>
    %116 = vector.shape_cast %115 : vector<1x4x128xf32> to vector<4x128xf32>
    %cst_103 = arith.constant dense<0.000000e+00> : vector<256x128xf32>
    %117 = tpu.matmul %114, %116, %cst_103 {dimension_numbers = #tpu.dot_dimension_numbers<[1], [0], [0], [1], [0, 0, 1, 1], [], []>} : vector<256x4xf32>, vector<4x128xf32>, vector<256x128xf32> -> vector<256x128xf32>
    %c0_104 = arith.constant 0 : index
    %c0_105 = arith.constant 0 : index
    %c0_106 = arith.constant 0 : index
    %118 = vector.load %arg6[%c0_104, %c0_105, %c0_106] : memref<1x256x128xf32, #tpu.memory_space<vmem>>, vector<1x256x128xf32>
    %119 = vector.shape_cast %118 : vector<1x256x128xf32> to vector<256x128xf32>
    %120 = arith.addf %119, %117 : vector<256x128xf32>
    %c0_107 = arith.constant 0 : index
    %c0_108 = arith.constant 0 : index
    %c0_109 = arith.constant 0 : index
    %121 = vector.load %arg6[%c0_107, %c0_108, %c0_109] : memref<1x256x128xf32, #tpu.memory_space<vmem>>, vector<1x256x128xf32>
    %122 = vector.shape_cast %121 : vector<1x256x128xf32> to vector<256x128xf32>
    %123 = vector.shape_cast %120 : vector<256x128xf32> to vector<1x256x128xf32>
    tpu.vector_store %arg6[%c0_107, %c0_108, %c0_109], %123 {strides = array<i32>} : memref<1x256x128xf32, #tpu.memory_space<vmem>>, vector<1x256x128xf32>,
    %c0_110 = arith.constant 0 : index
    %c0_111 = arith.constant 0 : index
    %c0_112 = arith.constant 0 : index
    %124 = vector.load %arg6[%c0_110, %c0_111, %c0_112] : memref<1x256x128xf32, #tpu.memory_space<vmem>>, vector<1x256x128xf32>
    %125 = vector.shape_cast %124 : vector<1x256x128xf32> to vector<256x128xf32>
    %c0_113 = arith.constant 0 : index
    %c0_114 = arith.constant 0 : index
    %126 = vector.load %arg4[%c0_113, %c0_114] : memref<1x128xf32, #tpu.memory_space<vmem>>, vector<1x128xf32>
    %127 = vector.broadcast %126 : vector<1x128xf32> to vector<256x128xf32>
    %128 = arith.mulf %125, %127 : vector<256x128xf32>
    %c0_115 = arith.constant 0 : index
    %c0_116 = arith.constant 0 : index
    %129 = vector.load %arg5[%c0_115, %c0_116] : memref<1x128xf32, #tpu.memory_space<vmem>>, vector<1x128xf32>
    %130 = vector.broadcast %129 : vector<1x128xf32> to vector<256x128xf32>
    %131 = arith.addf %128, %130 : vector<256x128xf32>
    %cst_117 = arith.constant 0.000000e+00 : f32
    %132 = vector.broadcast %cst_117 : f32 to vector<256x128xf32>
    %133 = arith.maximumf %131, %132 : vector<256x128xf32>
    %c0_118 = arith.constant 0 : index
    %c0_119 = arith.constant 0 : index
    %c0_120 = arith.constant 0 : index
    %134 = vector.load %arg6[%c0_118, %c0_119, %c0_120] : memref<1x256x128xf32, #tpu.memory_space<vmem>>, vector<1x256x128xf32>
    %135 = vector.shape_cast %134 : vector<1x256x128xf32> to vector<256x128xf32>
    %136 = vector.shape_cast %133 : vector<256x128xf32> to vector<1x256x128xf32>
    tpu.vector_store %arg6[%c0_118, %c0_119, %c0_120], %136 {strides = array<i32>} : memref<1x256x128xf32, #tpu.memory_space<vmem>>, vector<1x256x128xf32>,
    return
  }
  func.func @transform_0(%arg0: i32, %arg1: i32) -> (i32, i32, i32, i32) {
    %c0_i32 = arith.constant 0 : i32
    %c0_i32_0 = arith.constant 0 : i32
    %c0_i32_1 = arith.constant 0 : i32
    %c0_i32_2 = arith.constant 0 : i32
    return %arg0, %c0_i32, %c0_i32_0, %c0_i32_1 : i32, i32, i32, i32
  }
  func.func @transform_1(%arg0: i32, %arg1: i32) -> (i32, i32, i32) {
    %c0_i32 = arith.constant 0 : i32
    %c0_i32_0 = arith.constant 0 : i32
    %c0_i32_1 = arith.constant 0 : i32
    %c0_i32_2 = arith.constant 0 : i32
    return %c0_i32, %c0_i32_0, %c0_i32_1 : i32, i32, i32
  }
  func.func @transform_2(%arg0: i32, %arg1: i32) -> (i32, i32) {
    %c0_i32 = arith.constant 0 : i32
    %c0_i32_0 = arith.constant 0 : i32
    %c0_i32_1 = arith.constant 0 : i32
    return %c0_i32, %c0_i32_0 : i32, i32
  }
  func.func @transform_3(%arg0: i32, %arg1: i32) -> (i32, i32) {
    %c0_i32 = arith.constant 0 : i32
    %c0_i32_0 = arith.constant 0 : i32
    %c0_i32_1 = arith.constant 0 : i32
    return %c0_i32, %c0_i32_0 : i32, i32
  }
  func.func @transform_4(%arg0: i32, %arg1: i32) -> (i32, i32, i32) {
    %c0_i32 = arith.constant 0 : i32
    %c0_i32_0 = arith.constant 0 : i32
    return %arg0, %arg1, %c0_i32 : i32, i32, i32
  }
}

</mosaic_0001>

<bundles_post_ra>
// kernel: conv_block_forward.2
= control target key start
LH: loop header
LB: loop body
LE: loop exit
PB: predicated region body
PF: predicated region fallthrough
CT: control target
= control target key end

     0   :  { %s6048_s12 = smov 0   ;;  %s6050_s13 = smov 0   ;;  %s7034_s0 = inlined_call_operand.vmem [shape: f32[2,18,18,4], index: 0, kind: input, shape index: {}]   ;;  %s7035_s1 = inlined_call_operand.vmem [shape: f32[9,4,128], index: 1, kind: input, shape index: {}]   ;;  %s7036_s2 = inlined_call_operand.vmem [shape: f32[2,1,128], index: 2, kind: output, shape index: {0}]   ;;  %s7037_s3 = inlined_call_operand.vmem [shape: f32[2,1,128], index: 3, kind: output, shape index: {1}]  }
   0x1   :  { %s6052_s14 = smov 0  }
   0x2 LB: > { %s26_s15 = sadd.s32 1, %s6021_s13  ;;  %p4471_p0 = scmp.ge.s32.totalorder %s6025_s14, 1  ;;  %s6025_s14 = sphi %s6052_s14, %s14_s14   ;;  %s6021_s13 = sphi %s6050_s13, %s7159_s13   ;;  %s6017_s12 = sphi %s6048_s12, %s7158_s12  }
   0x3   : > { %p28_p1 = scmp.ge.s32.totalorder %s26_s15, 2  ;;  %p152_p2 = scmp.lt.s32.totalorder %s6025_s14, 3 }
   0x5   : > { %s7161_s15 = smov (%p28_p1, %s26_s15), 0  ;;  %p153_p3 = pnand %p4471_p0, %p152_p2 }
   0x7   : > { %156 = sbr.rel (%p153_p3) target bundleno = 551 (0x227), region = 28 }
   0xe   : > { %v229_v0 = vld [vmem:[%s7035_s1] sm:$0xf]  ;;  %vm327_vm0 = vcmask 1043456   ;;  %v6072_v1 = vld [vmem:[%s7035_s1 + $0x10] sm:$0xf]  ;;  %p177_p4 = scmp.lt.s32.totalorder %s6017_s12, 1 }
   0xf   : > { %5269 = vmatprep.subr.msk.mxu1 %vm327_vm0, %v229_v0  ;;  %5469 = vmatprep.subr.msk.mxu0 %vm327_vm0, %v6072_v1  ;;  %v4506_v2 = vld [vmem:[%s7035_s1 + $0x4] sm:$0xf]  ;;  %v4738_v3 = vld [vmem:[%s7035_s1 + $0x14] sm:$0xf]  ;;  %vm230_vm1 = vcmask 31744  }
  0x10   : > { %5270 = vmatpush3.msk.msra.mxu1 %vm327_vm0, %v229_v0  ;;  %5470 = vmatpush3.msk.msra.mxu0 %vm327_vm0, %v6072_v1  ;;  %s7163_s12 = smov (!%p177_p4, %s6017_s12), 1  ;;  %v6119_v10 = vld [vmem:[%s7035_s1 + $0x18] sm:$0xf]  ;;  %v6124_v11 = vld [vmem:[%s7035_s1 + $0x8] sm:$0xf] }
  0x11   : > { %5319 = vmatprep.subr.msk.mxu1 %vm327_vm0, %v4506_v2  ;;  %5519 = vmatprep.subr.msk.mxu0 %vm327_vm0, %v4738_v3  ;;  %s5977_s24 = smul.u32 432, %s7163_s12  ;;  %v6291_v44 = vld [vmem:[%s7035_s1 + $0x1c] sm:$0xf]  ;;  %s184_s17 = scalar_lea.vmem %s7036_s2, %s7163_s12 }
  0x12   : > { %s187_s20 = scalar_lea.vmem %s7037_s3, %s7163_s12 }
  0x13   : > { %s6094_s27 = scalar_lea.vmem %s7034_s0, %s5977_s24 }
  0x14   : > { %v197_v4 = vld [vmem:[%s6094_s27] sm:$0xff]  ;;  %v198_v6 = vld [vmem:[%s6094_s27 + $0x8] sm:$0xff]  ;;  %v6108_v8 = vld [vmem:[%s6094_s27 + $0x18] sm:$0xff] }
  0x15   : > { %v6098_v5 = vld [vmem:[%s6094_s27 + $0x19] sm:$0xff]  ;;  %5271 = vmatprep.mubr.msk.f32.mxu1 %vm230_vm1, %v197_v4  ;;  %v6105_v7 = vld [vmem:[%s6094_s27 + $0x21] sm:$0xff]  ;;  %7088 = vst [vmem:[#allocation5_spill] sm:$0xff] %v6108_v8  ;;  %v6111_v9 = vld [vmem:[%s6094_s27 + $0x31] sm:$0xff] }
  0x16   : > { %5471 = vmatprep.mubr.msk.f32.mxu0 %vm230_vm1, %v6098_v5  ;;  %5272 = vmatmul.mubr.msk.f32.vlgmr.msra.gmra.mrb[0].mxu1 %vm230_vm1, %v198_v6  ;;  %v6129_v12 = vld [vmem:[%s6094_s27 + $0x20] sm:$0xff]  ;;  %v6139_v14 = vld [vmem:[%s6094_s27 + $0x30] sm:$0xff]  ;;  %v6157_v16 = vld [vmem:[%s6094_s27 + $0x38] sm:$0xff] }
  0x17   : > { %5472 = vmatmul.mubr.msk.f32.vlgmr.msra.gmra.mrb[0].mxu0 %vm230_vm1, %v6105_v7  ;;  %5320 = vmatpush3.msk.msra.mxu1 %vm327_vm0, %v4506_v2  ;;  %7089 = vst [vmem:[#allocation6_spill] sm:$0xff] %v6129_v12  ;;  %v6132_v13 = vld [vmem:[%s6094_s27 + $0x39] sm:$0xff]  ;;  %7090 = vst [vmem:[#allocation7_spill] sm:$0xff] %v6139_v14  ;;  %v6142_v15 = vld [vmem:[%s6094_s27 + $0x49] sm:$0xff] }
  0x18   : > { %5520 = vmatpush3.msk.msra.mxu0 %vm327_vm0, %v4738_v3  ;;  %5274 = vmatprep.mubr.msk.f32.mxu1 %vm230_vm1, %v6108_v8  ;;  %v6160_v17 = vld [vmem:[%s6094_s27 + $0x51] sm:$0xff]  ;;  %v6163_v18 = vld [vmem:[%s6094_s27 + $0x48] sm:$0xff]  ;;  %v6183_v22 = vld [vmem:[%s6094_s27 + $0x60] sm:$0xff] }
  0x19   : > { %5474 = vmatprep.mubr.msk.f32.mxu0 %vm230_vm1, %v6111_v9  ;;  %5569 = vmatprep.subr.msk.mxu0 %vm327_vm0, %v6119_v10  ;;  %7091 = vst [vmem:[#allocation8_spill] sm:$0xff] %v6163_v18  ;;  %v6166_v19 = vld [vmem:[%s6094_s27 + $0x61] sm:$0xff]  ;;  %v6177_v20 = vld [vmem:[%s6094_s27 + $0x50] sm:$0xff]  ;;  %7093 = vst [vmem:[#allocation10_spill] sm:$0xff] %v6183_v22 }
  0x1a   : > { %5369 = vmatprep.subr.msk.mxu1 %vm327_vm0, %v6124_v11  ;;  %5275 = vmatmul.mubr.msk.f32.gmra.mrb[2].mxu1 %vm230_vm1, %v6129_v12  ;;  %7092 = vst [vmem:[#allocation9_spill] sm:$0xff] %v6177_v20  ;;  %v6180_v21 = vld [vmem:[%s6094_s27 + $0x69] sm:$0xff]  ;;  %v6186_v23 = vld [vmem:[%s6094_s27 + $0x79] sm:$0xff]  ;;  %v6200_v25 = vld [vmem:[%s6094_s27 + $0x81] sm:$0xff] }
  0x1b   : > { %5475 = vmatmul.mubr.msk.f32.gmra.mrb[2].mxu0 %vm230_vm1, %v6132_v13  ;;  %5277 = vmatprep.mubr.msk.f32.mxu1 %vm230_vm1, %v6139_v14  ;;  %v6197_v24 = vld [vmem:[%s6094_s27 + $0x68] sm:$0xff]  ;;  %v6203_v26 = vld [vmem:[%s6094_s27 + $0x78] sm:$0xff]  ;;  %v6217_v28 = vld [vmem:[%s6094_s27 + $0x80] sm:$0xff] }
  0x1c   : > { %5477 = vmatprep.mubr.msk.f32.mxu0 %vm230_vm1, %v6142_v15  ;;  %7094 = vst [vmem:[#allocation11_spill] sm:$0xff] %v6197_v24  ;;  %7095 = vst [vmem:[#allocation12_spill] sm:$0xff] %v6203_v26  ;;  %v6206_v27 = vld [vmem:[%s6094_s27 + $0x91] sm:$0xff]  ;;  %v6220_v29 = vld [vmem:[%s6094_s27 + $0x99] sm:$0xff] }
  0x1d   : > { %7096 = vst [vmem:[#allocation13_spill] sm:$0xff] %v6217_v28  ;;  %v6223_v30 = vld [vmem:[%s6094_s27 + $0x90] sm:$0xff]  ;;  %v6237_v32 = vld [vmem:[%s6094_s27 + $0x98] sm:$0xff]  ;;  %v6243_v34 = vld [vmem:[%s6094_s27 + $0xa8] sm:$0xff] }
  0x1e   : > { %5278 = vmatmul.mubr.msk.f32.gmra.mrb[4].mxu1 %vm230_vm1, %v6157_v16  ;;  %7097 = vst [vmem:[#allocation14_spill] sm:$0xff] %v6223_v30  ;;  %v6226_v31 = vld [vmem:[%s6094_s27 + $0xa9] sm:$0xff]  ;;  %7098 = vst [vmem:[#allocation15_spill] sm:$0xff] %v6237_v32  ;;  %v6240_v33 = vld [vmem:[%s6094_s27 + $0xb1] sm:$0xff] }
  0x1f   : > { %5478 = vmatmul.mubr.msk.f32.gmra.mrb[4].mxu0 %vm230_vm1, %v6160_v17  ;;  %5280 = vmatprep.mubr.msk.f32.mxu1 %vm230_vm1, %v6163_v18  ;;  %7099 = vst [vmem:[#allocation16_spill] sm:$0xff] %v6243_v34  ;;  %v6246_v35 = vld [vmem:[%s6094_s27 + $0xc1] sm:$0xff]  ;;  %v6257_v36 = vld [vmem:[%s6094_s27 + $0xb0] sm:$0xff]  ;;  %v6283_v42 = vld [vmem:[%s6094_s27 + $0xd8] sm:$0xff] }
  0x20   : > { %5480 = vmatprep.mubr.msk.f32.mxu0 %vm230_vm1, %v6166_v19  ;;  %7100 = vst [vmem:[#allocation17_spill] sm:$0xff] %v6257_v36  ;;  %v6260_v37 = vld [vmem:[%s6094_s27 + $0xc9] sm:$0xff]  ;;  %v6263_v38 = vld [vmem:[%s6094_s27 + $0xc0] sm:$0xff]  ;;  %v6286_v43 = vld [vmem:[%s6094_s27 + $0x32] sm:$0xff] }
  0x21   : > { %v6266_v39 = vld [vmem:[%s6094_s27 + $0x1a] sm:$0xff]  ;;  %v6277_v40 = vld [vmem:[%s6094_s27 + $0xc8] sm:$0xff]  ;;  %v6310_v47 = vld [vmem:[%s6094_s27 + $0xf0] sm:$0xff] }
  0x22   : > { %5281 = vmatmul.mubr.msk.f32.gmra.mrb[6].mxu1 %vm230_vm1, %v6177_v20  ;;  %7101 = vst [vmem:[#allocation18_spill] sm:$0xff] %v6277_v40  ;;  %v6280_v41 = vld [vmem:[%s6094_s27 + $0x22] sm:$0xff]  ;;  %v6305_v46 = vld [vmem:[%s6094_s27 + $0x3a] sm:$0xff]  ;;  %v6313_v48 = vld [vmem:[%s6094_s27 + $0x4a] sm:$0xff] }
  0x23   : > { %5481 = vmatmul.mubr.msk.f32.gmra.mrb[6].mxu0 %vm230_vm1, %v6180_v21  ;;  %5283 = vmatprep.mubr.msk.f32.mxu1 %vm230_vm1, %v6183_v22  ;;  %v6302_v45 = vld [vmem:[%s6094_s27 + $0xe0] sm:$0xff]  ;;  %v6326_v49 = vld [vmem:[%s6094_s27 + $0xf8] sm:$0xff]  ;;  %v6332_v51 = vld [vmem:[%s6094_s27 + $0x108] sm:$0xff] }
  0x24   : > { %5483 = vmatprep.mubr.msk.f32.mxu0 %vm230_vm1, %v6186_v23  ;;  %v6329_v50 = vld [vmem:[%s6094_s27 + $0x52] sm:$0xff]  ;;  %v6335_v52 = vld [vmem:[%s6094_s27 + $0x62] sm:$0xff]  ;;  %v6349_v54 = vld [vmem:[%s6094_s27 + $0x6a] sm:$0xff] }
  0x25   : > { %v6346_v53 = vld [vmem:[%s6094_s27 + $0x110] sm:$0xff]  ;;  %v6352_v55 = vld [vmem:[%s6094_s27 + $0x120] sm:$0xff]  ;;  %v6366_v57 = vld [vmem:[%s6094_s27 + $0x128] sm:$0xff] }
  0x26   : > { %5284 = vmatmul.mubr.msk.f32.gmra.mrb[8].mxu1 %vm230_vm1, %v6197_v24  ;;  %v6355_v56 = vld [vmem:[%s6094_s27 + $0x7a] sm:$0xff]  ;;  %v6369_v58 = vld [vmem:[%s6094_s27 + $0x82] sm:$0xff]  ;;  %v6375_v60 = vld [vmem:[%s6094_s27 + $0x92] sm:$0xff] }
  0x27   : > { %5484 = vmatmul.mubr.msk.f32.gmra.mrb[8].mxu0 %vm230_vm1, %v6200_v25  ;;  %5286 = vmatprep.mubr.msk.f32.mxu1 %vm230_vm1, %v6203_v26  ;;  %v6372_v59 = vld [vmem:[%s6094_s27 + $0x138] sm:$0xff]  ;;  %7102 = vst [vmem:[#allocation19_spill] sm:$0xff] %v6375_v60  ;;  %v6386_v61 = vld [vmem:[%s6094_s27 + $0x140] sm:$0xff]  ;;  %v6392_v63 = vld [vmem:[%s6094_s27 + $0x150] sm:$0xff] }
  0x28   : > { %5486 = vmatprep.mubr.msk.f32.mxu0 %vm230_vm1, %v6206_v27  ;;  %v6389_v62 = vld [vmem:[%s6094_s27 + $0x9a] sm:$0xff]  ;;  %v6395_v0 = vld [vmem:[%s6094_s27 + $0xaa] sm:$0xff]  ;;  %v6409_v3 = vld [vmem:[%s6094_s27 + $0xb2] sm:$0xff] }
  0x29   : > { %7103 = vst [vmem:[#allocation20_spill] sm:$0xff] %v6389_v62  ;;  %7104 = vst [vmem:[#allocation21_spill] sm:$0xff] %v6395_v0  ;;  %v6406_v2 = vld [vmem:[%s6094_s27 + $0x158] sm:$0xff]  ;;  %v6412_v4 = vld [vmem:[%s6094_s27 + $0x168] sm:$0xff] }
  0x2a   : > { %5287 = vmatmul.mubr.msk.f32.gmra.mrb[10].mxu1 %vm230_vm1, %v6217_v28  ;;  %7105 = vst [vmem:[#allocation22_spill] sm:$0xff] %v6406_v2  ;;  %7106 = vst [vmem:[#allocation23_spill] sm:$0xff] %v6409_v3  ;;  %v6415_v6 = vld [vmem:[%s6094_s27 + $0xc2] sm:$0xff]  ;;  %v6429_v12 = vld [vmem:[%s6094_s27 + $0xca] sm:$0xff] }
  0x2b   : > { %5487 = vmatmul.mubr.msk.f32.gmra.mrb[10].mxu0 %vm230_vm1, %v6220_v29  ;;  %5289 = vmatprep.mubr.msk.f32.mxu1 %vm230_vm1, %v6223_v30  ;;  %7107 = vst [vmem:[#allocation24_spill] sm:$0xff] %v6412_v4  ;;  %7108 = vst [vmem:[#allocation25_spill] sm:$0xff] %v6415_v6  ;;  %v588_v8 = vld [vmem:[%s6094_s27 + $0x1] sm:$0xff] }
  0x2c   : > { %5489 = vmatprep.mubr.msk.f32.mxu0 %vm230_vm1, %v6226_v31 }
  0x2e   : > { %5290 = vmatmul.mubr.msk.f32.gmra.mrb[12].mxu1 %vm230_vm1, %v6237_v32 }
  0x2f   : > { %5490 = vmatmul.mubr.msk.f32.gmra.mrb[12].mxu0 %vm230_vm1, %v6240_v33  ;;  %5292 = vmatprep.mubr.msk.f32.mxu1 %vm230_vm1, %v6243_v34 }
  0x30   : > { %5492 = vmatprep.mubr.msk.f32.mxu0 %vm230_vm1, %v6246_v35 }
  0x32   : > { %5293 = vmatmul.mubr.msk.f32.gmra.mrb[14].mxu1 %vm230_vm1, %v6257_v36 }
  0x33   : > { %5493 = vmatmul.mubr.msk.f32.gmra.mrb[14].mxu0 %vm230_vm1, %v6260_v37  ;;  %5295 = vmatprep.mubr.msk.f32.mxu1 %vm230_vm1, %v6263_v38 }
  0x34   : > { %5521 = vmatprep.mubr.msk.f32.mxu0 %vm230_vm1, %v6266_v39 }
  0x36   : > { %5296 = vmatmul.mubr.msk.f32.gmra.mrb[16].mxu1 %vm230_vm1, %v6277_v40 }
  0x37   : > { %5522 = vmatmul.mubr.msk.f32.vlgmr.msra.gmra.mrb[0].mxu0 %vm230_vm1, %v6280_v41  ;;  %5298 = vmatprep.mubr.msk.f32.mxu1 %vm230_vm1, %v6283_v42 }
  0x38   : > { %5570 = vmatpush3.msk.msra.mxu0 %vm327_vm0, %v6119_v10  ;;  %5524 = vmatprep.mubr.msk.f32.mxu0 %vm230_vm1, %v6286_v43  ;;  %v6426_v10 = vld [vmem:[%s6094_s27 + $0x170] sm:$0xff] }
  0x39   : > { %5619 = vmatprep.subr.msk.mxu0 %vm327_vm0, %v6291_v44  ;;  %7109 = vst [vmem:[#allocation26_spill] sm:$0xff] %v6426_v10 }
  0x3a   : > { %5299 = vmatmul.mubr.msk.f32.gmra.mrb[18].mxu1 %vm230_vm1, %v6302_v45 }
  0x3b   : > { %5525 = vmatmul.mubr.msk.f32.gmra.mrb[2].mxu0 %vm230_vm1, %v6305_v46  ;;  %5301 = vmatprep.mubr.msk.f32.mxu1 %vm230_vm1, %v6310_v47 }
  0x3c   : > { %5527 = vmatprep.mubr.msk.f32.mxu0 %vm230_vm1, %v6313_v48 }
  0x3e   : > { %5302 = vmatmul.mubr.msk.f32.gmra.mrb[20].mxu1 %vm230_vm1, %v6326_v49 }
  0x3f   : > { %5528 = vmatmul.mubr.msk.f32.gmra.mrb[4].mxu0 %vm230_vm1, %v6329_v50  ;;  %5304 = vmatprep.mubr.msk.f32.mxu1 %vm230_vm1, %v6332_v51 }
  0x40   : > { %5530 = vmatprep.mubr.msk.f32.mxu0 %vm230_vm1, %v6335_v52 }
  0x42   : > { %5305 = vmatmul.mubr.msk.f32.gmra.mrb[22].mxu1 %vm230_vm1, %v6346_v53 }
  0x43   : > { %5531 = vmatmul.mubr.msk.f32.gmra.mrb[6].mxu0 %vm230_vm1, %v6349_v54  ;;  %5307 = vmatprep.mubr.msk.f32.mxu1 %vm230_vm1, %v6352_v55 }
  0x44   : > { %5533 = vmatprep.mubr.msk.f32.mxu0 %vm230_vm1, %v6355_v56 }
  0x46   : > { %5308 = vmatmul.mubr.msk.f32.gmra.mrb[24].mxu1 %vm230_vm1, %v6366_v57 }
  0x47   : > { %5534 = vmatmul.mubr.msk.f32.gmra.mrb[8].mxu0 %vm230_vm1, %v6369_v58  ;;  %5310 = vmatprep.mubr.msk.f32.mxu1 %vm230_vm1, %v6372_v59 }
  0x48   : > { %5536 = vmatprep.mubr.msk.f32.mxu0 %vm230_vm1, %v6375_v60  ;;  %v6452_v60 = vld [vmem:[%s7035_s1 + $0xc] sm:$0xf] }
  0x4a   : > { %5311 = vmatmul.mubr.msk.f32.gmra.mrb[26].mxu1 %vm230_vm1, %v6386_v61 }
  0x4b   : > { %5537 = vmatmul.mubr.msk.f32.gmra.mrb[10].mxu0 %vm230_vm1, %v6389_v62  ;;  %5313 = vmatprep.mubr.msk.f32.mxu1 %vm230_vm1, %v6392_v63  ;;  %v6447_v62 = vld [vmem:[%s6094_s27 + $0xf2] sm:$0xff] }
  0x4c   : > { %5539 = vmatprep.mubr.msk.f32.mxu0 %vm230_vm1, %v6395_v0  ;;  %v6433_v0 = vld [vmem:[%s6094_s27 + $0xda] sm:$0xff] }
  0x4d   : > { %7110 = vst [vmem:[#allocation27_spill] sm:$0xff] %v6433_v0 }
  0x4e   : > { %5314 = vmatmul.mubr.msk.f32.gmra.mrb[28].mxu1 %vm230_vm1, %v6406_v2 }
  0x4f   : > { %5540 = vmatmul.mubr.msk.f32.gmra.mrb[12].mxu0 %vm230_vm1, %v6409_v3  ;;  %5316 = vmatprep.mubr.msk.f32.mxu1 %vm230_vm1, %v6412_v4  ;;  %v6444_v3 = vld [vmem:[%s6094_s27 + $0xe2] sm:$0xff] }
  0x50   : > { %5542 = vmatprep.mubr.msk.f32.mxu0 %vm230_vm1, %v6415_v6  ;;  %v589_v6 = vld [vmem:[%s6094_s27 + $0x9] sm:$0xff] }
  0x52   : > { %5317 = vmatmul.mubr.msk.f32.gmra.mrb[30].mxu1 %vm230_vm1, %v6426_v10 }
  0x53   : > { %5543 = vmatmul.mubr.msk.f32.gmra.mrb[14].mxu0 %vm230_vm1, %v6429_v12  ;;  %5321 = vmatprep.mubr.msk.f32.mxu1 %vm230_vm1, %v588_v8  ;;  %v6462_v8 = vld [vmem:[%s6094_s27 + $0xfa] sm:$0xff] }
  0x54   : > { %5545 = vmatprep.mubr.msk.f32.mxu0 %vm230_vm1, %v6433_v0  ;;  %v6467_v0 = vld [vmem:[%s6094_s27 + $0x10a] sm:$0xff] }
  0x56   : > { %5322 = vmatmul.mubr.msk.f32.vlgmr.msra.gmra.mrb[0].mxu1 %vm230_vm1, %v589_v6  ;;  %v6497_v6 = vld [vmem:[%s6094_s27 + $0x13a] sm:$0xff] }
  0x57   : > { %5546 = vmatmul.mubr.msk.f32.gmra.mrb[16].mxu0 %vm230_vm1, %v6444_v3  ;;  %5370 = vmatpush3.msk.msra.mxu1 %vm327_vm0, %v6124_v11  ;;  %v6483_v11 = vld [vmem:[%s6094_s27 + $0x122] sm:$0xff]  ;;  %7114 = vst [vmem:[#allocation31_spill] sm:$0xff] %v6497_v6 }
  0x58   : > { %5324 = vmatprep.mubr.msk.f32.mxu1 %vm230_vm1, %v6098_v5  ;;  %5548 = vmatprep.mubr.msk.f32.mxu0 %vm230_vm1, %v6447_v62  ;;  %v6480_v5 = vld [vmem:[%s6094_s27 + $0x112] sm:$0xff]  ;;  %7112 = vst [vmem:[#allocation29_spill] sm:$0xff] %v6483_v11 }
  0x59   : > { %5419 = vmatprep.subr.msk.mxu1 %vm327_vm0, %v6452_v60  ;;  %7111 = vst [vmem:[#allocation28_spill] sm:$0xff] %v6480_v5 }
  0x5a   : > { %5325 = vmatmul.mubr.msk.f32.gmra.mrb[2].mxu1 %vm230_vm1, %v6105_v7  ;;  %v6494_v7 = vld [vmem:[%s6094_s27 + $0x12a] sm:$0xff] }
  0x5b   : > { %5549 = vmatmul.mubr.msk.f32.gmra.mrb[18].mxu0 %vm230_vm1, %v6462_v8  ;;  %5327 = vmatprep.mubr.msk.f32.mxu1 %vm230_vm1, %v6111_v9  ;;  %7113 = vst [vmem:[#allocation30_spill] sm:$0xff] %v6494_v7 }
  0x5c   : > { %5551 = vmatprep.mubr.msk.f32.mxu0 %vm230_vm1, %v6467_v0 }
  0x5e   : > { %5328 = vmatmul.mubr.msk.f32.gmra.mrb[4].mxu1 %vm230_vm1, %v6132_v13 }
  0x5f   : > { %5552 = vmatmul.mubr.msk.f32.gmra.mrb[20].mxu0 %vm230_vm1, %v6480_v5  ;;  %5330 = vmatprep.mubr.msk.f32.mxu1 %vm230_vm1, %v6142_v15  ;;  %v6508_v5 = vld [vmem:[%s6094_s27 + $0x142] sm:$0xff] }
  0x60   : > { %5554 = vmatprep.mubr.msk.f32.mxu0 %vm230_vm1, %v6483_v11  ;;  %7115 = vst [vmem:[#allocation32_spill] sm:$0xff] %v6508_v5  ;;  %v6511_v11 = vld [vmem:[%s6094_s27 + $0x152] sm:$0xff] }
  0x61   : > { %7116 = vst [vmem:[#allocation33_spill] sm:$0xff] %v6511_v11 }
  0x62   : > { %5331 = vmatmul.mubr.msk.f32.gmra.mrb[6].mxu1 %vm230_vm1, %v6160_v17 }
  0x63   : > { %5555 = vmatmul.mubr.msk.f32.gmra.mrb[22].mxu0 %vm230_vm1, %v6494_v7  ;;  %5333 = vmatprep.mubr.msk.f32.mxu1 %vm230_vm1, %v6166_v19  ;;  %v6522_v7 = vld [vmem:[%s6094_s27 + $0x15a] sm:$0xff] }
  0x64   : > { %5557 = vmatprep.mubr.msk.f32.mxu0 %vm230_vm1, %v6497_v6  ;;  %7117 = vst [vmem:[#allocation34_spill] sm:$0xff] %v6522_v7  ;;  %v6525_v6 = vld [vmem:[%s6094_s27 + $0x16a] sm:$0xff] }
  0x66   : > { %5334 = vmatmul.mubr.msk.f32.gmra.mrb[8].mxu1 %vm230_vm1, %v6180_v21 }
  0x67   : > { %5558 = vmatmul.mubr.msk.f32.gmra.mrb[24].mxu0 %vm230_vm1, %v6508_v5  ;;  %5336 = vmatprep.mubr.msk.f32.mxu1 %vm230_vm1, %v6186_v23  ;;  %v6536_v5 = vld [vmem:[%s6094_s27 + $0x172] sm:$0xff] }
  0x68   : > { %5560 = vmatprep.mubr.msk.f32.mxu0 %vm230_vm1, %v6511_v11  ;;  %7118 = vst [vmem:[#allocation35_spill] sm:$0xff] %v6536_v5  ;;  %v6539_v11 = vld [vmem:[%s6094_s27 + $0x182] sm:$0xff] }
  0x69   : > { %7119 = vst [vmem:[#allocation36_spill] sm:$0xff] %v6539_v11 }
  0x6a   : > { %5337 = vmatmul.mubr.msk.f32.gmra.mrb[10].mxu1 %vm230_vm1, %v6200_v25 }
  0x6b   : > { %5561 = vmatmul.mubr.msk.f32.gmra.mrb[26].mxu0 %vm230_vm1, %v6522_v7  ;;  %5339 = vmatprep.mubr.msk.f32.mxu1 %vm230_vm1, %v6206_v27  ;;  %v6550_v7 = vld [vmem:[%s6094_s27 + $0x18a] sm:$0xff] }
  0x6c   : > { %5563 = vmatprep.mubr.msk.f32.mxu0 %vm230_vm1, %v6525_v6  ;;  %7120 = vst [vmem:[#allocation37_spill] sm:$0xff] %v6550_v7 }
  0x6e   : > { %5340 = vmatmul.mubr.msk.f32.gmra.mrb[12].mxu1 %vm230_vm1, %v6220_v29 }
  0x6f   : > { %5564 = vmatmul.mubr.msk.f32.gmra.mrb[28].mxu0 %vm230_vm1, %v6536_v5  ;;  %5342 = vmatprep.mubr.msk.f32.mxu1 %vm230_vm1, %v6226_v31  ;;  %v6561_v5 = vld [vmem:[%s6094_s27 + $0xd9] sm:$0xff] }
  0x70   : > { %5566 = vmatprep.mubr.msk.f32.mxu0 %vm230_vm1, %v6539_v11  ;;  %v6566_v11 = vld [vmem:[%s7035_s1 + $0x20] sm:$0xf] }
  0x72   : > { %5343 = vmatmul.mubr.msk.f32.gmra.mrb[14].mxu1 %vm230_vm1, %v6240_v33 }
  0x73   : > { %5567 = vmatmul.mubr.msk.f32.gmra.mrb[30].mxu0 %vm230_vm1, %v6550_v7  ;;  %5345 = vmatprep.mubr.msk.f32.mxu1 %vm230_vm1, %v6246_v35  ;;  %v6577_v7 = vld [vmem:[%s6094_s27 + $0xe1] sm:$0xff] }
  0x74   : > { %5571 = vmatprep.mubr.msk.f32.mxu0 %vm230_vm1, %v6139_v14  ;;  %v6582_v14 = vld [vmem:[%s6094_s27 + $0xf1] sm:$0xff] }
  0x76   : > { %5346 = vmatmul.mubr.msk.f32.gmra.mrb[16].mxu1 %vm230_vm1, %v6260_v37 }
  0x77   : > { %5572 = vmatmul.mubr.msk.f32.vlgmr.msra.gmra.mrb[0].mxu0 %vm230_vm1, %v6157_v16  ;;  %5348 = vmatprep.mubr.msk.f32.mxu1 %vm230_vm1, %v6561_v5 }
  0x78   : > { %5620 = vmatpush3.msk.msra.mxu0 %vm327_vm0, %v6291_v44  ;;  %5574 = vmatprep.mubr.msk.f32.mxu0 %vm230_vm1, %v6163_v18  ;;  %v6595_v44 = vld [vmem:[%s6094_s27 + $0xf9] sm:$0xff]  ;;  %v6598_v18 = vld [vmem:[%s6094_s27 + $0x109] sm:$0xff] }
  0x79   : > { %5669 = vmatprep.subr.msk.mxu0 %vm327_vm0, %v6566_v11 }
  0x7a   : > { %5349 = vmatmul.mubr.msk.f32.gmra.mrb[18].mxu1 %vm230_vm1, %v6577_v7 }
  0x7b   : > { %5575 = vmatmul.mubr.msk.f32.gmra.mrb[2].mxu0 %vm230_vm1, %v6177_v20  ;;  %5351 = vmatprep.mubr.msk.f32.mxu1 %vm230_vm1, %v6582_v14  ;;  %v6609_v20 = vld [vmem:[%s6094_s27 + $0x111] sm:$0xff] }
  0x7c   : > { %5577 = vmatprep.mubr.msk.f32.mxu0 %vm230_vm1, %v6183_v22  ;;  %v6612_v22 = vld [vmem:[%s6094_s27 + $0x121] sm:$0xff] }
  0x7e   : > { %5352 = vmatmul.mubr.msk.f32.gmra.mrb[20].mxu1 %vm230_vm1, %v6595_v44 }
  0x7f   : > { %5578 = vmatmul.mubr.msk.f32.gmra.mrb[4].mxu0 %vm230_vm1, %v6197_v24  ;;  %5354 = vmatprep.mubr.msk.f32.mxu1 %vm230_vm1, %v6598_v18  ;;  %v6623_v24 = vld [vmem:[%s6094_s27 + $0x129] sm:$0xff] }
  0x80   : > { %5580 = vmatprep.mubr.msk.f32.mxu0 %vm230_vm1, %v6203_v26  ;;  %v6626_v26 = vld [vmem:[%s6094_s27 + $0x139] sm:$0xff] }
  0x82   : > { %5355 = vmatmul.mubr.msk.f32.gmra.mrb[22].mxu1 %vm230_vm1, %v6609_v20 }
  0x83   : > { %5581 = vmatmul.mubr.msk.f32.gmra.mrb[6].mxu0 %vm230_vm1, %v6217_v28  ;;  %5357 = vmatprep.mubr.msk.f32.mxu1 %vm230_vm1, %v6612_v22  ;;  %v6637_v28 = vld [vmem:[%s6094_s27 + $0x141] sm:$0xff] }
  0x84   : > { %5583 = vmatprep.mubr.msk.f32.mxu0 %vm230_vm1, %v6223_v30  ;;  %v6640_v30 = vld [vmem:[%s6094_s27 + $0x151] sm:$0xff] }
  0x85   : > { %7121 = vst [vmem:[#allocation38_spill] sm:$0xff] %v6640_v30 }
  0x86   : > { %5358 = vmatmul.mubr.msk.f32.gmra.mrb[24].mxu1 %vm230_vm1, %v6623_v24 }
  0x87   : > { %5584 = vmatmul.mubr.msk.f32.gmra.mrb[8].mxu0 %vm230_vm1, %v6237_v32  ;;  %5360 = vmatprep.mubr.msk.f32.mxu1 %vm230_vm1, %v6626_v26  ;;  %v6651_v32 = vld [vmem:[%s6094_s27 + $0x159] sm:$0xff] }
  0x88   : > { %5586 = vmatprep.mubr.msk.f32.mxu0 %vm230_vm1, %v6243_v34  ;;  %v6654_v34 = vld [vmem:[%s6094_s27 + $0x169] sm:$0xff] }
  0x8a   : > { %5361 = vmatmul.mubr.msk.f32.gmra.mrb[26].mxu1 %vm230_vm1, %v6637_v28 }
  0x8b   : > { %5587 = vmatmul.mubr.msk.f32.gmra.mrb[10].mxu0 %vm230_vm1, %v6257_v36  ;;  %5363 = vmatprep.mubr.msk.f32.mxu1 %vm230_vm1, %v6640_v30  ;;  %v6665_v36 = vld [vmem:[%s6094_s27 + $0x171] sm:$0xff]  ;;  %v1042_v30 = vld [vmem:[%s6094_s27 + $0x2] sm:$0xff] }
  0x8c   : > { %5589 = vmatprep.mubr.msk.f32.mxu0 %vm230_vm1, %v6263_v38 }
  0x8e   : > { %5364 = vmatmul.mubr.msk.f32.gmra.mrb[28].mxu1 %vm230_vm1, %v6651_v32 }
  0x8f   : > { %5590 = vmatmul.mubr.msk.f32.gmra.mrb[12].mxu0 %vm230_vm1, %v6277_v40  ;;  %5366 = vmatprep.mubr.msk.f32.mxu1 %vm230_vm1, %v6654_v34  ;;  %v1043_v40 = vld [vmem:[%s6094_s27 + $0xa] sm:$0xff] }
  0x90   : > { %5592 = vmatprep.mubr.msk.f32.mxu0 %vm230_vm1, %v6283_v42 }
  0x92   : > { %5367 = vmatmul.mubr.msk.f32.gmra.mrb[30].mxu1 %vm230_vm1, %v6665_v36 }
  0x93   : > { %5593 = vmatmul.mubr.msk.f32.gmra.mrb[14].mxu0 %vm230_vm1, %v6302_v45  ;;  %5371 = vmatprep.mubr.msk.f32.mxu1 %vm230_vm1, %v1042_v30  ;;  %v6720_v30 = vld [vmem:[%s6094_s27 + $0x180] sm:$0xff] }
  0x94   : > { %5595 = vmatprep.mubr.msk.f32.mxu0 %vm230_vm1, %v6310_v47  ;;  %7122 = vst [vmem:[#allocation39_spill] sm:$0xff] %v6720_v30 }
  0x96   : > { %5372 = vmatmul.mubr.msk.f32.vlgmr.msra.gmra.mrb[0].mxu1 %vm230_vm1, %v1043_v40  ;;  %v6731_v40 = vld [vmem:[%s6094_s27 + $0x188] sm:$0xff] }
  0x97   : > { %5596 = vmatmul.mubr.msk.f32.gmra.mrb[16].mxu0 %vm230_vm1, %v6326_v49  ;;  %5420 = vmatpush3.msk.msra.mxu1 %vm327_vm0, %v6452_v60  ;;  %v7124_v60 = vld [vmem:[#allocation20_spill] sm:$0xff] }
  0x98   : > { %5374 = vmatprep.mubr.msk.f32.mxu1 %vm230_vm1, %v6266_v39  ;;  %5598 = vmatprep.mubr.msk.f32.mxu0 %vm230_vm1, %v6332_v51  ;;  %v7123_v39 = vld [vmem:[#allocation19_spill] sm:$0xff] }
  0x99   : > { %5719 = vmatprep.subr.msk.mxu1 %vm327_vm0, %v6072_v1 }
  0x9a   : > { %5375 = vmatmul.mubr.msk.f32.gmra.mrb[2].mxu1 %vm230_vm1, %v6280_v41  ;;  %v4802_v41 = vld [vmem:[%s6094_s27 + $0x198] sm:$0xff] }
  0x9b   : > { %5599 = vmatmul.mubr.msk.f32.gmra.mrb[18].mxu0 %vm230_vm1, %v6346_v53  ;;  %5377 = vmatprep.mubr.msk.f32.mxu1 %vm230_vm1, %v6286_v43 }
  0x9c   : > { %5601 = vmatprep.mubr.msk.f32.mxu0 %vm230_vm1, %v6352_v55 }
  0x9e   : > { %5378 = vmatmul.mubr.msk.f32.gmra.mrb[4].mxu1 %vm230_vm1, %v6305_v46 }
  0x9f   : > { %5602 = vmatmul.mubr.msk.f32.gmra.mrb[20].mxu0 %vm230_vm1, %v6366_v57  ;;  %5380 = vmatprep.mubr.msk.f32.mxu1 %vm230_vm1, %v6313_v48 }
  0xa0   : > { %5604 = vmatprep.mubr.msk.f32.mxu0 %vm230_vm1, %v6372_v59 }
  0xa2   : > { %5381 = vmatmul.mubr.msk.f32.gmra.mrb[6].mxu1 %vm230_vm1, %v6329_v50 }
  0xa3   : > { %5605 = vmatmul.mubr.msk.f32.gmra.mrb[22].mxu0 %vm230_vm1, %v6386_v61  ;;  %5383 = vmatprep.mubr.msk.f32.mxu1 %vm230_vm1, %v6335_v52 }
  0xa4   : > { %5607 = vmatprep.mubr.msk.f32.mxu0 %vm230_vm1, %v6392_v63 }
  0xa6   : > { %5384 = vmatmul.mubr.msk.f32.gmra.mrb[8].mxu1 %vm230_vm1, %v6349_v54 }
  0xa7   : > { %5608 = vmatmul.mubr.msk.f32.gmra.mrb[24].mxu0 %vm230_vm1, %v6406_v2  ;;  %5386 = vmatprep.mubr.msk.f32.mxu1 %vm230_vm1, %v6355_v56  ;;  %v7126_v2 = vld [vmem:[#allocation23_spill] sm:$0xff] }
  0xa8   : > { %5610 = vmatprep.mubr.msk.f32.mxu0 %vm230_vm1, %v6412_v4  ;;  %v7125_v4 = vld [vmem:[#allocation21_spill] sm:$0xff] }
  0xaa   : > { %5387 = vmatmul.mubr.msk.f32.gmra.mrb[10].mxu1 %vm230_vm1, %v6369_v58 }
  0xab   : > { %5611 = vmatmul.mubr.msk.f32.gmra.mrb[26].mxu0 %vm230_vm1, %v6426_v10  ;;  %5389 = vmatprep.mubr.msk.f32.mxu1 %vm230_vm1, %v7123_v39  ;;  %v4803_v10 = vld [vmem:[%s6094_s27 + $0x1a0] sm:$0xff] }
  0xac   : > { %5613 = vmatprep.mubr.msk.f32.mxu0 %vm230_vm1, %v6720_v30  ;;  %v7127_v30 = vld [vmem:[#allocation25_spill] sm:$0xff] }
  0xae   : > { %5390 = vmatmul.mubr.msk.f32.gmra.mrb[12].mxu1 %vm230_vm1, %v7124_v60 }
  0xaf   : > { %5614 = vmatmul.mubr.msk.f32.gmra.mrb[28].mxu0 %vm230_vm1, %v6731_v40  ;;  %5392 = vmatprep.mubr.msk.f32.mxu1 %vm230_vm1, %v7125_v4 }
  0xb0   : > { %5616 = vmatprep.mubr.msk.f32.mxu0 %vm230_vm1, %v4802_v41  ;;  %v7128_v41 = vld [vmem:[#allocation27_spill] sm:$0xff] }
  0xb2   : > { %5393 = vmatmul.mubr.msk.f32.gmra.mrb[14].mxu1 %vm230_vm1, %v7126_v2 }
  0xb3   : > { %5617 = vmatmul.mubr.msk.f32.gmra.mrb[30].mxu0 %vm230_vm1, %v4803_v10  ;;  %5395 = vmatprep.mubr.msk.f32.mxu1 %vm230_vm1, %v7127_v30  ;;  %v7145_v10 = vld [vmem:[#allocation38_spill] sm:$0xff] }
  0xb4   : > { %5621 = vmatprep.mubr.msk.f32.mxu0 %vm230_vm1, %v6111_v9  ;;  %v7129_v9 = vld [vmem:[#allocation28_spill] sm:$0xff] }
  0xb6   : > { %5396 = vmatmul.mubr.msk.f32.gmra.mrb[16].mxu1 %vm230_vm1, %v6429_v12 }
  0xb7   : > { %5622 = vmatmul.mubr.msk.f32.vlgmr.msra.gmra.mrb[0].mxu0 %vm230_vm1, %v6132_v13  ;;  %5398 = vmatprep.mubr.msk.f32.mxu1 %vm230_vm1, %v7128_v41  ;;  %v7130_v13 = vld [vmem:[#allocation29_spill] sm:$0xff] }
  0xb8   : > { %5670 = vmatpush3.msk.msra.mxu0 %vm327_vm0, %v6566_v11  ;;  %5624 = vmatprep.mubr.msk.f32.mxu0 %vm230_vm1, %v6142_v15  ;;  %v7131_v15 = vld [vmem:[#allocation30_spill] sm:$0xff]  ;;  %v7146_v11 = vld [vmem:[#allocation13_spill] sm:$0xff] }
  0xba   : > { %5399 = vmatmul.mubr.msk.f32.gmra.mrb[18].mxu1 %vm230_vm1, %v6444_v3 }
  0xbb   : > { %5625 = vmatmul.mubr.msk.f32.gmra.mrb[2].mxu0 %vm230_vm1, %v6160_v17  ;;  %5401 = vmatprep.mubr.msk.f32.mxu1 %vm230_vm1, %v6447_v62  ;;  %v7132_v17 = vld [vmem:[#allocation31_spill] sm:$0xff] }
  0xbc   : > { %5627 = vmatprep.mubr.msk.f32.mxu0 %vm230_vm1, %v6166_v19  ;;  %v7133_v19 = vld [vmem:[#allocation32_spill] sm:$0xff] }
  0xbe   : > { %5402 = vmatmul.mubr.msk.f32.gmra.mrb[20].mxu1 %vm230_vm1, %v6462_v8 }
  0xbf   : > { %5628 = vmatmul.mubr.msk.f32.gmra.mrb[4].mxu0 %vm230_vm1, %v6180_v21  ;;  %5404 = vmatprep.mubr.msk.f32.mxu1 %vm230_vm1, %v6467_v0  ;;  %v7134_v21 = vld [vmem:[#allocation33_spill] sm:$0xff] }
  0xc0   : > { %5630 = vmatprep.mubr.msk.f32.mxu0 %vm230_vm1, %v6186_v23  ;;  %v7135_v23 = vld [vmem:[#allocation34_spill] sm:$0xff] }
  0xc2   : > { %5405 = vmatmul.mubr.msk.f32.gmra.mrb[22].mxu1 %vm230_vm1, %v7129_v9 }
  0xc3   : > { %5631 = vmatmul.mubr.msk.f32.gmra.mrb[6].mxu0 %vm230_vm1, %v6200_v25  ;;  %5407 = vmatprep.mubr.msk.f32.mxu1 %vm230_vm1, %v7130_v13  ;;  %v7136_v25 = vld [vmem:[#allocation35_spill] sm:$0xff] }
  0xc4   : > { %5633 = vmatprep.mubr.msk.f32.mxu0 %vm230_vm1, %v6206_v27  ;;  %v7137_v27 = vld [vmem:[#allocation5_spill] sm:$0xff] }
  0xc6   : > { %5408 = vmatmul.mubr.msk.f32.gmra.mrb[24].mxu1 %vm230_vm1, %v7131_v15 }
  0xc7   : > { %5634 = vmatmul.mubr.msk.f32.gmra.mrb[8].mxu0 %vm230_vm1, %v6220_v29  ;;  %5410 = vmatprep.mubr.msk.f32.mxu1 %vm230_vm1, %v7132_v17  ;;  %v7138_v29 = vld [vmem:[#allocation6_spill] sm:$0xff] }
  0xc8   : > { %5636 = vmatprep.mubr.msk.f32.mxu0 %vm230_vm1, %v6226_v31  ;;  %v7139_v31 = vld [vmem:[#allocation7_spill] sm:$0xff] }
  0xca   : > { %5411 = vmatmul.mubr.msk.f32.gmra.mrb[26].mxu1 %vm230_vm1, %v7133_v19 }
  0xcb   : > { %5637 = vmatmul.mubr.msk.f32.gmra.mrb[10].mxu0 %vm230_vm1, %v6240_v33  ;;  %5413 = vmatprep.mubr.msk.f32.mxu1 %vm230_vm1, %v7134_v21  ;;  %v7140_v33 = vld [vmem:[#allocation8_spill] sm:$0xff] }
  0xcc   : > { %5639 = vmatprep.mubr.msk.f32.mxu0 %vm230_vm1, %v6246_v35  ;;  %v7142_v35 = vld [vmem:[#allocation10_spill] sm:$0xff] }
  0xce   : > { %5414 = vmatmul.mubr.msk.f32.gmra.mrb[28].mxu1 %vm230_vm1, %v7135_v23 }
  0xcf   : > { %5640 = vmatmul.mubr.msk.f32.gmra.mrb[12].mxu0 %vm230_vm1, %v6260_v37  ;;  %5416 = vmatprep.mubr.msk.f32.mxu1 %vm230_vm1, %v6525_v6  ;;  %v7144_v37 = vld [vmem:[#allocation12_spill] sm:$0xff] }
  0xd0   : > { %5642 = vmatprep.mubr.msk.f32.mxu0 %vm230_vm1, %v6561_v5 }
  0xd2   : > { %5417 = vmatmul.mubr.msk.f32.gmra.mrb[30].mxu1 %vm230_vm1, %v7136_v25 }
  0xd3   : > { %5643 = vmatmul.mubr.msk.f32.gmra.mrb[14].mxu0 %vm230_vm1, %v6577_v7  ;;  %5421 = vmatprep.mubr.msk.f32.mxu1 %vm230_vm1, %v7137_v27  ;;  %v7147_v27 = vld [vmem:[#allocation14_spill] sm:$0xff] }
  0xd4   : > { %5645 = vmatprep.mubr.msk.f32.mxu0 %vm230_vm1, %v6582_v14 }
  0xd6   : > { %5422 = vmatmul.mubr.msk.f32.vlgmr.msra.gmra.mrb[0].mxu1 %vm230_vm1, %v7138_v29  ;;  %v6858_v29 = vld [vmem:[%s6094_s27 + $0x181] sm:$0xff] }
  0xd7   : > { %5646 = vmatmul.mubr.msk.f32.gmra.mrb[16].mxu0 %vm230_vm1, %v6595_v44  ;;  %5720 = vmatpush3.msk.msra.mxu1 %vm327_vm0, %v6072_v1  ;;  %v7141_v1 = vld [vmem:[#allocation9_spill] sm:$0xff] }
  0xd8   : > { %5424 = vmatprep.mubr.msk.f32.mxu1 %vm230_vm1, %v7139_v31  ;;  %5648 = vmatprep.mubr.msk.f32.mxu0 %vm230_vm1, %v6598_v18  ;;  %v7148_v31 = vld [vmem:[#allocation15_spill] sm:$0xff] }
  0xda   : > { %5425 = vmatmul.mubr.msk.f32.gmra.mrb[2].mxu1 %vm230_vm1, %v6157_v16  ;;  %v7143_v16 = vld [vmem:[#allocation11_spill] sm:$0xff] }
  0xdb   : > { %5649 = vmatmul.mubr.msk.f32.gmra.mrb[18].mxu0 %vm230_vm1, %v6609_v20  ;;  %5427 = vmatprep.mubr.msk.f32.mxu1 %vm230_vm1, %v7140_v33  ;;  %v7149_v33 = vld [vmem:[#allocation16_spill] sm:$0xff] }
  0xdc   : > { %5651 = vmatprep.mubr.msk.f32.mxu0 %vm230_vm1, %v6612_v22 }
  0xde   : > { %5428 = vmatmul.mubr.msk.f32.gmra.mrb[4].mxu1 %vm230_vm1, %v7141_v1  ;;  %v6869_v1 = vld [vmem:[%s6094_s27 + $0x189] sm:$0xff] }
  0xdf   : > { %5652 = vmatmul.mubr.msk.f32.gmra.mrb[20].mxu0 %vm230_vm1, %v6623_v24  ;;  %5430 = vmatprep.mubr.msk.f32.mxu1 %vm230_vm1, %v7142_v35  ;;  %v4868_v35 = vld [vmem:[%s6094_s27 + $0x199] sm:$0xff] }
  0xe0   : > { %5654 = vmatprep.mubr.msk.f32.mxu0 %vm230_vm1, %v6626_v26 }
  0xe2   : > { %5431 = vmatmul.mubr.msk.f32.gmra.mrb[6].mxu1 %vm230_vm1, %v7143_v16  ;;  %v7150_v16 = vld [vmem:[#allocation17_spill] sm:$0xff] }
  0xe3   : > { %5655 = vmatmul.mubr.msk.f32.gmra.mrb[22].mxu0 %vm230_vm1, %v6637_v28  ;;  %5433 = vmatprep.mubr.msk.f32.mxu1 %vm230_vm1, %v7144_v37  ;;  %v4869_v37 = vld [vmem:[%s6094_s27 + $0x1a1] sm:$0xff] }
  0xe4   : > { %5657 = vmatprep.mubr.msk.f32.mxu0 %vm230_vm1, %v7145_v10 }
  0xe6   : > { %5434 = vmatmul.mubr.msk.f32.gmra.mrb[8].mxu1 %vm230_vm1, %v7146_v11  ;;  %v7151_v11 = vld [vmem:[#allocation18_spill] sm:$0xff] }
  0xe7   : > { %5658 = vmatmul.mubr.msk.f32.gmra.mrb[24].mxu0 %vm230_vm1, %v6651_v32  ;;  %5436 = vmatprep.mubr.msk.f32.mxu1 %vm230_vm1, %v7147_v27 }
  0xe8   : > { %5660 = vmatprep.mubr.msk.f32.mxu0 %vm230_vm1, %v6654_v34 }
  0xea   : > { %5437 = vmatmul.mubr.msk.f32.gmra.mrb[10].mxu1 %vm230_vm1, %v7148_v31 }
  0xeb   : > { %5661 = vmatmul.mubr.msk.f32.gmra.mrb[26].mxu0 %vm230_vm1, %v6665_v36  ;;  %5439 = vmatprep.mubr.msk.f32.mxu1 %vm230_vm1, %v7149_v33 }
  0xec   : > { %5663 = vmatprep.mubr.msk.f32.mxu0 %vm230_vm1, %v6858_v29 }
  0xee   : > { %5440 = vmatmul.mubr.msk.f32.gmra.mrb[12].mxu1 %vm230_vm1, %v7150_v16 }
  0xef   : > { %5664 = vmatmul.mubr.msk.f32.gmra.mrb[28].mxu0 %vm230_vm1, %v6869_v1  ;;  %5442 = vmatprep.mubr.msk.f32.mxu1 %vm230_vm1, %v6263_v38  ;;  %v7152_v38 = vld [vmem:[#allocation22_spill] sm:$0xff] }
  0xf0   : > { %5666 = vmatprep.mubr.msk.f32.mxu0 %vm230_vm1, %v4868_v35 }
  0xf2   : > { %5443 = vmatmul.mubr.msk.f32.gmra.mrb[14].mxu1 %vm230_vm1, %v7151_v11 }
  0xf3   : > { %5667 = vmatmul.mubr.msk.f32.gmra.mrb[30].mxu0 %vm230_vm1, %v4869_v37  ;;  %5445 = vmatprep.mubr.msk.f32.mxu1 %vm230_vm1, %v6283_v42  ;;  %v7153_v42 = vld [vmem:[#allocation24_spill] sm:$0xff] }
  0xf4   : > { %5671 = vmatprep.mubr.msk.f32.mxu0 %vm230_vm1, %v6286_v43  ;;  %v7154_v43 = vld [vmem:[#allocation26_spill] sm:$0xff] }
  0xf6   : > { %5446 = vmatmul.mubr.msk.f32.gmra.mrb[16].mxu1 %vm230_vm1, %v6302_v45  ;;  %v7155_v45 = vld [vmem:[#allocation39_spill] sm:$0xff] }
  0xf7   : > { %5672 = vmatmul.mubr.msk.f32.vlgmr.msra.gmra.mrb[0].mxu0 %vm230_vm1, %v6305_v46  ;;  %5448 = vmatprep.mubr.msk.f32.mxu1 %vm230_vm1, %v6310_v47 }
  0xf8   : > { %5674 = vmatprep.mubr.msk.f32.mxu0 %vm230_vm1, %v6313_v48 }
  0xfa   : > { %5449 = vmatmul.mubr.msk.f32.gmra.mrb[18].mxu1 %vm230_vm1, %v6326_v49 }
  0xfb   : > { %5675 = vmatmul.mubr.msk.f32.gmra.mrb[2].mxu0 %vm230_vm1, %v6329_v50  ;;  %5451 = vmatprep.mubr.msk.f32.mxu1 %vm230_vm1, %v6332_v51 }
  0xfc   : > { %5677 = vmatprep.mubr.msk.f32.mxu0 %vm230_vm1, %v6335_v52 }
  0xfe   : > { %5452 = vmatmul.mubr.msk.f32.gmra.mrb[20].mxu1 %vm230_vm1, %v6346_v53 }
  0xff   : > { %5678 = vmatmul.mubr.msk.f32.gmra.mrb[4].mxu0 %vm230_vm1, %v6349_v54  ;;  %5454 = vmatprep.mubr.msk.f32.mxu1 %vm230_vm1, %v6352_v55 }
 0x100   : > { %5680 = vmatprep.mubr.msk.f32.mxu0 %vm230_vm1, %v6355_v56 }
 0x102   : > { %5455 = vmatmul.mubr.msk.f32.gmra.mrb[22].mxu1 %vm230_vm1, %v6366_v57 }
 0x103   : > { %5681 = vmatmul.mubr.msk.f32.gmra.mrb[6].mxu0 %vm230_vm1, %v6369_v58  ;;  %5457 = vmatprep.mubr.msk.f32.mxu1 %vm230_vm1, %v6372_v59 }
 0x104   : > { %5683 = vmatprep.mubr.msk.f32.mxu0 %vm230_vm1, %v7123_v39 }
 0x106   : > { %5458 = vmatmul.mubr.msk.f32.gmra.mrb[24].mxu1 %vm230_vm1, %v6386_v61 }
 0x107   : > { %5684 = vmatmul.mubr.msk.f32.gmra.mrb[8].mxu0 %vm230_vm1, %v7124_v60  ;;  %5460 = vmatprep.mubr.msk.f32.mxu1 %vm230_vm1, %v6392_v63 }
 0x108   : > { %5686 = vmatprep.mubr.msk.f32.mxu0 %vm230_vm1, %v7125_v4 }
 0x10a   : > { %5461 = vmatmul.mubr.msk.f32.gmra.mrb[26].mxu1 %vm230_vm1, %v7152_v38 }
 0x10b   : > { %5687 = vmatmul.mubr.msk.f32.gmra.mrb[10].mxu0 %vm230_vm1, %v7126_v2  ;;  %5463 = vmatprep.mubr.msk.f32.mxu1 %vm230_vm1, %v7153_v42 }
 0x10c   : > { %5689 = vmatprep.mubr.msk.f32.mxu0 %vm230_vm1, %v7127_v30 }
 0x10e   : > { %5464 = vmatmul.mubr.msk.f32.gmra.mrb[28].mxu1 %vm230_vm1, %v7154_v43 }
 0x10f   : > { %5690 = vmatmul.mubr.msk.f32.gmra.mrb[12].mxu0 %vm230_vm1, %v6429_v12  ;;  %5466 = vmatprep.mubr.msk.f32.mxu1 %vm230_vm1, %v7155_v45  ;;  %v7156_v12 = vld [vmem:[#allocation36_spill] sm:$0xff] }
 0x110   : > { %5692 = vmatprep.mubr.msk.f32.mxu0 %vm230_vm1, %v7128_v41 }
 0x112   : > { %5467 = vmatmul.mubr.msk.f32.gmra.mrb[30].mxu1 %vm230_vm1, %v6731_v40 }
 0x113   : > { %5693 = vmatmul.mubr.msk.f32.gmra.mrb[14].mxu0 %vm230_vm1, %v6444_v3  ;;  %5495 = vmatprep.mubr.msk.f32.mxu1 %vm230_vm1, %v6561_v5 }
 0x114   : > { %5695 = vmatprep.mubr.msk.f32.mxu0 %vm230_vm1, %v6447_v62 }
 0x116   : > { %5496 = vmatmul.mubr.msk.f32.vlgmr.msra.gmra.mrb[16].mxu1 %vm230_vm1, %v6577_v7 }
 0x117   : > { %5696 = vmatmul.mubr.msk.f32.gmra.mrb[16].mxu0 %vm230_vm1, %v6462_v8  ;;  %5498 = vmatprep.mubr.msk.f32.mxu1 %vm230_vm1, %v6582_v14  ;;  %v4934_v14 = vld [vmem:[%s6094_s27 + $0x19a] sm:$0xff] }
 0x118   : > { %5698 = vmatprep.mubr.msk.f32.mxu0 %vm230_vm1, %v6467_v0 }
 0x11a   : > { %5499 = vmatmul.mubr.msk.f32.gmra.mrb[18].mxu1 %vm230_vm1, %v6595_v44 }
 0x11b   : > { %5699 = vmatmul.mubr.msk.f32.gmra.mrb[18].mxu0 %vm230_vm1, %v7129_v9  ;;  %5501 = vmatprep.mubr.msk.f32.mxu1 %vm230_vm1, %v6598_v18  ;;  %v7157_v18 = vld [vmem:[#allocation37_spill] sm:$0xff] }
 0x11c   : > { %5701 = vmatprep.mubr.msk.f32.mxu0 %vm230_vm1, %v7130_v13 }
 0x11e   : > { %5502 = vmatmul.mubr.msk.f32.gmra.mrb[20].mxu1 %vm230_vm1, %v6609_v20  ;;  %v4935_v20 = vld [vmem:[%s6094_s27 + $0x1a2] sm:$0xff] }
 0x11f   : > { %5702 = vmatmul.mubr.msk.f32.gmra.mrb[20].mxu0 %vm230_vm1, %v7131_v15  ;;  %5504 = vmatprep.mubr.msk.f32.mxu1 %vm230_vm1, %v6612_v22  ;;  %v6027_v22 = vmov 0.0  }
 0x120   : > { %5704 = vmatprep.mubr.msk.f32.mxu0 %vm230_vm1, %v7132_v17  ;;  %192 = vst [vmem:[#allocation3] sm:$0x1] %v6027_v22  ;;  %193 = vst [vmem:[#allocation4] sm:$0x1] %v6027_v22 }
 0x122   : > { %5505 = vmatmul.mubr.msk.f32.gmra.mrb[22].mxu1 %vm230_vm1, %v6623_v24 }
 0x123   : > { %5705 = vmatmul.mubr.msk.f32.gmra.mrb[22].mxu0 %vm230_vm1, %v7133_v19  ;;  %5507 = vmatprep.mubr.msk.f32.mxu1 %vm230_vm1, %v6626_v26 }
 0x124   : > { %5707 = vmatprep.mubr.msk.f32.mxu0 %vm230_vm1, %v7134_v21 }
 0x126   : > { %5508 = vmatmul.mubr.msk.f32.gmra.mrb[24].mxu1 %vm230_vm1, %v6637_v28 }
 0x127   : > { %5708 = vmatmul.mubr.msk.f32.gmra.mrb[24].mxu0 %vm230_vm1, %v7135_v23  ;;  %5510 = vmatprep.mubr.msk.f32.mxu1 %vm230_vm1, %v7145_v10 }
 0x128   : > { %5710 = vmatprep.mubr.msk.f32.mxu0 %vm230_vm1, %v6525_v6 }
 0x12a   : > { %5511 = vmatmul.mubr.msk.f32.gmra.mrb[26].mxu1 %vm230_vm1, %v6651_v32 }
 0x12b   : > { %5711 = vmatmul.mubr.msk.f32.gmra.mrb[26].mxu0 %vm230_vm1, %v7136_v25  ;;  %5513 = vmatprep.mubr.msk.f32.mxu1 %vm230_vm1, %v6654_v34 }
 0x12c   : > { %5713 = vmatprep.mubr.msk.f32.mxu0 %vm230_vm1, %v7156_v12 }
 0x12e   : > { %5514 = vmatmul.mubr.msk.f32.gmra.mrb[28].mxu1 %vm230_vm1, %v6665_v36 }
 0x12f   : > { %5714 = vmatmul.mubr.msk.f32.gmra.mrb[28].mxu0 %vm230_vm1, %v7157_v18  ;;  %5516 = vmatprep.mubr.msk.f32.mxu1 %vm230_vm1, %v6858_v29 }
 0x130   : > { %5716 = vmatprep.mubr.msk.f32.mxu0 %vm230_vm1, %v4934_v14 }
 0x132   : > { %5517 = vmatmul.mubr.msk.f32.gmra.mrb[30].mxu1 %vm230_vm1, %v6869_v1 }
 0x133   : > { %5717 = vmatmul.mubr.msk.f32.gmra.mrb[30].mxu0 %vm230_vm1, %v4935_v20 }
 0x1a9   : > { %v5423_v24 = vpop.f32.mrb[0].mxu1 }
 0x1aa   : > { %v1698_v26 = vpop.f32.mrb[1].mxu1 }
 0x1ad   : > { %v5426_v28 = vpop.f32.mrb[2].mxu1 }
 0x1ae   : > { %v1708_v32 = vpop.f32.mrb[3].mxu1 }
 0x1b1   : > { %v5429_v34 = vpop.f32.mrb[4].mxu1 }
 0x1b2   : > { %v1718_v36 = vpop.f32.mrb[5].mxu1 }
 0x1b5   : > { %v5432_v46 = vpop.f32.mrb[6].mxu1 }
 0x1b6   : > { %v1728_v47 = vpop.f32.mrb[7].mxu1 }
 0x1b9   : > { %v5435_v48 = vpop.f32.mrb[8].mxu1 }
 0x1ba   : > { %v1738_v49 = vpop.f32.mrb[9].mxu1 }
 0x1bd   : > { %v5438_v50 = vpop.f32.mrb[10].mxu1 }
 0x1be   : > { %v1748_v51 = vpop.f32.mrb[11].mxu1 }
 0x1c1   : > { %v5441_v52 = vpop.f32.mrb[12].mxu1 }
 0x1c2   : > { %v1758_v53 = vpop.f32.mrb[13].mxu1 }
 0x1c5   : > { %v7011_v54 = vpop.f32.mrb[14].mxu1 }
 0x1c6   : > { %v7013_v55 = vpop.f32.mrb[15].mxu1 }
 0x1ca   : > { %v5673_v56 = vpop.f32.mrb[0].mxu0 }
 0x1cb   : > { %v5721_v57 = vadd.f32 %v5673_v56, %v5423_v24  ;;  %v3971_v58 = vpop.f32.mrb[1].mxu0 }
 0x1cc   : > { %v5722_v59 = vadd.f32 %v3971_v58, %v1698_v26 }
 0x1cd   : > { %v4300_v61 = vmul.f32 %v5721_v57, %v5721_v57 }
 0x1ce   : > { %v4259_v62 = vadd.f32 %v5722_v59, %v5721_v57  ;;  %v4299_v63 = vmul.f32 %v5722_v59, %v5722_v59  ;;  %v5676_v0 = vpop.f32.mrb[2].mxu0 }
 0x1cf   : > { %v5723_v2 = vadd.f32 %v5676_v0, %v5426_v28  ;;  %v3981_v3 = vpop.f32.mrb[3].mxu0 }
 0x1d0   : > { %v4331_v4 = vadd.f32 %v4300_v61, %v4299_v63  ;;  %v5724_v8 = vadd.f32 %v3981_v3, %v1708_v32 }
 0x1d1   : > { %v4302_v39 = vmul.f32 %v5723_v2, %v5723_v2 }
 0x1d2   : > { %v4260_v5 = vadd.f32 %v5724_v8, %v4259_v62  ;;  %v4301_v7 = vmul.f32 %v5724_v8, %v5724_v8  ;;  %v5679_v6 = vpop.f32.mrb[4].mxu0 }
 0x1d3   : > { %v5725_v44 = vadd.f32 %v5679_v6, %v5429_v34  ;;  %v3991_v30 = vpop.f32.mrb[5].mxu0 }
 0x1d4   : > { %v4332_v40 = vadd.f32 %v4331_v4, %v4301_v7  ;;  %v5726_v60 = vadd.f32 %v3991_v30, %v1718_v36  ;;  %v4261_v41 = vadd.f32 %v5723_v2, %v4260_v5 }
 0x1d5   : > { %v4304_v23 = vmul.f32 %v5725_v44, %v5725_v44 }
 0x1d6   : > { %v4262_v9 = vadd.f32 %v5726_v60, %v4261_v41  ;;  %v4303_v13 = vmul.f32 %v5726_v60, %v5726_v60  ;;  %v4333_v15 = vadd.f32 %v4332_v40, %v4302_v39  ;;  %v5682_v17 = vpop.f32.mrb[6].mxu0 }
 0x1d7   : > { %v5727_v19 = vadd.f32 %v5682_v17, %v5432_v46  ;;  %v4001_v21 = vpop.f32.mrb[7].mxu0 }
 0x1d8   : > { %v4334_v25 = vadd.f32 %v4333_v15, %v4303_v13  ;;  %v5728_v10 = vadd.f32 %v4001_v21, %v1728_v47  ;;  %v4263_v27 = vadd.f32 %v5725_v44, %v4262_v9 }
 0x1d9   : > { %v4306_v37 = vmul.f32 %v5727_v19, %v5727_v19 }
 0x1da   : > { %v4264_v29 = vadd.f32 %v5728_v10, %v4263_v27  ;;  %v4305_v31 = vmul.f32 %v5728_v10, %v5728_v10  ;;  %v4335_v33 = vadd.f32 %v4334_v25, %v4304_v23  ;;  %v5685_v1 = vpop.f32.mrb[8].mxu0 }
 0x1db   : > { %v5729_v35 = vadd.f32 %v5685_v1, %v5435_v48  ;;  %v4011_v16 = vpop.f32.mrb[9].mxu0 }
 0x1dc   : > { %v4336_v11 = vadd.f32 %v4335_v33, %v4305_v31  ;;  %v5730_v38 = vadd.f32 %v4011_v16, %v1738_v49  ;;  %v4265_v42 = vadd.f32 %v5727_v19, %v4264_v29 }
 0x1dd   : > { %v4308_v22 = vmul.f32 %v5729_v35, %v5729_v35 }
 0x1de   : > { %v4266_v43 = vadd.f32 %v5730_v38, %v4265_v42  ;;  %v4307_v45 = vmul.f32 %v5730_v38, %v5730_v38  ;;  %v4337_v12 = vadd.f32 %v4336_v11, %v4306_v37  ;;  %v5688_v14 = vpop.f32.mrb[10].mxu0 }
 0x1df   : > { %v5731_v18 = vadd.f32 %v5688_v14, %v5438_v50  ;;  %v4021_v20 = vpop.f32.mrb[11].mxu0 }
 0x1e0   : > { %v4338_v24 = vadd.f32 %v4337_v12, %v4307_v45  ;;  %v5732_v26 = vadd.f32 %v4021_v20, %v1748_v51  ;;  %v4267_v28 = vadd.f32 %v5729_v35, %v4266_v43 }
 0x1e1   : > { %v4310_v56 = vmul.f32 %v5731_v18, %v5731_v18 }
 0x1e2   : > { %v4268_v32 = vadd.f32 %v5732_v26, %v4267_v28  ;;  %v4309_v34 = vmul.f32 %v5732_v26, %v5732_v26  ;;  %v4339_v36 = vadd.f32 %v4338_v24, %v4308_v22  ;;  %v5691_v46 = vpop.f32.mrb[12].mxu0 }
 0x1e3   : > { %v5733_v47 = vadd.f32 %v5691_v46, %v5441_v52  ;;  %v4031_v48 = vpop.f32.mrb[13].mxu0 }
 0x1e4   : > { %v4340_v57 = vadd.f32 %v4339_v36, %v4309_v34  ;;  %v5734_v49 = vadd.f32 %v4031_v48, %v1758_v53  ;;  %v4269_v58 = vadd.f32 %v5731_v18, %v4268_v32 }
 0x1e5   : > { %v4312_v2 = vmul.f32 %v5733_v47, %v5733_v47 }
 0x1e6   : > { %v4270_v59 = vadd.f32 %v5734_v49, %v4269_v58  ;;  %v4311_v61 = vmul.f32 %v5734_v49, %v5734_v49  ;;  %v4341_v62 = vadd.f32 %v4340_v57, %v4310_v56  ;;  %v5694_v63 = vpop.f32.mrb[14].mxu0 }
 0x1e7   : > { %v5735_v50 = vadd.f32 %v5694_v63, %v7011_v54  ;;  %v4041_v0 = vpop.f32.mrb[15].mxu0 }
 0x1e8   : > { %v4342_v51 = vadd.f32 %v4341_v62, %v4311_v61  ;;  %v5736_v3 = vadd.f32 %v4041_v0, %v7013_v55  ;;  %v4271_v4 = vadd.f32 %v5733_v47, %v4270_v59 }
 0x1e9   : > { %v5497_v7 = vpop.f32.mrb[16].mxu1  ;;  %v4314_v39 = vmul.f32 %v5735_v50, %v5735_v50 }
 0x1ea   : > { %v4272_v8 = vadd.f32 %v5736_v3, %v4271_v4  ;;  %v4313_v5 = vmul.f32 %v5736_v3, %v5736_v3  ;;  %v4343_v52 = vadd.f32 %v4342_v51, %v4312_v2  ;;  %v5697_v6 = vpop.f32.mrb[16].mxu0  ;;  %v2232_v53 = vpop.f32.mrb[17].mxu1 }
 0x1eb   : > { %v5737_v44 = vadd.f32 %v5697_v6, %v5497_v7  ;;  %v4051_v30 = vpop.f32.mrb[17].mxu0 }
 0x1ec   : > { %v4344_v40 = vadd.f32 %v4343_v52, %v4313_v5  ;;  %v5738_v60 = vadd.f32 %v4051_v30, %v2232_v53  ;;  %v4273_v41 = vadd.f32 %v5735_v50, %v4272_v8 }
 0x1ed   : > { %v5500_v15 = vpop.f32.mrb[18].mxu1  ;;  %v4316_v23 = vmul.f32 %v5737_v44, %v5737_v44 }
 0x1ee   : > { %v4274_v9 = vadd.f32 %v5738_v60, %v4273_v41  ;;  %v4315_v54 = vmul.f32 %v5738_v60, %v5738_v60  ;;  %v4345_v13 = vadd.f32 %v4344_v40, %v4314_v39  ;;  %v5700_v17 = vpop.f32.mrb[18].mxu0  ;;  %v2242_v55 = vpop.f32.mrb[19].mxu1 }
 0x1ef   : > { %v5739_v19 = vadd.f32 %v5700_v17, %v5500_v15  ;;  %v4061_v21 = vpop.f32.mrb[19].mxu0 }
 0x1f0   : > { %v4346_v25 = vadd.f32 %v4345_v13, %v4315_v54  ;;  %v5740_v10 = vadd.f32 %v4061_v21, %v2242_v55  ;;  %v4275_v27 = vadd.f32 %v5737_v44, %v4274_v9 }
 0x1f1   : > { %v5503_v1 = vpop.f32.mrb[20].mxu1  ;;  %v4318_v38 = vmul.f32 %v5739_v19, %v5739_v19 }
 0x1f2   : > { %v4276_v29 = vadd.f32 %v5740_v10, %v4275_v27  ;;  %v4317_v31 = vmul.f32 %v5740_v10, %v5740_v10  ;;  %v4347_v33 = vadd.f32 %v4346_v25, %v4316_v23  ;;  %v5703_v35 = vpop.f32.mrb[20].mxu0  ;;  %v2252_v37 = vpop.f32.mrb[21].mxu1 }
 0x1f3   : > { %v5741_v16 = vadd.f32 %v5703_v35, %v5503_v1  ;;  %v4071_v11 = vpop.f32.mrb[21].mxu0 }
 0x1f4   : > { %v4348_v42 = vadd.f32 %v4347_v33, %v4317_v31  ;;  %v5742_v43 = vadd.f32 %v4071_v11, %v2252_v37  ;;  %v4277_v45 = vadd.f32 %v5739_v19, %v4276_v29 }
 0x1f5   : > { %v5506_v20 = vpop.f32.mrb[22].mxu1  ;;  %v4320_v32 = vmul.f32 %v5741_v16, %v5741_v16 }
 0x1f6   : > { %v4278_v12 = vadd.f32 %v5742_v43, %v4277_v45  ;;  %v4319_v14 = vmul.f32 %v5742_v43, %v5742_v43  ;;  %v4349_v18 = vadd.f32 %v4348_v42, %v4318_v38  ;;  %v5706_v22 = vpop.f32.mrb[22].mxu0  ;;  %v2262_v26 = vpop.f32.mrb[23].mxu1 }
 0x1f7   : > { %v5743_v24 = vadd.f32 %v5706_v22, %v5506_v20  ;;  %v4081_v28 = vpop.f32.mrb[23].mxu0 }
 0x1f8   : > { %v4350_v34 = vadd.f32 %v4349_v18, %v4319_v14  ;;  %v5744_v36 = vadd.f32 %v4081_v28, %v2262_v26  ;;  %v4279_v46 = vadd.f32 %v5741_v16, %v4278_v12 }
 0x1f9   : > { %v5509_v57 = vpop.f32.mrb[24].mxu1  ;;  %v4322_v62 = vmul.f32 %v5743_v24, %v5743_v24 }
 0x1fa   : > { %v4280_v47 = vadd.f32 %v5744_v36, %v4279_v46  ;;  %v4321_v48 = vmul.f32 %v5744_v36, %v5744_v36  ;;  %v4351_v56 = vadd.f32 %v4350_v34, %v4320_v32  ;;  %v5709_v49 = vpop.f32.mrb[24].mxu0  ;;  %v2272_v59 = vpop.f32.mrb[25].mxu1 }
 0x1fb   : > { %v5745_v58 = vadd.f32 %v5709_v49, %v5509_v57  ;;  %v4091_v61 = vpop.f32.mrb[25].mxu0  ;;  %v4298_v57 = vld [vmem:[#allocation4] sm:$0x1] }
 0x1fc   : > { %v4352_v63 = vadd.f32 %v4351_v56, %v4321_v48  ;;  %v5746_v50 = vadd.f32 %v4091_v61, %v2272_v59  ;;  %v4281_v0 = vadd.f32 %v5743_v24, %v4280_v47  ;;  %v4258_v47 = vld [vmem:[#allocation3] sm:$0x1] }
 0x1fd   : > { %v5512_v4 = vpop.f32.mrb[26].mxu1  ;;  %v4324_v6 = vmul.f32 %v5745_v58, %v5745_v58 }
 0x1fe   : > { %v4282_v2 = vadd.f32 %v5746_v50, %v4281_v0  ;;  %v4323_v51 = vmul.f32 %v5746_v50, %v5746_v50  ;;  %v4353_v3 = vadd.f32 %v4352_v63, %v4322_v62  ;;  %v5712_v8 = vpop.f32.mrb[26].mxu0  ;;  %v2282_v52 = vpop.f32.mrb[27].mxu1 }
 0x1ff   : > { %v5747_v5 = vadd.f32 %v5712_v8, %v5512_v4  ;;  %v4101_v7 = vpop.f32.mrb[27].mxu0 }
 0x200   : > { %v4354_v44 = vadd.f32 %v4353_v3, %v4323_v51  ;;  %v5748_v53 = vadd.f32 %v4101_v7, %v2282_v52  ;;  %v4283_v30 = vadd.f32 %v5745_v58, %v4282_v2 }
 0x201   : > { %v5515_v41 = vpop.f32.mrb[28].mxu1  ;;  %v4326_v17 = vmul.f32 %v5747_v5, %v5747_v5 }
 0x202   : > { %v4284_v39 = vadd.f32 %v5748_v53, %v4283_v30  ;;  %v4325_v40 = vmul.f32 %v5748_v53, %v5748_v53  ;;  %v4355_v60 = vadd.f32 %v4354_v44, %v4324_v6  ;;  %v5715_v9 = vpop.f32.mrb[28].mxu0  ;;  %v2292_v13 = vpop.f32.mrb[29].mxu1 }
 0x203   : > { %v5749_v54 = vadd.f32 %v5715_v9, %v5515_v41  ;;  %v4111_v15 = vpop.f32.mrb[29].mxu0 }
 0x204   : > { %v4356_v19 = vadd.f32 %v4355_v60, %v4325_v40  ;;  %v5750_v55 = vadd.f32 %v4111_v15, %v2292_v13  ;;  %v4285_v21 = vadd.f32 %v5747_v5, %v4284_v39 }
 0x205   : > { %v5518_v27 = vpop.f32.mrb[30].mxu1  ;;  %v4328_v35 = vmul.f32 %v5749_v54, %v5749_v54 }
 0x206   : > { %v4286_v23 = vadd.f32 %v5750_v55, %v4285_v21  ;;  %v4327_v25 = vmul.f32 %v5750_v55, %v5750_v55  ;;  %v4357_v10 = vadd.f32 %v4356_v19, %v4326_v17  ;;  %v5718_v29 = vpop.f32.mrb[30].mxu0  ;;  %v2302_v33 = vpop.f32.mrb[31].mxu1 }
 0x207   : > { %v5751_v31 = vadd.f32 %v5718_v29, %v5518_v27  ;;  %v4121_v1 = vpop.f32.mrb[31].mxu0 }
 0x208   : > { %v4358_v16 = vadd.f32 %v4357_v10, %v4327_v25  ;;  %v5752_v37 = vadd.f32 %v4121_v1, %v2302_v33  ;;  %v4287_v11 = vadd.f32 %v5749_v54, %v4286_v23 }
 0x209   : > { %v4330_v45 = vmul.f32 %v5751_v31, %v5751_v31 }
 0x20a   : > { %v4288_v38 = vadd.f32 %v5752_v37, %v4287_v11  ;;  %v4329_v42 = vmul.f32 %v5752_v37, %v5752_v37  ;;  %v4359_v43 = vadd.f32 %v4358_v16, %v4328_v35 }
 0x20c   : > { %v4289_v12 = vadd.f32 %v5751_v31, %v4288_v38  ;;  %v4360_v14 = vadd.f32 %v4359_v43, %v4329_v42 }
 0x20e   : > { %v4290_v18 = vrot.slane %v4289_v12, 4  ;;  %v4361_v20 = vadd.f32 %v4360_v14, %v4330_v45 }
 0x210   : > { %v4291_v22 = vadd.f32 %v4290_v18, %v4289_v12  ;;  %v4362_v24 = vrot.slane %v4361_v20, 4 }
 0x212   : > { %v4292_v26 = vrot.slane %v4291_v22, 2  ;;  %v4363_v28 = vadd.f32 %v4362_v24, %v4361_v20 }
 0x214   : > { %v4293_v32 = vadd.f32 %v4292_v26, %v4291_v22  ;;  %v4364_v34 = vrot.slane %v4363_v28, 2 }
 0x216   : > { %v4294_v36 = vrot.slane %v4293_v32, 1  ;;  %v4365_v46 = vadd.f32 %v4364_v34, %v4363_v28 }
 0x218   : > { %v4295_v48 = vadd.f32 %v4294_v36, %v4293_v32  ;;  %v4366_v56 = vrot.slane %v4365_v46, 1 }
 0x21a   : > { %v4296_v49 = vadd.f32 %v4295_v48, %v4258_v47  ;;  %v4367_v58 = vadd.f32 %v4366_v56, %v4365_v46 }
 0x21c   : > { %4297 = vst [vmem:[#allocation3] sm:$0x1] %v4296_v49  ;;  %v4368_v59 = vadd.f32 %v4367_v58, %v4298_v57 }
 0x21e   : > { %4369 = vst [vmem:[#allocation4] sm:$0x1] %v4368_v59 }
 0x223   : > { %v4373_v61 = vld [vmem:[#allocation3] sm:$0x1] }
 0x224   : > { %4374 = vst [vmem:[%s184_s17] sm:$0x1] %v4373_v61 }
 0x225   : > { %v4375_v62 = vld [vmem:[#allocation4] sm:$0x1] }
 0x226   : > { %4376 = vst [vmem:[%s187_s20] sm:$0x1] %v4375_v62 }
 0x227 PF: > { %s14_s14 = sadd.s32 1, %s6025_s14   ;;  %s7158_s12 = smov %s6021_s13 }
 0x228   : > { %p11_p5 = scmp.ge.s32.totalorder %s14_s14, 4   ;;  %s7159_s13 = smov %s7161_s15 }
 0x22a   :  { %13 = sbr.rel (!%p11_p5) target bundleno = 2 (0x2), region = 89 }

// kernel: conv_block_forward.3
= control target key start
LH: loop header
LB: loop body
LE: loop exit
PB: predicated region body
PF: predicated region fallthrough
CT: control target
= control target key end

     0   :  { %s6171_s15 = smov 0   ;;  %s6173_s16 = smov 0   ;;  %s7273_s0 = inlined_call_operand.vmem [shape: f32[2,18,18,4], index: 0, kind: input, shape index: {}]   ;;  %s7274_s1 = inlined_call_operand.vmem [shape: f32[9,4,128], index: 1, kind: input, shape index: {}]   ;;  %s7275_s2 = inlined_call_operand.vmem [shape: f32[1,128], index: 2, kind: input, shape index: {}]   ;;  %s7276_s3 = inlined_call_operand.vmem [shape: f32[1,128], index: 3, kind: input, shape index: {}]   ;;  %s7277_s4 = inlined_call_operand.vmem [shape: f32[2,256,128], index: 4, kind: output, shape index: {}]  }
   0x1   :  { %s6175_s17 = smov 0  }
   0x2 LB: > { %s26_s18 = sadd.s32 1, %s6140_s16  ;;  %p4522_p0 = scmp.ge.s32.totalorder %s6144_s17, 1  ;;  %s6144_s17 = sphi %s6175_s17, %s14_s17   ;;  %s6140_s16 = sphi %s6173_s16, %s7402_s16   ;;  %s6136_s15 = sphi %s6171_s15, %s7401_s15  }
   0x3   : > { %p28_p1 = scmp.ge.s32.totalorder %s26_s18, 2  ;;  %p176_p2 = scmp.lt.s32.totalorder %s6144_s17, 3 }
   0x5   : > { %s7404_s18 = smov (%p28_p1, %s26_s18), 0  ;;  %p177_p3 = pnand %p4522_p0, %p176_p2 }
   0x7   : > { %180 = sbr.rel (%p177_p3) target bundleno = 529 (0x211), region = 36 }
   0xe   : > { %v256_v0 = vld [vmem:[%s7274_s1] sm:$0xf]  ;;  %vm354_vm0 = vcmask 1043456   ;;  %v6195_v1 = vld [vmem:[%s7274_s1 + $0x10] sm:$0xf]  ;;  %p206_p4 = scmp.lt.s32.totalorder %s6136_s15, 1 }
   0xf   : > { %5325 = vmatprep.subr.msk.mxu1 %vm354_vm0, %v256_v0  ;;  %5525 = vmatprep.subr.msk.mxu0 %vm354_vm0, %v6195_v1  ;;  %v4559_v2 = vld [vmem:[%s7274_s1 + $0x4] sm:$0xf]  ;;  %v4791_v3 = vld [vmem:[%s7274_s1 + $0x14] sm:$0xf]  ;;  %vm257_vm1 = vcmask 31744  }
  0x10   : > { %5326 = vmatpush3.msk.msra.mxu1 %vm354_vm0, %v256_v0  ;;  %s7406_s15 = smov (!%p206_p4, %s6136_s15), 1  ;;  %5526 = vmatpush3.msk.msra.mxu0 %vm354_vm0, %v6195_v1  ;;  %v6242_v10 = vld [vmem:[%s7274_s1 + $0x18] sm:$0xf]  ;;  %v6247_v11 = vld [vmem:[%s7274_s1 + $0x8] sm:$0xf] }
  0x11   : > { %5375 = vmatprep.subr.msk.mxu1 %vm354_vm0, %v4559_v2  ;;  %5575 = vmatprep.subr.msk.mxu0 %vm354_vm0, %v4791_v3  ;;  %s6097_s27 = smul.u32 432, %s7406_s15  ;;  %v6418_v44 = vld [vmem:[%s7274_s1 + $0x1c] sm:$0xf]  ;;  %s5027_s23 = sshll.u32 %s7406_s15, 8 }
  0x12   : > { %s7163_s26 = scalar_lea.vmem %s7277_s4, %s5027_s23 }
  0x13   : > { %s6217_s30 = scalar_lea.vmem %s7273_s0, %s6097_s27 }
  0x14   : > { %v224_v4 = vld [vmem:[%s6217_s30] sm:$0xff]  ;;  %v225_v6 = vld [vmem:[%s6217_s30 + $0x8] sm:$0xff]  ;;  %v6231_v8 = vld [vmem:[%s6217_s30 + $0x18] sm:$0xff] }
  0x15   : > { %v6221_v5 = vld [vmem:[%s6217_s30 + $0x19] sm:$0xff]  ;;  %5327 = vmatprep.mubr.msk.f32.mxu1 %vm257_vm1, %v224_v4  ;;  %v6228_v7 = vld [vmem:[%s6217_s30 + $0x21] sm:$0xff]  ;;  %7329 = vst [vmem:[#allocation2_spill] sm:$0xff] %v6231_v8  ;;  %v6234_v9 = vld [vmem:[%s6217_s30 + $0x31] sm:$0xff] }
  0x16   : > { %5527 = vmatprep.mubr.msk.f32.mxu0 %vm257_vm1, %v6221_v5  ;;  %5328 = vmatmul.mubr.msk.f32.vlgmr.msra.gmra.mrb[0].mxu1 %vm257_vm1, %v225_v6  ;;  %v6253_v12 = vld [vmem:[%s6217_s30 + $0x20] sm:$0xff]  ;;  %v6261_v14 = vld [vmem:[%s6217_s30 + $0x30] sm:$0xff]  ;;  %v6280_v16 = vld [vmem:[%s6217_s30 + $0x38] sm:$0xff] }
  0x17   : > { %5528 = vmatmul.mubr.msk.f32.vlgmr.msra.gmra.mrb[0].mxu0 %vm257_vm1, %v6228_v7  ;;  %5376 = vmatpush3.msk.msra.mxu1 %vm354_vm0, %v4559_v2  ;;  %7330 = vst [vmem:[#allocation3_spill] sm:$0xff] %v6253_v12  ;;  %v6256_v13 = vld [vmem:[%s6217_s30 + $0x39] sm:$0xff]  ;;  %7331 = vst [vmem:[#allocation4_spill] sm:$0xff] %v6261_v14  ;;  %v6264_v15 = vld [vmem:[%s6217_s30 + $0x49] sm:$0xff] }
  0x18   : > { %5330 = vmatprep.mubr.msk.f32.mxu1 %vm257_vm1, %v6231_v8  ;;  %5530 = vmatprep.mubr.msk.f32.mxu0 %vm257_vm1, %v6234_v9  ;;  %v6283_v17 = vld [vmem:[%s6217_s30 + $0x51] sm:$0xff]  ;;  %v6286_v18 = vld [vmem:[%s6217_s30 + $0x48] sm:$0xff]  ;;  %v6306_v22 = vld [vmem:[%s6217_s30 + $0x60] sm:$0xff] }
  0x19   : > { %5576 = vmatpush3.msk.msra.mxu0 %vm354_vm0, %v4791_v3  ;;  %5425 = vmatprep.subr.msk.mxu1 %vm354_vm0, %v6247_v11  ;;  %7332 = vst [vmem:[#allocation5_spill] sm:$0xff] %v6286_v18  ;;  %v6289_v19 = vld [vmem:[%s6217_s30 + $0x61] sm:$0xff]  ;;  %v6300_v20 = vld [vmem:[%s6217_s30 + $0x50] sm:$0xff]  ;;  %7334 = vst [vmem:[#allocation7_spill] sm:$0xff] %v6306_v22 }
  0x1a   : > { %5625 = vmatprep.subr.msk.mxu0 %vm354_vm0, %v6242_v10  ;;  %5331 = vmatmul.mubr.msk.f32.gmra.mrb[2].mxu1 %vm257_vm1, %v6253_v12  ;;  %7333 = vst [vmem:[#allocation6_spill] sm:$0xff] %v6300_v20  ;;  %v6303_v21 = vld [vmem:[%s6217_s30 + $0x69] sm:$0xff]  ;;  %v6309_v23 = vld [vmem:[%s6217_s30 + $0x79] sm:$0xff]  ;;  %v6323_v25 = vld [vmem:[%s6217_s30 + $0x81] sm:$0xff] }
  0x1b   : > { %5531 = vmatmul.mubr.msk.f32.gmra.mrb[2].mxu0 %vm257_vm1, %v6256_v13  ;;  %5333 = vmatprep.mubr.msk.f32.mxu1 %vm257_vm1, %v6261_v14  ;;  %v6320_v24 = vld [vmem:[%s6217_s30 + $0x68] sm:$0xff]  ;;  %v6326_v26 = vld [vmem:[%s6217_s30 + $0x78] sm:$0xff]  ;;  %v6340_v28 = vld [vmem:[%s6217_s30 + $0x80] sm:$0xff] }
  0x1c   : > { %5533 = vmatprep.mubr.msk.f32.mxu0 %vm257_vm1, %v6264_v15  ;;  %7335 = vst [vmem:[#allocation8_spill] sm:$0xff] %v6320_v24  ;;  %7336 = vst [vmem:[#allocation9_spill] sm:$0xff] %v6326_v26  ;;  %v6329_v27 = vld [vmem:[%s6217_s30 + $0x91] sm:$0xff]  ;;  %v6343_v29 = vld [vmem:[%s6217_s30 + $0x99] sm:$0xff] }
  0x1d   : > { %7337 = vst [vmem:[#allocation10_spill] sm:$0xff] %v6340_v28  ;;  %v6346_v30 = vld [vmem:[%s6217_s30 + $0x90] sm:$0xff]  ;;  %v6360_v32 = vld [vmem:[%s6217_s30 + $0x98] sm:$0xff]  ;;  %v6366_v34 = vld [vmem:[%s6217_s30 + $0xa8] sm:$0xff] }
  0x1e   : > { %5334 = vmatmul.mubr.msk.f32.gmra.mrb[4].mxu1 %vm257_vm1, %v6280_v16  ;;  %7338 = vst [vmem:[#allocation11_spill] sm:$0xff] %v6346_v30  ;;  %v6349_v31 = vld [vmem:[%s6217_s30 + $0xa9] sm:$0xff]  ;;  %7339 = vst [vmem:[#allocation12_spill] sm:$0xff] %v6360_v32  ;;  %v6363_v33 = vld [vmem:[%s6217_s30 + $0xb1] sm:$0xff] }
  0x1f   : > { %5534 = vmatmul.mubr.msk.f32.gmra.mrb[4].mxu0 %vm257_vm1, %v6283_v17  ;;  %5336 = vmatprep.mubr.msk.f32.mxu1 %vm257_vm1, %v6286_v18  ;;  %7340 = vst [vmem:[#allocation13_spill] sm:$0xff] %v6366_v34  ;;  %v6369_v35 = vld [vmem:[%s6217_s30 + $0xc1] sm:$0xff]  ;;  %v6380_v36 = vld [vmem:[%s6217_s30 + $0xb0] sm:$0xff]  ;;  %v6406_v42 = vld [vmem:[%s6217_s30 + $0xd8] sm:$0xff] }
  0x20   : > { %5536 = vmatprep.mubr.msk.f32.mxu0 %vm257_vm1, %v6289_v19  ;;  %7341 = vst [vmem:[#allocation14_spill] sm:$0xff] %v6380_v36  ;;  %v6383_v37 = vld [vmem:[%s6217_s30 + $0xc9] sm:$0xff]  ;;  %v6386_v38 = vld [vmem:[%s6217_s30 + $0xc0] sm:$0xff]  ;;  %v6409_v43 = vld [vmem:[%s6217_s30 + $0x32] sm:$0xff] }
  0x21   : > { %v6389_v39 = vld [vmem:[%s6217_s30 + $0x1a] sm:$0xff]  ;;  %v6400_v40 = vld [vmem:[%s6217_s30 + $0xc8] sm:$0xff]  ;;  %v6431_v47 = vld [vmem:[%s6217_s30 + $0xf0] sm:$0xff] }
  0x22   : > { %5337 = vmatmul.mubr.msk.f32.gmra.mrb[6].mxu1 %vm257_vm1, %v6300_v20  ;;  %7342 = vst [vmem:[#allocation15_spill] sm:$0xff] %v6400_v40  ;;  %v6403_v41 = vld [vmem:[%s6217_s30 + $0x22] sm:$0xff]  ;;  %v6428_v46 = vld [vmem:[%s6217_s30 + $0x3a] sm:$0xff]  ;;  %v6434_v48 = vld [vmem:[%s6217_s30 + $0x4a] sm:$0xff] }
  0x23   : > { %5537 = vmatmul.mubr.msk.f32.gmra.mrb[6].mxu0 %vm257_vm1, %v6303_v21  ;;  %5339 = vmatprep.mubr.msk.f32.mxu1 %vm257_vm1, %v6306_v22  ;;  %v6425_v45 = vld [vmem:[%s6217_s30 + $0xe0] sm:$0xff]  ;;  %v6449_v49 = vld [vmem:[%s6217_s30 + $0xf8] sm:$0xff]  ;;  %v6455_v51 = vld [vmem:[%s6217_s30 + $0x108] sm:$0xff] }
  0x24   : > { %5539 = vmatprep.mubr.msk.f32.mxu0 %vm257_vm1, %v6309_v23  ;;  %v6452_v50 = vld [vmem:[%s6217_s30 + $0x52] sm:$0xff]  ;;  %v6458_v52 = vld [vmem:[%s6217_s30 + $0x62] sm:$0xff]  ;;  %v6472_v54 = vld [vmem:[%s6217_s30 + $0x6a] sm:$0xff] }
  0x25   : > { %v6469_v53 = vld [vmem:[%s6217_s30 + $0x110] sm:$0xff]  ;;  %v6475_v55 = vld [vmem:[%s6217_s30 + $0x120] sm:$0xff]  ;;  %v6489_v57 = vld [vmem:[%s6217_s30 + $0x128] sm:$0xff] }
  0x26   : > { %5340 = vmatmul.mubr.msk.f32.gmra.mrb[8].mxu1 %vm257_vm1, %v6320_v24  ;;  %v6478_v56 = vld [vmem:[%s6217_s30 + $0x7a] sm:$0xff]  ;;  %v6492_v58 = vld [vmem:[%s6217_s30 + $0x82] sm:$0xff]  ;;  %v6498_v60 = vld [vmem:[%s6217_s30 + $0x92] sm:$0xff] }
  0x27   : > { %5540 = vmatmul.mubr.msk.f32.gmra.mrb[8].mxu0 %vm257_vm1, %v6323_v25  ;;  %5342 = vmatprep.mubr.msk.f32.mxu1 %vm257_vm1, %v6326_v26  ;;  %v6495_v59 = vld [vmem:[%s6217_s30 + $0x138] sm:$0xff]  ;;  %7343 = vst [vmem:[#allocation16_spill] sm:$0xff] %v6498_v60  ;;  %v6509_v61 = vld [vmem:[%s6217_s30 + $0x140] sm:$0xff]  ;;  %v6515_v63 = vld [vmem:[%s6217_s30 + $0x150] sm:$0xff] }
  0x28   : > { %5542 = vmatprep.mubr.msk.f32.mxu0 %vm257_vm1, %v6329_v27  ;;  %v6512_v62 = vld [vmem:[%s6217_s30 + $0x9a] sm:$0xff]  ;;  %v6518_v0 = vld [vmem:[%s6217_s30 + $0xaa] sm:$0xff]  ;;  %v6532_v3 = vld [vmem:[%s6217_s30 + $0xb2] sm:$0xff] }
  0x29   : > { %7344 = vst [vmem:[#allocation17_spill] sm:$0xff] %v6512_v62  ;;  %7345 = vst [vmem:[#allocation18_spill] sm:$0xff] %v6518_v0  ;;  %v6529_v2 = vld [vmem:[%s6217_s30 + $0x158] sm:$0xff]  ;;  %v6535_v4 = vld [vmem:[%s6217_s30 + $0x168] sm:$0xff] }
  0x2a   : > { %5343 = vmatmul.mubr.msk.f32.gmra.mrb[10].mxu1 %vm257_vm1, %v6340_v28  ;;  %7346 = vst [vmem:[#allocation19_spill] sm:$0xff] %v6529_v2  ;;  %7347 = vst [vmem:[#allocation20_spill] sm:$0xff] %v6532_v3  ;;  %v6538_v6 = vld [vmem:[%s6217_s30 + $0xc2] sm:$0xff]  ;;  %v6552_v12 = vld [vmem:[%s6217_s30 + $0xca] sm:$0xff] }
  0x2b   : > { %5543 = vmatmul.mubr.msk.f32.gmra.mrb[10].mxu0 %vm257_vm1, %v6343_v29  ;;  %5345 = vmatprep.mubr.msk.f32.mxu1 %vm257_vm1, %v6346_v30  ;;  %7348 = vst [vmem:[#allocation21_spill] sm:$0xff] %v6535_v4  ;;  %7349 = vst [vmem:[#allocation22_spill] sm:$0xff] %v6538_v6  ;;  %v615_v8 = vld [vmem:[%s6217_s30 + $0x1] sm:$0xff] }
  0x2c   : > { %5545 = vmatprep.mubr.msk.f32.mxu0 %vm257_vm1, %v6349_v31 }
  0x2e   : > { %5346 = vmatmul.mubr.msk.f32.gmra.mrb[12].mxu1 %vm257_vm1, %v6360_v32 }
  0x2f   : > { %5546 = vmatmul.mubr.msk.f32.gmra.mrb[12].mxu0 %vm257_vm1, %v6363_v33  ;;  %5348 = vmatprep.mubr.msk.f32.mxu1 %vm257_vm1, %v6366_v34 }
  0x30   : > { %5548 = vmatprep.mubr.msk.f32.mxu0 %vm257_vm1, %v6369_v35 }
  0x32   : > { %5349 = vmatmul.mubr.msk.f32.gmra.mrb[14].mxu1 %vm257_vm1, %v6380_v36 }
  0x33   : > { %5549 = vmatmul.mubr.msk.f32.gmra.mrb[14].mxu0 %vm257_vm1, %v6383_v37  ;;  %5351 = vmatprep.mubr.msk.f32.mxu1 %vm257_vm1, %v6386_v38 }
  0x34   : > { %5577 = vmatprep.mubr.msk.f32.mxu0 %vm257_vm1, %v6389_v39 }
  0x36   : > { %5352 = vmatmul.mubr.msk.f32.gmra.mrb[16].mxu1 %vm257_vm1, %v6400_v40 }
  0x37   : > { %5578 = vmatmul.mubr.msk.f32.vlgmr.msra.gmra.mrb[0].mxu0 %vm257_vm1, %v6403_v41  ;;  %5354 = vmatprep.mubr.msk.f32.mxu1 %vm257_vm1, %v6406_v42 }
  0x38   : > { %5580 = vmatprep.mubr.msk.f32.mxu0 %vm257_vm1, %v6409_v43  ;;  %5626 = vmatpush3.msk.msra.mxu0 %vm354_vm0, %v6242_v10  ;;  %v6549_v10 = vld [vmem:[%s6217_s30 + $0x170] sm:$0xff] }
  0x39   : > { %5675 = vmatprep.subr.msk.mxu0 %vm354_vm0, %v6418_v44  ;;  %7350 = vst [vmem:[#allocation23_spill] sm:$0xff] %v6549_v10 }
  0x3a   : > { %5355 = vmatmul.mubr.msk.f32.gmra.mrb[18].mxu1 %vm257_vm1, %v6425_v45 }
  0x3b   : > { %5581 = vmatmul.mubr.msk.f32.gmra.mrb[2].mxu0 %vm257_vm1, %v6428_v46  ;;  %5357 = vmatprep.mubr.msk.f32.mxu1 %vm257_vm1, %v6431_v47 }
  0x3c   : > { %5583 = vmatprep.mubr.msk.f32.mxu0 %vm257_vm1, %v6434_v48 }
  0x3e   : > { %5358 = vmatmul.mubr.msk.f32.gmra.mrb[20].mxu1 %vm257_vm1, %v6449_v49 }
  0x3f   : > { %5584 = vmatmul.mubr.msk.f32.gmra.mrb[4].mxu0 %vm257_vm1, %v6452_v50  ;;  %5360 = vmatprep.mubr.msk.f32.mxu1 %vm257_vm1, %v6455_v51 }
  0x40   : > { %5586 = vmatprep.mubr.msk.f32.mxu0 %vm257_vm1, %v6458_v52 }
  0x42   : > { %5361 = vmatmul.mubr.msk.f32.gmra.mrb[22].mxu1 %vm257_vm1, %v6469_v53 }
  0x43   : > { %5587 = vmatmul.mubr.msk.f32.gmra.mrb[6].mxu0 %vm257_vm1, %v6472_v54  ;;  %5363 = vmatprep.mubr.msk.f32.mxu1 %vm257_vm1, %v6475_v55 }
  0x44   : > { %5589 = vmatprep.mubr.msk.f32.mxu0 %vm257_vm1, %v6478_v56 }
  0x46   : > { %5364 = vmatmul.mubr.msk.f32.gmra.mrb[24].mxu1 %vm257_vm1, %v6489_v57 }
  0x47   : > { %5590 = vmatmul.mubr.msk.f32.gmra.mrb[8].mxu0 %vm257_vm1, %v6492_v58  ;;  %5366 = vmatprep.mubr.msk.f32.mxu1 %vm257_vm1, %v6495_v59 }
  0x48   : > { %5592 = vmatprep.mubr.msk.f32.mxu0 %vm257_vm1, %v6498_v60  ;;  %v6575_v60 = vld [vmem:[%s7274_s1 + $0xc] sm:$0xf] }
  0x4a   : > { %5367 = vmatmul.mubr.msk.f32.gmra.mrb[26].mxu1 %vm257_vm1, %v6509_v61 }
  0x4b   : > { %5593 = vmatmul.mubr.msk.f32.gmra.mrb[10].mxu0 %vm257_vm1, %v6512_v62  ;;  %5369 = vmatprep.mubr.msk.f32.mxu1 %vm257_vm1, %v6515_v63  ;;  %v6570_v62 = vld [vmem:[%s6217_s30 + $0xf2] sm:$0xff] }
  0x4c   : > { %5595 = vmatprep.mubr.msk.f32.mxu0 %vm257_vm1, %v6518_v0  ;;  %v6556_v0 = vld [vmem:[%s6217_s30 + $0xda] sm:$0xff] }
  0x4d   : > { %7351 = vst [vmem:[#allocation24_spill] sm:$0xff] %v6556_v0 }
  0x4e   : > { %5370 = vmatmul.mubr.msk.f32.gmra.mrb[28].mxu1 %vm257_vm1, %v6529_v2 }
  0x4f   : > { %5596 = vmatmul.mubr.msk.f32.gmra.mrb[12].mxu0 %vm257_vm1, %v6532_v3  ;;  %5372 = vmatprep.mubr.msk.f32.mxu1 %vm257_vm1, %v6535_v4  ;;  %v6567_v3 = vld [vmem:[%s6217_s30 + $0xe2] sm:$0xff] }
  0x50   : > { %5598 = vmatprep.mubr.msk.f32.mxu0 %vm257_vm1, %v6538_v6  ;;  %v616_v6 = vld [vmem:[%s6217_s30 + $0x9] sm:$0xff] }
  0x52   : > { %5373 = vmatmul.mubr.msk.f32.gmra.mrb[30].mxu1 %vm257_vm1, %v6549_v10 }
  0x53   : > { %5599 = vmatmul.mubr.msk.f32.gmra.mrb[14].mxu0 %vm257_vm1, %v6552_v12  ;;  %5377 = vmatprep.mubr.msk.f32.mxu1 %vm257_vm1, %v615_v8  ;;  %v6585_v8 = vld [vmem:[%s6217_s30 + $0xfa] sm:$0xff] }
  0x54   : > { %5601 = vmatprep.mubr.msk.f32.mxu0 %vm257_vm1, %v6556_v0  ;;  %v6590_v0 = vld [vmem:[%s6217_s30 + $0x10a] sm:$0xff] }
  0x56   : > { %5378 = vmatmul.mubr.msk.f32.vlgmr.msra.gmra.mrb[0].mxu1 %vm257_vm1, %v616_v6  ;;  %v6620_v6 = vld [vmem:[%s6217_s30 + $0x13a] sm:$0xff] }
  0x57   : > { %5602 = vmatmul.mubr.msk.f32.gmra.mrb[16].mxu0 %vm257_vm1, %v6567_v3  ;;  %5426 = vmatpush3.msk.msra.mxu1 %vm354_vm0, %v6247_v11  ;;  %v6606_v11 = vld [vmem:[%s6217_s30 + $0x122] sm:$0xff]  ;;  %7355 = vst [vmem:[#allocation28_spill] sm:$0xff] %v6620_v6 }
  0x58   : > { %5380 = vmatprep.mubr.msk.f32.mxu1 %vm257_vm1, %v6221_v5  ;;  %5604 = vmatprep.mubr.msk.f32.mxu0 %vm257_vm1, %v6570_v62  ;;  %v6603_v5 = vld [vmem:[%s6217_s30 + $0x112] sm:$0xff]  ;;  %7353 = vst [vmem:[#allocation26_spill] sm:$0xff] %v6606_v11 }
  0x59   : > { %5475 = vmatprep.subr.msk.mxu1 %vm354_vm0, %v6575_v60  ;;  %7352 = vst [vmem:[#allocation25_spill] sm:$0xff] %v6603_v5 }
  0x5a   : > { %5381 = vmatmul.mubr.msk.f32.gmra.mrb[2].mxu1 %vm257_vm1, %v6228_v7  ;;  %v6617_v7 = vld [vmem:[%s6217_s30 + $0x12a] sm:$0xff] }
  0x5b   : > { %5605 = vmatmul.mubr.msk.f32.gmra.mrb[18].mxu0 %vm257_vm1, %v6585_v8  ;;  %5383 = vmatprep.mubr.msk.f32.mxu1 %vm257_vm1, %v6234_v9  ;;  %7354 = vst [vmem:[#allocation27_spill] sm:$0xff] %v6617_v7 }
  0x5c   : > { %5607 = vmatprep.mubr.msk.f32.mxu0 %vm257_vm1, %v6590_v0 }
  0x5e   : > { %5384 = vmatmul.mubr.msk.f32.gmra.mrb[4].mxu1 %vm257_vm1, %v6256_v13 }
  0x5f   : > { %5608 = vmatmul.mubr.msk.f32.gmra.mrb[20].mxu0 %vm257_vm1, %v6603_v5  ;;  %5386 = vmatprep.mubr.msk.f32.mxu1 %vm257_vm1, %v6264_v15  ;;  %v6631_v5 = vld [vmem:[%s6217_s30 + $0x142] sm:$0xff] }
  0x60   : > { %5610 = vmatprep.mubr.msk.f32.mxu0 %vm257_vm1, %v6606_v11  ;;  %7356 = vst [vmem:[#allocation29_spill] sm:$0xff] %v6631_v5  ;;  %v6634_v11 = vld [vmem:[%s6217_s30 + $0x152] sm:$0xff] }
  0x61   : > { %7357 = vst [vmem:[#allocation30_spill] sm:$0xff] %v6634_v11 }
  0x62   : > { %5387 = vmatmul.mubr.msk.f32.gmra.mrb[6].mxu1 %vm257_vm1, %v6283_v17 }
  0x63   : > { %5611 = vmatmul.mubr.msk.f32.gmra.mrb[22].mxu0 %vm257_vm1, %v6617_v7  ;;  %5389 = vmatprep.mubr.msk.f32.mxu1 %vm257_vm1, %v6289_v19  ;;  %v6645_v7 = vld [vmem:[%s6217_s30 + $0x15a] sm:$0xff] }
  0x64   : > { %5613 = vmatprep.mubr.msk.f32.mxu0 %vm257_vm1, %v6620_v6  ;;  %7358 = vst [vmem:[#allocation31_spill] sm:$0xff] %v6645_v7  ;;  %v6648_v6 = vld [vmem:[%s6217_s30 + $0x16a] sm:$0xff] }
  0x66   : > { %5390 = vmatmul.mubr.msk.f32.gmra.mrb[8].mxu1 %vm257_vm1, %v6303_v21 }
  0x67   : > { %5614 = vmatmul.mubr.msk.f32.gmra.mrb[24].mxu0 %vm257_vm1, %v6631_v5  ;;  %5392 = vmatprep.mubr.msk.f32.mxu1 %vm257_vm1, %v6309_v23  ;;  %v6659_v5 = vld [vmem:[%s6217_s30 + $0x172] sm:$0xff] }
  0x68   : > { %5616 = vmatprep.mubr.msk.f32.mxu0 %vm257_vm1, %v6634_v11  ;;  %7359 = vst [vmem:[#allocation32_spill] sm:$0xff] %v6659_v5  ;;  %v6662_v11 = vld [vmem:[%s6217_s30 + $0x182] sm:$0xff] }
  0x69   : > { %7360 = vst [vmem:[#allocation33_spill] sm:$0xff] %v6662_v11 }
  0x6a   : > { %5393 = vmatmul.mubr.msk.f32.gmra.mrb[10].mxu1 %vm257_vm1, %v6323_v25 }
  0x6b   : > { %5617 = vmatmul.mubr.msk.f32.gmra.mrb[26].mxu0 %vm257_vm1, %v6645_v7  ;;  %5395 = vmatprep.mubr.msk.f32.mxu1 %vm257_vm1, %v6329_v27  ;;  %v6673_v7 = vld [vmem:[%s6217_s30 + $0x18a] sm:$0xff] }
  0x6c   : > { %5619 = vmatprep.mubr.msk.f32.mxu0 %vm257_vm1, %v6648_v6  ;;  %7361 = vst [vmem:[#allocation34_spill] sm:$0xff] %v6673_v7 }
  0x6e   : > { %5396 = vmatmul.mubr.msk.f32.gmra.mrb[12].mxu1 %vm257_vm1, %v6343_v29 }
  0x6f   : > { %5620 = vmatmul.mubr.msk.f32.gmra.mrb[28].mxu0 %vm257_vm1, %v6659_v5  ;;  %5398 = vmatprep.mubr.msk.f32.mxu1 %vm257_vm1, %v6349_v31  ;;  %v6684_v5 = vld [vmem:[%s6217_s30 + $0xd9] sm:$0xff] }
  0x70   : > { %5622 = vmatprep.mubr.msk.f32.mxu0 %vm257_vm1, %v6662_v11  ;;  %v6700_v11 = vld [vmem:[%s6217_s30 + $0xe1] sm:$0xff] }
  0x72   : > { %5399 = vmatmul.mubr.msk.f32.gmra.mrb[14].mxu1 %vm257_vm1, %v6363_v33 }
  0x73   : > { %5623 = vmatmul.mubr.msk.f32.gmra.mrb[30].mxu0 %vm257_vm1, %v6673_v7  ;;  %5401 = vmatprep.mubr.msk.f32.mxu1 %vm257_vm1, %v6369_v35  ;;  %v6693_v7 = vld [vmem:[%s7274_s1 + $0x20] sm:$0xf] }
  0x74   : > { %5627 = vmatprep.mubr.msk.f32.mxu0 %vm257_vm1, %v6261_v14  ;;  %v6703_v14 = vld [vmem:[%s6217_s30 + $0xf1] sm:$0xff] }
  0x76   : > { %5402 = vmatmul.mubr.msk.f32.gmra.mrb[16].mxu1 %vm257_vm1, %v6383_v37 }
  0x77   : > { %5628 = vmatmul.mubr.msk.f32.vlgmr.msra.gmra.mrb[0].mxu0 %vm257_vm1, %v6280_v16  ;;  %5404 = vmatprep.mubr.msk.f32.mxu1 %vm257_vm1, %v6684_v5 }
  0x78   : > { %5630 = vmatprep.mubr.msk.f32.mxu0 %vm257_vm1, %v6286_v18  ;;  %5676 = vmatpush3.msk.msra.mxu0 %vm354_vm0, %v6418_v44  ;;  %v6718_v18 = vld [vmem:[%s6217_s30 + $0xf9] sm:$0xff]  ;;  %v6721_v44 = vld [vmem:[%s6217_s30 + $0x109] sm:$0xff] }
  0x79   : > { %5725 = vmatprep.subr.msk.mxu0 %vm354_vm0, %v6693_v7 }
  0x7a   : > { %5405 = vmatmul.mubr.msk.f32.gmra.mrb[18].mxu1 %vm257_vm1, %v6700_v11 }
  0x7b   : > { %5631 = vmatmul.mubr.msk.f32.gmra.mrb[2].mxu0 %vm257_vm1, %v6300_v20  ;;  %5407 = vmatprep.mubr.msk.f32.mxu1 %vm257_vm1, %v6703_v14  ;;  %v6732_v20 = vld [vmem:[%s6217_s30 + $0x111] sm:$0xff] }
  0x7c   : > { %5633 = vmatprep.mubr.msk.f32.mxu0 %vm257_vm1, %v6306_v22  ;;  %v6735_v22 = vld [vmem:[%s6217_s30 + $0x121] sm:$0xff] }
  0x7e   : > { %5408 = vmatmul.mubr.msk.f32.gmra.mrb[20].mxu1 %vm257_vm1, %v6718_v18 }
  0x7f   : > { %5634 = vmatmul.mubr.msk.f32.gmra.mrb[4].mxu0 %vm257_vm1, %v6320_v24  ;;  %5410 = vmatprep.mubr.msk.f32.mxu1 %vm257_vm1, %v6721_v44  ;;  %v6746_v24 = vld [vmem:[%s6217_s30 + $0x129] sm:$0xff] }
  0x80   : > { %5636 = vmatprep.mubr.msk.f32.mxu0 %vm257_vm1, %v6326_v26  ;;  %v6749_v26 = vld [vmem:[%s6217_s30 + $0x139] sm:$0xff] }
  0x82   : > { %5411 = vmatmul.mubr.msk.f32.gmra.mrb[22].mxu1 %vm257_vm1, %v6732_v20 }
  0x83   : > { %5637 = vmatmul.mubr.msk.f32.gmra.mrb[6].mxu0 %vm257_vm1, %v6340_v28  ;;  %5413 = vmatprep.mubr.msk.f32.mxu1 %vm257_vm1, %v6735_v22  ;;  %v6760_v28 = vld [vmem:[%s6217_s30 + $0x141] sm:$0xff] }
  0x84   : > { %5639 = vmatprep.mubr.msk.f32.mxu0 %vm257_vm1, %v6346_v30  ;;  %v6763_v30 = vld [vmem:[%s6217_s30 + $0x151] sm:$0xff] }
  0x85   : > { %7362 = vst [vmem:[#allocation35_spill] sm:$0xff] %v6763_v30 }
  0x86   : > { %5414 = vmatmul.mubr.msk.f32.gmra.mrb[24].mxu1 %vm257_vm1, %v6746_v24 }
  0x87   : > { %5640 = vmatmul.mubr.msk.f32.gmra.mrb[8].mxu0 %vm257_vm1, %v6360_v32  ;;  %5416 = vmatprep.mubr.msk.f32.mxu1 %vm257_vm1, %v6749_v26  ;;  %v6774_v32 = vld [vmem:[%s6217_s30 + $0x159] sm:$0xff] }
  0x88   : > { %5642 = vmatprep.mubr.msk.f32.mxu0 %vm257_vm1, %v6366_v34  ;;  %v6777_v34 = vld [vmem:[%s6217_s30 + $0x169] sm:$0xff] }
  0x8a   : > { %5417 = vmatmul.mubr.msk.f32.gmra.mrb[26].mxu1 %vm257_vm1, %v6760_v28 }
  0x8b   : > { %5643 = vmatmul.mubr.msk.f32.gmra.mrb[10].mxu0 %vm257_vm1, %v6380_v36  ;;  %5419 = vmatprep.mubr.msk.f32.mxu1 %vm257_vm1, %v6763_v30  ;;  %v6788_v36 = vld [vmem:[%s6217_s30 + $0x171] sm:$0xff]  ;;  %v1069_v30 = vld [vmem:[%s6217_s30 + $0x2] sm:$0xff] }
  0x8c   : > { %5645 = vmatprep.mubr.msk.f32.mxu0 %vm257_vm1, %v6386_v38 }
  0x8e   : > { %5420 = vmatmul.mubr.msk.f32.gmra.mrb[28].mxu1 %vm257_vm1, %v6774_v32 }
  0x8f   : > { %5646 = vmatmul.mubr.msk.f32.gmra.mrb[12].mxu0 %vm257_vm1, %v6400_v40  ;;  %5422 = vmatprep.mubr.msk.f32.mxu1 %vm257_vm1, %v6777_v34  ;;  %v1070_v40 = vld [vmem:[%s6217_s30 + $0xa] sm:$0xff] }
  0x90   : > { %5648 = vmatprep.mubr.msk.f32.mxu0 %vm257_vm1, %v6406_v42 }
  0x92   : > { %5423 = vmatmul.mubr.msk.f32.gmra.mrb[30].mxu1 %vm257_vm1, %v6788_v36 }
  0x93   : > { %5649 = vmatmul.mubr.msk.f32.gmra.mrb[14].mxu0 %vm257_vm1, %v6425_v45  ;;  %5427 = vmatprep.mubr.msk.f32.mxu1 %vm257_vm1, %v1069_v30  ;;  %v6843_v30 = vld [vmem:[%s6217_s30 + $0x180] sm:$0xff] }
  0x94   : > { %5651 = vmatprep.mubr.msk.f32.mxu0 %vm257_vm1, %v6431_v47  ;;  %7363 = vst [vmem:[#allocation36_spill] sm:$0xff] %v6843_v30 }
  0x96   : > { %5428 = vmatmul.mubr.msk.f32.vlgmr.msra.gmra.mrb[0].mxu1 %vm257_vm1, %v1070_v40  ;;  %v6854_v40 = vld [vmem:[%s6217_s30 + $0x188] sm:$0xff] }
  0x97   : > { %5652 = vmatmul.mubr.msk.f32.gmra.mrb[16].mxu0 %vm257_vm1, %v6449_v49  ;;  %5476 = vmatpush3.msk.msra.mxu1 %vm354_vm0, %v6575_v60  ;;  %v7366_v60 = vld [vmem:[#allocation17_spill] sm:$0xff] }
  0x98   : > { %5430 = vmatprep.mubr.msk.f32.mxu1 %vm257_vm1, %v6389_v39  ;;  %5654 = vmatprep.mubr.msk.f32.mxu0 %vm257_vm1, %v6455_v51  ;;  %v7364_v39 = vld [vmem:[#allocation16_spill] sm:$0xff] }
  0x99   : > { %5775 = vmatprep.subr.msk.mxu1 %vm354_vm0, %v6195_v1  ;;  %7365 = vst [vmem:[#allocation16_spill] sm:$0xff] %v6854_v40 }
  0x9a   : > { %5431 = vmatmul.mubr.msk.f32.gmra.mrb[2].mxu1 %vm257_vm1, %v6403_v41  ;;  %v4855_v41 = vld [vmem:[%s6217_s30 + $0x198] sm:$0xff] }
  0x9b   : > { %5655 = vmatmul.mubr.msk.f32.gmra.mrb[18].mxu0 %vm257_vm1, %v6469_v53  ;;  %5433 = vmatprep.mubr.msk.f32.mxu1 %vm257_vm1, %v6409_v43 }
  0x9c   : > { %5657 = vmatprep.mubr.msk.f32.mxu0 %vm257_vm1, %v6475_v55 }
  0x9e   : > { %5434 = vmatmul.mubr.msk.f32.gmra.mrb[4].mxu1 %vm257_vm1, %v6428_v46 }
  0x9f   : > { %5658 = vmatmul.mubr.msk.f32.gmra.mrb[20].mxu0 %vm257_vm1, %v6489_v57  ;;  %5436 = vmatprep.mubr.msk.f32.mxu1 %vm257_vm1, %v6434_v48 }
  0xa0   : > { %5660 = vmatprep.mubr.msk.f32.mxu0 %vm257_vm1, %v6495_v59 }
  0xa2   : > { %5437 = vmatmul.mubr.msk.f32.gmra.mrb[6].mxu1 %vm257_vm1, %v6452_v50 }
  0xa3   : > { %5661 = vmatmul.mubr.msk.f32.gmra.mrb[22].mxu0 %vm257_vm1, %v6509_v61  ;;  %5439 = vmatprep.mubr.msk.f32.mxu1 %vm257_vm1, %v6458_v52 }
  0xa4   : > { %5663 = vmatprep.mubr.msk.f32.mxu0 %vm257_vm1, %v6515_v63 }
  0xa6   : > { %5440 = vmatmul.mubr.msk.f32.gmra.mrb[8].mxu1 %vm257_vm1, %v6472_v54 }
  0xa7   : > { %5664 = vmatmul.mubr.msk.f32.gmra.mrb[24].mxu0 %vm257_vm1, %v6529_v2  ;;  %5442 = vmatprep.mubr.msk.f32.mxu1 %vm257_vm1, %v6478_v56  ;;  %v7368_v2 = vld [vmem:[#allocation20_spill] sm:$0xff] }
  0xa8   : > { %5666 = vmatprep.mubr.msk.f32.mxu0 %vm257_vm1, %v6535_v4  ;;  %v7367_v4 = vld [vmem:[#allocation18_spill] sm:$0xff] }
  0xaa   : > { %5443 = vmatmul.mubr.msk.f32.gmra.mrb[10].mxu1 %vm257_vm1, %v6492_v58 }
  0xab   : > { %5667 = vmatmul.mubr.msk.f32.gmra.mrb[26].mxu0 %vm257_vm1, %v6549_v10  ;;  %5445 = vmatprep.mubr.msk.f32.mxu1 %vm257_vm1, %v7364_v39  ;;  %v4856_v10 = vld [vmem:[%s6217_s30 + $0x1a0] sm:$0xff] }
  0xac   : > { %5669 = vmatprep.mubr.msk.f32.mxu0 %vm257_vm1, %v6843_v30  ;;  %v7369_v30 = vld [vmem:[#allocation22_spill] sm:$0xff] }
  0xae   : > { %5446 = vmatmul.mubr.msk.f32.gmra.mrb[12].mxu1 %vm257_vm1, %v7366_v60 }
  0xaf   : > { %5670 = vmatmul.mubr.msk.f32.gmra.mrb[28].mxu0 %vm257_vm1, %v6854_v40  ;;  %5448 = vmatprep.mubr.msk.f32.mxu1 %vm257_vm1, %v7367_v4  ;;  %v7370_v40 = vld [vmem:[#allocation24_spill] sm:$0xff] }
  0xb0   : > { %5672 = vmatprep.mubr.msk.f32.mxu0 %vm257_vm1, %v4855_v41  ;;  %v7389_v41 = vld [vmem:[#allocation11_spill] sm:$0xff] }
  0xb2   : > { %5449 = vmatmul.mubr.msk.f32.gmra.mrb[14].mxu1 %vm257_vm1, %v7368_v2 }
  0xb3   : > { %5673 = vmatmul.mubr.msk.f32.gmra.mrb[30].mxu0 %vm257_vm1, %v4856_v10  ;;  %5451 = vmatprep.mubr.msk.f32.mxu1 %vm257_vm1, %v7369_v30  ;;  %v7387_v10 = vld [vmem:[#allocation35_spill] sm:$0xff] }
  0xb4   : > { %5677 = vmatprep.mubr.msk.f32.mxu0 %vm257_vm1, %v6234_v9  ;;  %v7371_v9 = vld [vmem:[#allocation25_spill] sm:$0xff] }
  0xb6   : > { %5452 = vmatmul.mubr.msk.f32.gmra.mrb[16].mxu1 %vm257_vm1, %v6552_v12 }
  0xb7   : > { %5678 = vmatmul.mubr.msk.f32.vlgmr.msra.gmra.mrb[0].mxu0 %vm257_vm1, %v6256_v13  ;;  %5454 = vmatprep.mubr.msk.f32.mxu1 %vm257_vm1, %v7370_v40  ;;  %v7372_v13 = vld [vmem:[#allocation26_spill] sm:$0xff] }
  0xb8   : > { %5680 = vmatprep.mubr.msk.f32.mxu0 %vm257_vm1, %v6264_v15  ;;  %5726 = vmatpush3.msk.msra.mxu0 %vm354_vm0, %v6693_v7  ;;  %v7373_v15 = vld [vmem:[#allocation27_spill] sm:$0xff]  ;;  %v7388_v7 = vld [vmem:[#allocation10_spill] sm:$0xff] }
  0xba   : > { %5455 = vmatmul.mubr.msk.f32.gmra.mrb[18].mxu1 %vm257_vm1, %v6567_v3 }
  0xbb   : > { %5681 = vmatmul.mubr.msk.f32.gmra.mrb[2].mxu0 %vm257_vm1, %v6283_v17  ;;  %5457 = vmatprep.mubr.msk.f32.mxu1 %vm257_vm1, %v6570_v62  ;;  %v7374_v17 = vld [vmem:[#allocation28_spill] sm:$0xff] }
  0xbc   : > { %5683 = vmatprep.mubr.msk.f32.mxu0 %vm257_vm1, %v6289_v19  ;;  %v7375_v19 = vld [vmem:[#allocation29_spill] sm:$0xff] }
  0xbe   : > { %5458 = vmatmul.mubr.msk.f32.gmra.mrb[20].mxu1 %vm257_vm1, %v6585_v8 }
  0xbf   : > { %5684 = vmatmul.mubr.msk.f32.gmra.mrb[4].mxu0 %vm257_vm1, %v6303_v21  ;;  %5460 = vmatprep.mubr.msk.f32.mxu1 %vm257_vm1, %v6590_v0  ;;  %v7376_v21 = vld [vmem:[#allocation30_spill] sm:$0xff] }
  0xc0   : > { %5686 = vmatprep.mubr.msk.f32.mxu0 %vm257_vm1, %v6309_v23  ;;  %v7377_v23 = vld [vmem:[#allocation31_spill] sm:$0xff] }
  0xc2   : > { %5461 = vmatmul.mubr.msk.f32.gmra.mrb[22].mxu1 %vm257_vm1, %v7371_v9 }
  0xc3   : > { %5687 = vmatmul.mubr.msk.f32.gmra.mrb[6].mxu0 %vm257_vm1, %v6323_v25  ;;  %5463 = vmatprep.mubr.msk.f32.mxu1 %vm257_vm1, %v7372_v13  ;;  %v7378_v25 = vld [vmem:[#allocation32_spill] sm:$0xff] }
  0xc4   : > { %5689 = vmatprep.mubr.msk.f32.mxu0 %vm257_vm1, %v6329_v27  ;;  %v7379_v27 = vld [vmem:[#allocation2_spill] sm:$0xff] }
  0xc6   : > { %5464 = vmatmul.mubr.msk.f32.gmra.mrb[24].mxu1 %vm257_vm1, %v7373_v15 }
  0xc7   : > { %5690 = vmatmul.mubr.msk.f32.gmra.mrb[8].mxu0 %vm257_vm1, %v6343_v29  ;;  %5466 = vmatprep.mubr.msk.f32.mxu1 %vm257_vm1, %v7374_v17  ;;  %v7380_v29 = vld [vmem:[#allocation3_spill] sm:$0xff] }
  0xc8   : > { %5692 = vmatprep.mubr.msk.f32.mxu0 %vm257_vm1, %v6349_v31  ;;  %v7381_v31 = vld [vmem:[#allocation4_spill] sm:$0xff] }
  0xca   : > { %5467 = vmatmul.mubr.msk.f32.gmra.mrb[26].mxu1 %vm257_vm1, %v7375_v19 }
  0xcb   : > { %5693 = vmatmul.mubr.msk.f32.gmra.mrb[10].mxu0 %vm257_vm1, %v6363_v33  ;;  %5469 = vmatprep.mubr.msk.f32.mxu1 %vm257_vm1, %v7376_v21  ;;  %v7382_v33 = vld [vmem:[#allocation5_spill] sm:$0xff] }
  0xcc   : > { %5695 = vmatprep.mubr.msk.f32.mxu0 %vm257_vm1, %v6369_v35  ;;  %v7384_v35 = vld [vmem:[#allocation7_spill] sm:$0xff] }
  0xce   : > { %5470 = vmatmul.mubr.msk.f32.gmra.mrb[28].mxu1 %vm257_vm1, %v7377_v23 }
  0xcf   : > { %5696 = vmatmul.mubr.msk.f32.gmra.mrb[12].mxu0 %vm257_vm1, %v6383_v37  ;;  %5472 = vmatprep.mubr.msk.f32.mxu1 %vm257_vm1, %v6648_v6  ;;  %v7386_v37 = vld [vmem:[#allocation9_spill] sm:$0xff] }
  0xd0   : > { %5698 = vmatprep.mubr.msk.f32.mxu0 %vm257_vm1, %v6684_v5 }
  0xd2   : > { %5473 = vmatmul.mubr.msk.f32.gmra.mrb[30].mxu1 %vm257_vm1, %v7378_v25 }
  0xd3   : > { %5699 = vmatmul.mubr.msk.f32.gmra.mrb[14].mxu0 %vm257_vm1, %v6700_v11  ;;  %5477 = vmatprep.mubr.msk.f32.mxu1 %vm257_vm1, %v7379_v27  ;;  %v6981_v27 = vld [vmem:[%s6217_s30 + $0x181] sm:$0xff] }
  0xd4   : > { %5701 = vmatprep.mubr.msk.f32.mxu0 %vm257_vm1, %v6703_v14 }
  0xd6   : > { %5478 = vmatmul.mubr.msk.f32.vlgmr.msra.gmra.mrb[0].mxu1 %vm257_vm1, %v7380_v29  ;;  %v7390_v29 = vld [vmem:[#allocation12_spill] sm:$0xff] }
  0xd7   : > { %5702 = vmatmul.mubr.msk.f32.gmra.mrb[16].mxu0 %vm257_vm1, %v6718_v18  ;;  %5776 = vmatpush3.msk.msra.mxu1 %vm354_vm0, %v6195_v1  ;;  %v7383_v1 = vld [vmem:[#allocation6_spill] sm:$0xff] }
  0xd8   : > { %5480 = vmatprep.mubr.msk.f32.mxu1 %vm257_vm1, %v7381_v31  ;;  %5704 = vmatprep.mubr.msk.f32.mxu0 %vm257_vm1, %v6721_v44  ;;  %v7391_v31 = vld [vmem:[#allocation13_spill] sm:$0xff] }
  0xda   : > { %5481 = vmatmul.mubr.msk.f32.gmra.mrb[2].mxu1 %vm257_vm1, %v6280_v16  ;;  %v7385_v16 = vld [vmem:[#allocation8_spill] sm:$0xff] }
  0xdb   : > { %5705 = vmatmul.mubr.msk.f32.gmra.mrb[18].mxu0 %vm257_vm1, %v6732_v20  ;;  %5483 = vmatprep.mubr.msk.f32.mxu1 %vm257_vm1, %v7382_v33  ;;  %v6992_v33 = vld [vmem:[%s6217_s30 + $0x189] sm:$0xff] }
  0xdc   : > { %5707 = vmatprep.mubr.msk.f32.mxu0 %vm257_vm1, %v6735_v22 }
  0xde   : > { %5484 = vmatmul.mubr.msk.f32.gmra.mrb[4].mxu1 %vm257_vm1, %v7383_v1  ;;  %v4921_v1 = vld [vmem:[%s6217_s30 + $0x199] sm:$0xff] }
  0xdf   : > { %5708 = vmatmul.mubr.msk.f32.gmra.mrb[20].mxu0 %vm257_vm1, %v6746_v24  ;;  %5486 = vmatprep.mubr.msk.f32.mxu1 %vm257_vm1, %v7384_v35  ;;  %v7392_v35 = vld [vmem:[#allocation14_spill] sm:$0xff] }
  0xe0   : > { %5710 = vmatprep.mubr.msk.f32.mxu0 %vm257_vm1, %v6749_v26 }
  0xe2   : > { %5487 = vmatmul.mubr.msk.f32.gmra.mrb[6].mxu1 %vm257_vm1, %v7385_v16  ;;  %v4922_v16 = vld [vmem:[%s6217_s30 + $0x1a1] sm:$0xff] }
  0xe3   : > { %5711 = vmatmul.mubr.msk.f32.gmra.mrb[22].mxu0 %vm257_vm1, %v6760_v28  ;;  %5489 = vmatprep.mubr.msk.f32.mxu1 %vm257_vm1, %v7386_v37  ;;  %v7393_v37 = vld [vmem:[#allocation15_spill] sm:$0xff] }
  0xe4   : > { %5713 = vmatprep.mubr.msk.f32.mxu0 %vm257_vm1, %v7387_v10 }
  0xe6   : > { %5490 = vmatmul.mubr.msk.f32.gmra.mrb[8].mxu1 %vm257_vm1, %v7388_v7 }
  0xe7   : > { %5714 = vmatmul.mubr.msk.f32.gmra.mrb[24].mxu0 %vm257_vm1, %v6774_v32  ;;  %5492 = vmatprep.mubr.msk.f32.mxu1 %vm257_vm1, %v7389_v41 }
  0xe8   : > { %5716 = vmatprep.mubr.msk.f32.mxu0 %vm257_vm1, %v6777_v34 }
  0xea   : > { %5493 = vmatmul.mubr.msk.f32.gmra.mrb[10].mxu1 %vm257_vm1, %v7390_v29 }
  0xeb   : > { %5717 = vmatmul.mubr.msk.f32.gmra.mrb[26].mxu0 %vm257_vm1, %v6788_v36  ;;  %5495 = vmatprep.mubr.msk.f32.mxu1 %vm257_vm1, %v7391_v31 }
  0xec   : > { %5719 = vmatprep.mubr.msk.f32.mxu0 %vm257_vm1, %v6981_v27 }
  0xee   : > { %5496 = vmatmul.mubr.msk.f32.gmra.mrb[12].mxu1 %vm257_vm1, %v7392_v35 }
  0xef   : > { %5720 = vmatmul.mubr.msk.f32.gmra.mrb[28].mxu0 %vm257_vm1, %v6992_v33  ;;  %5498 = vmatprep.mubr.msk.f32.mxu1 %vm257_vm1, %v6386_v38  ;;  %v7394_v38 = vld [vmem:[#allocation19_spill] sm:$0xff] }
  0xf0   : > { %5722 = vmatprep.mubr.msk.f32.mxu0 %vm257_vm1, %v4921_v1 }
  0xf2   : > { %5499 = vmatmul.mubr.msk.f32.gmra.mrb[14].mxu1 %vm257_vm1, %v7393_v37 }
  0xf3   : > { %5723 = vmatmul.mubr.msk.f32.gmra.mrb[30].mxu0 %vm257_vm1, %v4922_v16  ;;  %5501 = vmatprep.mubr.msk.f32.mxu1 %vm257_vm1, %v6406_v42  ;;  %v7395_v42 = vld [vmem:[#allocation21_spill] sm:$0xff] }
  0xf4   : > { %5727 = vmatprep.mubr.msk.f32.mxu0 %vm257_vm1, %v6409_v43  ;;  %v7396_v43 = vld [vmem:[#allocation23_spill] sm:$0xff] }
  0xf6   : > { %5502 = vmatmul.mubr.msk.f32.gmra.mrb[16].mxu1 %vm257_vm1, %v6425_v45  ;;  %v7397_v45 = vld [vmem:[#allocation36_spill] sm:$0xff] }
  0xf7   : > { %5728 = vmatmul.mubr.msk.f32.vlgmr.msra.gmra.mrb[0].mxu0 %vm257_vm1, %v6428_v46  ;;  %5504 = vmatprep.mubr.msk.f32.mxu1 %vm257_vm1, %v6431_v47  ;;  %v7398_v46 = vld [vmem:[#allocation16_spill] sm:$0xff] }
  0xf8   : > { %5730 = vmatprep.mubr.msk.f32.mxu0 %vm257_vm1, %v6434_v48 }
  0xfa   : > { %5505 = vmatmul.mubr.msk.f32.gmra.mrb[18].mxu1 %vm257_vm1, %v6449_v49 }
  0xfb   : > { %5731 = vmatmul.mubr.msk.f32.gmra.mrb[2].mxu0 %vm257_vm1, %v6452_v50  ;;  %5507 = vmatprep.mubr.msk.f32.mxu1 %vm257_vm1, %v6455_v51 }
  0xfc   : > { %5733 = vmatprep.mubr.msk.f32.mxu0 %vm257_vm1, %v6458_v52 }
  0xfe   : > { %5508 = vmatmul.mubr.msk.f32.gmra.mrb[20].mxu1 %vm257_vm1, %v6469_v53 }
  0xff   : > { %5734 = vmatmul.mubr.msk.f32.gmra.mrb[4].mxu0 %vm257_vm1, %v6472_v54  ;;  %5510 = vmatprep.mubr.msk.f32.mxu1 %vm257_vm1, %v6475_v55 }
 0x100   : > { %5736 = vmatprep.mubr.msk.f32.mxu0 %vm257_vm1, %v6478_v56 }
 0x102   : > { %5511 = vmatmul.mubr.msk.f32.gmra.mrb[22].mxu1 %vm257_vm1, %v6489_v57  ;;  %v7149_v57 = vld [vmem:[%s7275_s2] ss:$0 sm:$0xff] }
 0x103   : > { %5737 = vmatmul.mubr.msk.f32.gmra.mrb[6].mxu0 %vm257_vm1, %v6492_v58  ;;  %5513 = vmatprep.mubr.msk.f32.mxu1 %vm257_vm1, %v6495_v59 }
 0x104   : > { %5739 = vmatprep.mubr.msk.f32.mxu0 %vm257_vm1, %v7364_v39 }
 0x106   : > { %5514 = vmatmul.mubr.msk.f32.gmra.mrb[24].mxu1 %vm257_vm1, %v6509_v61  ;;  %v7154_v61 = vld [vmem:[%s7276_s3] ss:$0 sm:$0xff] }
 0x107   : > { %5740 = vmatmul.mubr.msk.f32.gmra.mrb[8].mxu0 %vm257_vm1, %v7366_v60  ;;  %5516 = vmatprep.mubr.msk.f32.mxu1 %vm257_vm1, %v6515_v63 }
 0x108   : > { %5742 = vmatprep.mubr.msk.f32.mxu0 %vm257_vm1, %v7367_v4 }
 0x10a   : > { %5517 = vmatmul.mubr.msk.f32.gmra.mrb[26].mxu1 %vm257_vm1, %v7394_v38 }
 0x10b   : > { %5743 = vmatmul.mubr.msk.f32.gmra.mrb[10].mxu0 %vm257_vm1, %v7368_v2  ;;  %5519 = vmatprep.mubr.msk.f32.mxu1 %vm257_vm1, %v7395_v42 }
 0x10c   : > { %5745 = vmatprep.mubr.msk.f32.mxu0 %vm257_vm1, %v7369_v30 }
 0x10e   : > { %5520 = vmatmul.mubr.msk.f32.gmra.mrb[28].mxu1 %vm257_vm1, %v7396_v43 }
 0x10f   : > { %5746 = vmatmul.mubr.msk.f32.gmra.mrb[12].mxu0 %vm257_vm1, %v6552_v12  ;;  %5522 = vmatprep.mubr.msk.f32.mxu1 %vm257_vm1, %v7397_v45  ;;  %v7399_v12 = vld [vmem:[#allocation33_spill] sm:$0xff] }
 0x110   : > { %5748 = vmatprep.mubr.msk.f32.mxu0 %vm257_vm1, %v7370_v40 }
 0x112   : > { %5523 = vmatmul.mubr.msk.f32.gmra.mrb[30].mxu1 %vm257_vm1, %v7398_v46 }
 0x113   : > { %5749 = vmatmul.mubr.msk.f32.gmra.mrb[14].mxu0 %vm257_vm1, %v6567_v3  ;;  %5551 = vmatprep.mubr.msk.f32.mxu1 %vm257_vm1, %v6684_v5 }
 0x114   : > { %5751 = vmatprep.mubr.msk.f32.mxu0 %vm257_vm1, %v6570_v62 }
 0x116   : > { %5552 = vmatmul.mubr.msk.f32.vlgmr.msra.gmra.mrb[16].mxu1 %vm257_vm1, %v6700_v11 }
 0x117   : > { %5752 = vmatmul.mubr.msk.f32.gmra.mrb[16].mxu0 %vm257_vm1, %v6585_v8  ;;  %5554 = vmatprep.mubr.msk.f32.mxu1 %vm257_vm1, %v6703_v14  ;;  %v4987_v14 = vld [vmem:[%s6217_s30 + $0x19a] sm:$0xff] }
 0x118   : > { %5754 = vmatprep.mubr.msk.f32.mxu0 %vm257_vm1, %v6590_v0 }
 0x11a   : > { %5555 = vmatmul.mubr.msk.f32.gmra.mrb[18].mxu1 %vm257_vm1, %v6718_v18  ;;  %v7400_v18 = vld [vmem:[#allocation34_spill] sm:$0xff] }
 0x11b   : > { %5755 = vmatmul.mubr.msk.f32.gmra.mrb[18].mxu0 %vm257_vm1, %v7371_v9  ;;  %5557 = vmatprep.mubr.msk.f32.mxu1 %vm257_vm1, %v6721_v44 }
 0x11c   : > { %5757 = vmatprep.mubr.msk.f32.mxu0 %vm257_vm1, %v7372_v13 }
 0x11e   : > { %5558 = vmatmul.mubr.msk.f32.gmra.mrb[20].mxu1 %vm257_vm1, %v6732_v20  ;;  %v4988_v20 = vld [vmem:[%s6217_s30 + $0x1a2] sm:$0xff] }
 0x11f   : > { %5758 = vmatmul.mubr.msk.f32.gmra.mrb[20].mxu0 %vm257_vm1, %v7373_v15  ;;  %5560 = vmatprep.mubr.msk.f32.mxu1 %vm257_vm1, %v6735_v22 }
 0x120   : > { %5760 = vmatprep.mubr.msk.f32.mxu0 %vm257_vm1, %v7374_v17 }
 0x122   : > { %5561 = vmatmul.mubr.msk.f32.gmra.mrb[22].mxu1 %vm257_vm1, %v6746_v24 }
 0x123   : > { %5761 = vmatmul.mubr.msk.f32.gmra.mrb[22].mxu0 %vm257_vm1, %v7375_v19  ;;  %5563 = vmatprep.mubr.msk.f32.mxu1 %vm257_vm1, %v6749_v26 }
 0x124   : > { %5763 = vmatprep.mubr.msk.f32.mxu0 %vm257_vm1, %v7376_v21 }
 0x126   : > { %5564 = vmatmul.mubr.msk.f32.gmra.mrb[24].mxu1 %vm257_vm1, %v6760_v28 }
 0x127   : > { %5764 = vmatmul.mubr.msk.f32.gmra.mrb[24].mxu0 %vm257_vm1, %v7377_v23  ;;  %5566 = vmatprep.mubr.msk.f32.mxu1 %vm257_vm1, %v7387_v10 }
 0x128   : > { %5766 = vmatprep.mubr.msk.f32.mxu0 %vm257_vm1, %v6648_v6 }
 0x12a   : > { %5567 = vmatmul.mubr.msk.f32.gmra.mrb[26].mxu1 %vm257_vm1, %v6774_v32 }
 0x12b   : > { %5767 = vmatmul.mubr.msk.f32.gmra.mrb[26].mxu0 %vm257_vm1, %v7378_v25  ;;  %5569 = vmatprep.mubr.msk.f32.mxu1 %vm257_vm1, %v6777_v34 }
 0x12c   : > { %5769 = vmatprep.mubr.msk.f32.mxu0 %vm257_vm1, %v7399_v12 }
 0x12e   : > { %5570 = vmatmul.mubr.msk.f32.gmra.mrb[28].mxu1 %vm257_vm1, %v6788_v36 }
 0x12f   : > { %5770 = vmatmul.mubr.msk.f32.gmra.mrb[28].mxu0 %vm257_vm1, %v7400_v18  ;;  %5572 = vmatprep.mubr.msk.f32.mxu1 %vm257_vm1, %v6981_v27 }
 0x130   : > { %5772 = vmatprep.mubr.msk.f32.mxu0 %vm257_vm1, %v4987_v14 }
 0x132   : > { %5573 = vmatmul.mubr.msk.f32.gmra.mrb[30].mxu1 %vm257_vm1, %v6992_v33 }
 0x133   : > { %5773 = vmatmul.mubr.msk.f32.gmra.mrb[30].mxu0 %vm257_vm1, %v4988_v20 }
 0x1a9   : > { %v5479_v22 = vpop.f32.mrb[0].mxu1 }
 0x1aa   : > { %v1725_v24 = vpop.f32.mrb[1].mxu1 }
 0x1ad   : > { %v5482_v26 = vpop.f32.mrb[2].mxu1 }
 0x1ae   : > { %v1735_v28 = vpop.f32.mrb[3].mxu1 }
 0x1b1   : > { %v5485_v32 = vpop.f32.mrb[4].mxu1 }
 0x1b2   : > { %v1745_v34 = vpop.f32.mrb[5].mxu1 }
 0x1b5   : > { %v5488_v36 = vpop.f32.mrb[6].mxu1 }
 0x1b6   : > { %v1755_v47 = vpop.f32.mrb[7].mxu1 }
 0x1b9   : > { %v5491_v48 = vpop.f32.mrb[8].mxu1 }
 0x1ba   : > { %v1765_v49 = vpop.f32.mrb[9].mxu1 }
 0x1bd   : > { %v7134_v50 = vpop.f32.mrb[10].mxu1 }
 0x1be   : > { %v7136_v51 = vpop.f32.mrb[11].mxu1 }
 0x1c1   : > { %v7138_v52 = vpop.f32.mrb[12].mxu1 }
 0x1c2   : > { %v7140_v53 = vpop.f32.mrb[13].mxu1 }
 0x1c5   : > { %v7142_v54 = vpop.f32.mrb[14].mxu1 }
 0x1c6   : > { %v7144_v55 = vpop.f32.mrb[15].mxu1 }
 0x1ca   : > { %v5729_v56 = vpop.f32.mrb[0].mxu0 }
 0x1cb   : > { %v5779_v58 = vadd.f32 %v5729_v56, %v5479_v22  ;;  %v3998_v59 = vpop.f32.mrb[1].mxu0 }
 0x1cc   : > { %v5782_v62 = vadd.f32 %v3998_v59, %v1725_v24 }
 0x1cd   : > { %v4293_v63 = vmul.f32 %v5779_v58, %v7149_v57 }
 0x1ce   : > { %v4292_v0 = vmul.f32 %v5782_v62, %v7149_v57  ;;  %v5732_v2 = vpop.f32.mrb[2].mxu0 }
 0x1cf   : > { %v4332_v3 = vadd.f32 %v7154_v61, %v4293_v63  ;;  %v5785_v4 = vadd.f32 %v5732_v2, %v5482_v26  ;;  %v4008_v8 = vpop.f32.mrb[3].mxu0 }
 0x1d0   : > { %v4331_v5 = vadd.f32 %v7154_v61, %v4292_v0  ;;  %v5788_v11 = vadd.f32 %v4008_v8, %v1735_v28 }
 0x1d1   : > { %v4364_v6 = vmax.f32 %v4332_v3, 0.0  ;;  %v4295_v44 = vmul.f32 %v5785_v4, %v7149_v57 }
 0x1d2   : > { %v4363_v30 = vmax.f32 %v4331_v5, 0.0  ;;  %v4294_v39 = vmul.f32 %v5788_v11, %v7149_v57  ;;  %v5735_v40 = vpop.f32.mrb[4].mxu0 }
 0x1d3   : > { %4396 = vst [vmem:[%s7163_s26 + $0x8] sm:$0xff] %v4364_v6  ;;  %v4334_v60 = vadd.f32 %v7154_v61, %v4295_v44  ;;  %v5791_v9 = vadd.f32 %v5735_v40, %v5485_v32  ;;  %v4018_v13 = vpop.f32.mrb[5].mxu0 }
 0x1d4   : > { %4395 = vst [vmem:[%s7163_s26] sm:$0xff] %v4363_v30  ;;  %v4333_v15 = vadd.f32 %v7154_v61, %v4294_v39  ;;  %v5794_v17 = vadd.f32 %v4018_v13, %v1745_v34 }
 0x1d5   : > { %v4366_v19 = vmax.f32 %v4334_v60, 0.0  ;;  %v4297_v21 = vmul.f32 %v5791_v9, %v7149_v57 }
 0x1d6   : > { %v4365_v23 = vmax.f32 %v4333_v15, 0.0  ;;  %v4296_v25 = vmul.f32 %v5794_v17, %v7149_v57  ;;  %v5738_v10 = vpop.f32.mrb[6].mxu0 }
 0x1d7   : > { %4398 = vst [vmem:[%s7163_s26 + $0x18] sm:$0xff] %v4366_v19  ;;  %v4336_v7 = vadd.f32 %v7154_v61, %v4297_v21  ;;  %v5797_v41 = vadd.f32 %v5738_v10, %v5488_v36  ;;  %v4028_v27 = vpop.f32.mrb[7].mxu0 }
 0x1d8   : > { %4397 = vst [vmem:[%s7163_s26 + $0x10] sm:$0xff] %v4365_v23  ;;  %v4335_v29 = vadd.f32 %v7154_v61, %v4296_v25  ;;  %v5800_v31 = vadd.f32 %v4028_v27, %v1755_v47 }
 0x1d9   : > { %v4368_v33 = vmax.f32 %v4336_v7, 0.0  ;;  %v4299_v1 = vmul.f32 %v5797_v41, %v7149_v57 }
 0x1da   : > { %v4367_v35 = vmax.f32 %v4335_v29, 0.0  ;;  %v4298_v16 = vmul.f32 %v5800_v31, %v7149_v57  ;;  %v5741_v37 = vpop.f32.mrb[8].mxu0 }
 0x1db   : > { %4400 = vst [vmem:[%s7163_s26 + $0x28] sm:$0xff] %v4368_v33  ;;  %v4338_v38 = vadd.f32 %v7154_v61, %v4299_v1  ;;  %v5803_v42 = vadd.f32 %v5741_v37, %v5491_v48  ;;  %v4038_v43 = vpop.f32.mrb[9].mxu0 }
 0x1dc   : > { %4399 = vst [vmem:[%s7163_s26 + $0x20] sm:$0xff] %v4367_v35  ;;  %v4337_v45 = vadd.f32 %v7154_v61, %v4298_v16  ;;  %v5806_v46 = vadd.f32 %v4038_v43, %v1765_v49 }
 0x1dd   : > { %v4370_v12 = vmax.f32 %v4338_v38, 0.0  ;;  %v4301_v14 = vmul.f32 %v5803_v42, %v7149_v57 }
 0x1de   : > { %v4369_v18 = vmax.f32 %v4337_v45, 0.0  ;;  %v4300_v20 = vmul.f32 %v5806_v46, %v7149_v57  ;;  %v5744_v22 = vpop.f32.mrb[10].mxu0 }
 0x1df   : > { %4402 = vst [vmem:[%s7163_s26 + $0x38] sm:$0xff] %v4370_v12  ;;  %v4340_v24 = vadd.f32 %v7154_v61, %v4301_v14  ;;  %v5809_v26 = vadd.f32 %v5744_v22, %v7134_v50  ;;  %v4048_v28 = vpop.f32.mrb[11].mxu0 }
 0x1e0   : > { %4401 = vst [vmem:[%s7163_s26 + $0x30] sm:$0xff] %v4369_v18  ;;  %v4339_v32 = vadd.f32 %v7154_v61, %v4300_v20  ;;  %v5812_v34 = vadd.f32 %v4048_v28, %v7136_v51 }
 0x1e1   : > { %v4372_v36 = vmax.f32 %v4340_v24, 0.0  ;;  %v4303_v47 = vmul.f32 %v5809_v26, %v7149_v57 }
 0x1e2   : > { %v4371_v48 = vmax.f32 %v4339_v32, 0.0  ;;  %v4302_v49 = vmul.f32 %v5812_v34, %v7149_v57  ;;  %v5747_v56 = vpop.f32.mrb[12].mxu0 }
 0x1e3   : > { %4404 = vst [vmem:[%s7163_s26 + $0x48] sm:$0xff] %v4372_v36  ;;  %v4342_v58 = vadd.f32 %v7154_v61, %v4303_v47  ;;  %v5815_v50 = vadd.f32 %v5747_v56, %v7138_v52  ;;  %v4058_v59 = vpop.f32.mrb[13].mxu0 }
 0x1e4   : > { %4403 = vst [vmem:[%s7163_s26 + $0x40] sm:$0xff] %v4371_v48  ;;  %v4341_v62 = vadd.f32 %v7154_v61, %v4302_v49  ;;  %v5818_v51 = vadd.f32 %v4058_v59, %v7140_v53 }
 0x1e5   : > { %v4374_v63 = vmax.f32 %v4342_v58, 0.0  ;;  %v4305_v0 = vmul.f32 %v5815_v50, %v7149_v57 }
 0x1e6   : > { %v4373_v2 = vmax.f32 %v4341_v62, 0.0  ;;  %v4304_v3 = vmul.f32 %v5818_v51, %v7149_v57  ;;  %v5750_v4 = vpop.f32.mrb[14].mxu0 }
 0x1e7   : > { %4406 = vst [vmem:[%s7163_s26 + $0x58] sm:$0xff] %v4374_v63  ;;  %v4344_v8 = vadd.f32 %v7154_v61, %v4305_v0  ;;  %v5821_v5 = vadd.f32 %v5750_v4, %v7142_v54  ;;  %v4068_v52 = vpop.f32.mrb[15].mxu0 }
 0x1e8   : > { %4405 = vst [vmem:[%s7163_s26 + $0x50] sm:$0xff] %v4373_v2  ;;  %v4343_v11 = vadd.f32 %v7154_v61, %v4304_v3  ;;  %v5824_v53 = vadd.f32 %v4068_v52, %v7144_v55 }
 0x1e9   : > { %v4376_v6 = vmax.f32 %v4344_v8, 0.0  ;;  %v4307_v44 = vmul.f32 %v5821_v5, %v7149_v57  ;;  %v5553_v40 = vpop.f32.mrb[16].mxu1 }
 0x1ea   : > { %v4375_v30 = vmax.f32 %v4343_v11, 0.0  ;;  %v4306_v39 = vmul.f32 %v5824_v53, %v7149_v57  ;;  %v5753_v60 = vpop.f32.mrb[16].mxu0  ;;  %v2259_v13 = vpop.f32.mrb[17].mxu1 }
 0x1eb   : > { %4408 = vst [vmem:[%s7163_s26 + $0x68] sm:$0xff] %v4376_v6  ;;  %v4346_v9 = vadd.f32 %v7154_v61, %v4307_v44  ;;  %v5827_v54 = vadd.f32 %v5753_v60, %v5553_v40  ;;  %v4078_v15 = vpop.f32.mrb[17].mxu0 }
 0x1ec   : > { %4407 = vst [vmem:[%s7163_s26 + $0x60] sm:$0xff] %v4375_v30  ;;  %v4345_v17 = vadd.f32 %v7154_v61, %v4306_v39  ;;  %v5830_v55 = vadd.f32 %v4078_v15, %v2259_v13 }
 0x1ed   : > { %v4378_v19 = vmax.f32 %v4346_v9, 0.0  ;;  %v4309_v21 = vmul.f32 %v5827_v54, %v7149_v57  ;;  %v5556_v10 = vpop.f32.mrb[18].mxu1 }
 0x1ee   : > { %v4377_v23 = vmax.f32 %v4345_v17, 0.0  ;;  %v4308_v25 = vmul.f32 %v5830_v55, %v7149_v57  ;;  %v5756_v7 = vpop.f32.mrb[18].mxu0  ;;  %v2269_v29 = vpop.f32.mrb[19].mxu1 }
 0x1ef   : > { %4410 = vst [vmem:[%s7163_s26 + $0x78] sm:$0xff] %v4378_v19  ;;  %v4348_v41 = vadd.f32 %v7154_v61, %v4309_v21  ;;  %v5833_v27 = vadd.f32 %v5756_v7, %v5556_v10  ;;  %v4088_v31 = vpop.f32.mrb[19].mxu0 }
 0x1f0   : > { %4409 = vst [vmem:[%s7163_s26 + $0x70] sm:$0xff] %v4377_v23  ;;  %v4347_v33 = vadd.f32 %v7154_v61, %v4308_v25  ;;  %v5836_v1 = vadd.f32 %v4088_v31, %v2269_v29 }
 0x1f1   : > { %v4380_v35 = vmax.f32 %v4348_v41, 0.0  ;;  %v4311_v16 = vmul.f32 %v5833_v27, %v7149_v57  ;;  %v5559_v42 = vpop.f32.mrb[20].mxu1 }
 0x1f2   : > { %v4379_v37 = vmax.f32 %v4347_v33, 0.0  ;;  %v4310_v38 = vmul.f32 %v5836_v1, %v7149_v57  ;;  %v5759_v43 = vpop.f32.mrb[20].mxu0  ;;  %v2279_v12 = vpop.f32.mrb[21].mxu1 }
 0x1f3   : > { %4412 = vst [vmem:[%s7163_s26 + $0x88] sm:$0xff] %v4380_v35  ;;  %v4350_v45 = vadd.f32 %v7154_v61, %v4311_v16  ;;  %v5839_v46 = vadd.f32 %v5759_v43, %v5559_v42  ;;  %v4098_v14 = vpop.f32.mrb[21].mxu0 }
 0x1f4   : > { %4411 = vst [vmem:[%s7163_s26 + $0x80] sm:$0xff] %v4379_v37  ;;  %v4349_v18 = vadd.f32 %v7154_v61, %v4310_v38  ;;  %v5842_v20 = vadd.f32 %v4098_v14, %v2279_v12 }
 0x1f5   : > { %v4382_v22 = vmax.f32 %v4350_v45, 0.0  ;;  %v4313_v24 = vmul.f32 %v5839_v46, %v7149_v57  ;;  %v5562_v32 = vpop.f32.mrb[22].mxu1 }
 0x1f6   : > { %v4381_v26 = vmax.f32 %v4349_v18, 0.0  ;;  %v4312_v28 = vmul.f32 %v5842_v20, %v7149_v57  ;;  %v5762_v34 = vpop.f32.mrb[22].mxu0  ;;  %v2289_v48 = vpop.f32.mrb[23].mxu1 }
 0x1f7   : > { %4414 = vst [vmem:[%s7163_s26 + $0x98] sm:$0xff] %v4382_v22  ;;  %v4352_v36 = vadd.f32 %v7154_v61, %v4313_v24  ;;  %v5845_v47 = vadd.f32 %v5762_v34, %v5562_v32  ;;  %v4108_v49 = vpop.f32.mrb[23].mxu0 }
 0x1f8   : > { %4413 = vst [vmem:[%s7163_s26 + $0x90] sm:$0xff] %v4381_v26  ;;  %v4351_v56 = vadd.f32 %v7154_v61, %v4312_v28  ;;  %v5848_v58 = vadd.f32 %v4108_v49, %v2289_v48 }
 0x1f9   : > { %v4384_v50 = vmax.f32 %v4352_v36, 0.0  ;;  %v4315_v59 = vmul.f32 %v5845_v47, %v7149_v57  ;;  %v5565_v63 = vpop.f32.mrb[24].mxu1 }
 0x1fa   : > { %v4383_v62 = vmax.f32 %v4351_v56, 0.0  ;;  %v4314_v51 = vmul.f32 %v5848_v58, %v7149_v57  ;;  %v5765_v0 = vpop.f32.mrb[24].mxu0  ;;  %v2299_v4 = vpop.f32.mrb[25].mxu1 }
 0x1fb   : > { %4416 = vst [vmem:[%s7163_s26 + $0xa8] sm:$0xff] %v4384_v50  ;;  %v4354_v2 = vadd.f32 %v7154_v61, %v4315_v59  ;;  %v5851_v3 = vadd.f32 %v5765_v0, %v5565_v63  ;;  %v4118_v8 = vpop.f32.mrb[25].mxu0 }
 0x1fc   : > { %4415 = vst [vmem:[%s7163_s26 + $0xa0] sm:$0xff] %v4383_v62  ;;  %v4353_v5 = vadd.f32 %v7154_v61, %v4314_v51  ;;  %v5854_v52 = vadd.f32 %v4118_v8, %v2299_v4 }
 0x1fd   : > { %v4386_v11 = vmax.f32 %v4354_v2, 0.0  ;;  %v4317_v53 = vmul.f32 %v5851_v3, %v7149_v57  ;;  %v5568_v30 = vpop.f32.mrb[26].mxu1 }
 0x1fe   : > { %v4385_v6 = vmax.f32 %v4353_v5, 0.0  ;;  %v4316_v44 = vmul.f32 %v5854_v52, %v7149_v57  ;;  %v5768_v39 = vpop.f32.mrb[26].mxu0  ;;  %v2309_v9 = vpop.f32.mrb[27].mxu1 }
 0x1ff   : > { %4418 = vst [vmem:[%s7163_s26 + $0xb8] sm:$0xff] %v4386_v11  ;;  %v4356_v40 = vadd.f32 %v7154_v61, %v4317_v53  ;;  %v5857_v60 = vadd.f32 %v5768_v39, %v5568_v30  ;;  %v4128_v54 = vpop.f32.mrb[27].mxu0 }
 0x200   : > { %4417 = vst [vmem:[%s7163_s26 + $0xb0] sm:$0xff] %v4385_v6  ;;  %v4355_v13 = vadd.f32 %v7154_v61, %v4316_v44  ;;  %v5860_v15 = vadd.f32 %v4128_v54, %v2309_v9 }
 0x201   : > { %v4388_v17 = vmax.f32 %v4356_v40, 0.0  ;;  %v4319_v55 = vmul.f32 %v5857_v60, %v7149_v57  ;;  %v5571_v23 = vpop.f32.mrb[28].mxu1 }
 0x202   : > { %v4387_v19 = vmax.f32 %v4355_v13, 0.0  ;;  %v4318_v21 = vmul.f32 %v5860_v15, %v7149_v57  ;;  %v5771_v25 = vpop.f32.mrb[28].mxu0  ;;  %v2319_v41 = vpop.f32.mrb[29].mxu1 }
 0x203   : > { %4420 = vst [vmem:[%s7163_s26 + $0xc8] sm:$0xff] %v4388_v17  ;;  %v4358_v10 = vadd.f32 %v7154_v61, %v4319_v55  ;;  %v5863_v7 = vadd.f32 %v5771_v25, %v5571_v23  ;;  %v4138_v27 = vpop.f32.mrb[29].mxu0 }
 0x204   : > { %4419 = vst [vmem:[%s7163_s26 + $0xc0] sm:$0xff] %v4387_v19  ;;  %v4357_v29 = vadd.f32 %v7154_v61, %v4318_v21  ;;  %v5866_v31 = vadd.f32 %v4138_v27, %v2319_v41 }
 0x205   : > { %v4390_v33 = vmax.f32 %v4358_v10, 0.0  ;;  %v4321_v1 = vmul.f32 %v5863_v7, %v7149_v57  ;;  %v5574_v37 = vpop.f32.mrb[30].mxu1 }
 0x206   : > { %v4389_v35 = vmax.f32 %v4357_v29, 0.0  ;;  %v4320_v16 = vmul.f32 %v5866_v31, %v7149_v57  ;;  %v5774_v38 = vpop.f32.mrb[30].mxu0  ;;  %v2329_v45 = vpop.f32.mrb[31].mxu1 }
 0x207   : > { %4422 = vst [vmem:[%s7163_s26 + $0xd8] sm:$0xff] %v4390_v33  ;;  %v4360_v42 = vadd.f32 %v7154_v61, %v4321_v1  ;;  %v5869_v43 = vadd.f32 %v5774_v38, %v5574_v37  ;;  %v4148_v46 = vpop.f32.mrb[31].mxu0 }
 0x208   : > { %4421 = vst [vmem:[%s7163_s26 + $0xd0] sm:$0xff] %v4389_v35  ;;  %v4359_v12 = vadd.f32 %v7154_v61, %v4320_v16  ;;  %v5872_v14 = vadd.f32 %v4148_v46, %v2329_v45 }
 0x209   : > { %v4392_v18 = vmax.f32 %v4360_v42, 0.0  ;;  %v4323_v20 = vmul.f32 %v5869_v43, %v7149_v57 }
 0x20a   : > { %v4391_v22 = vmax.f32 %v4359_v12, 0.0  ;;  %v4322_v24 = vmul.f32 %v5872_v14, %v7149_v57 }
 0x20b   : > { %4424 = vst [vmem:[%s7163_s26 + $0xe8] sm:$0xff] %v4392_v18  ;;  %v4362_v26 = vadd.f32 %v7154_v61, %v4323_v20 }
 0x20c   : > { %4423 = vst [vmem:[%s7163_s26 + $0xe0] sm:$0xff] %v4391_v22  ;;  %v4361_v28 = vadd.f32 %v7154_v61, %v4322_v24 }
 0x20d   : > { %v4394_v32 = vmax.f32 %v4362_v26, 0.0 }
 0x20e   : > { %v4393_v34 = vmax.f32 %v4361_v28, 0.0 }
 0x20f   : > { %4426 = vst [vmem:[%s7163_s26 + $0xf8] sm:$0xff] %v4394_v32 }
 0x210   : > { %4425 = vst [vmem:[%s7163_s26 + $0xf0] sm:$0xff] %v4393_v34 }
 0x211 PF: > { %s14_s17 = sadd.s32 1, %s6144_s17   ;;  %s7401_s15 = smov %s6140_s16 }
 0x212   : > { %p11_p5 = scmp.ge.s32.totalorder %s14_s17, 4   ;;  %s7402_s16 = smov %s7404_s18 }
 0x214   :  { %13 = sbr.rel (!%p11_p5) target bundleno = 2 (0x2), region = 77 }

</bundles_post_ra>
